<compile_context>
chip_gen: v6e
topology: v6e:2x2x1
jax: 0.10.0
libtpu: 0.0.40
codegen_flags: <defaults>
</compile_context>

<pallas_src>
import functools

import numpy as np
import jax
import jax.numpy as jnp
from jax.experimental import pallas as pl
from jax.experimental.pallas import tpu as pltpu

# ---------------- module configuration: WindowAttention(dim=32, window=(4,4), heads=4) ----
DIM = 32
NUM_HEADS = 4
HEAD_DIM = DIM // NUM_HEADS
WINDOW = 4
N_TOK = WINDOW * WINDOW
SHIFT = WINDOW // 2
SCALE = HEAD_DIM ** (-0.5)        # qk_scale=None -> head_dim ** -0.5


# ---------------- relative position index (host-side, numpy) ----------------
def _rel_pos_index(ws):
    coords = np.stack(np.meshgrid(np.arange(ws), np.arange(ws), indexing="ij"))
    flat = coords.reshape(2, -1)
    rel = (flat[:, :, None] - flat[:, None, :]).transpose(1, 2, 0).copy()
    rel[:, :, 0] += ws - 1
    rel[:, :, 1] += ws - 1
    rel[:, :, 0] *= 2 * ws - 1
    return rel.sum(-1)            # (N, N) int


REL_INDEX = _rel_pos_index(WINDOW)


# ---------------- host-side constant folding of the weights ----------------
def _prepare_weights(params):
    """Split Wqkv per head, fold SCALE into Wq/bq and Wproj into Wv/bv. All folds in f32,
    matmul weights cast to bf16 once at the end (MXU-native inputs)."""
    wqkv, bqkv, wproj = params["wqkv"], params["bqkv"], params["wproj"]
    wq = wqkv[:, 0 * DIM:1 * DIM] * SCALE                       # (C, C), scale folded
    bq = bqkv[0 * DIM:1 * DIM] * SCALE
    wk = wqkv[:, 1 * DIM:2 * DIM]
    bk = bqkv[1 * DIM:2 * DIM]
    wv = wqkv[:, 2 * DIM:3 * DIM]
    bv = bqkv[2 * DIM:3 * DIM]

    # head-major weight tensors: leading head axis -> free leading-dim indexing in-kernel
    wq_h = wq.reshape(DIM, NUM_HEADS, HEAD_DIM).transpose(1, 0, 2)      # (nH, C, hd)
    wk_h = wk.reshape(DIM, NUM_HEADS, HEAD_DIM).transpose(1, 0, 2)      # (nH, C, hd)
    bq_h = bq.reshape(NUM_HEADS, 1, HEAD_DIM)                           # (nH, 1, hd)
    bk_h = bk.reshape(NUM_HEADS, 1, HEAD_DIM)

    # fold the output projection into V:  v'_h = x @ (Wv_h @ Wproj_h) + bv_h @ Wproj_h
    wv_h = wv.reshape(DIM, NUM_HEADS, HEAD_DIM).transpose(1, 0, 2)      # (nH, C, hd)
    wproj_h = wproj.reshape(NUM_HEADS, HEAD_DIM, DIM)                   # (nH, hd, C)
    wvp_h = jnp.einsum("hcd,hdo->hco", wv_h, wproj_h)                   # (nH, C, C)
    bvp_h = jnp.einsum("hd,hdo->ho", bv.reshape(NUM_HEADS, HEAD_DIM),
                       wproj_h).reshape(NUM_HEADS, 1, DIM)              # (nH, 1, C)

    return (wq_h.astype(jnp.bfloat16), bq_h,
            wk_h.astype(jnp.bfloat16), bk_h,
            wvp_h.astype(jnp.bfloat16), bvp_h,
            params["bproj"].reshape(1, DIM))


def _full_bias(rpb_table, mask, n_win):
    """Rel-pos bias (+ shift mask) pre-broadcast to (nH, B_, N, N) -- the exact layout the
    in-kernel score slab uses, so the kernel bias add needs no reshapes."""
    rel = rpb_table[REL_INDEX.reshape(-1)].reshape(N_TOK, N_TOK, NUM_HEADS)
    rel = jnp.transpose(rel, (2, 0, 1))                                 # (nH, N, N)
    if mask is None:
        return jnp.broadcast_to(rel[:, None], (NUM_HEADS, n_win, N_TOK, N_TOK))
    n_mask = mask.shape[0]
    assert n_win % n_mask == 0
    per_w = rel[:, None] + mask[None]                                   # (nH, nW, N, N)
    return jnp.tile(per_w, (1, n_win // n_mask, 1, 1))                  # (nH, B_, N, N)


# ---------------- fused Pallas kernel (one block = `wb` windows) ----------------
def _window_attn_kernel(x_ref, wq_ref, bq_ref, wk_ref, bk_ref, wvp_ref, bvp_ref,
                        bproj_ref, bias_ref, o_ref, *, wb):
    bf16 = jnp.bfloat16
    xb = x_ref[...].astype(bf16)                                        # (wb*N, C)

    # per-head projections: leading-axis weight indexing (free), no activation lane slices
    q_l, k_l, v_l = [], [], []
    for h in range(NUM_HEADS):                                          # static, unrolled
        q_l.append((jnp.dot(xb, wq_ref[h], preferred_element_type=jnp.float32)
                    + bq_ref[h]).reshape(wb, N_TOK, HEAD_DIM))          # scale folded in
        k_l.append((jnp.dot(xb, wk_ref[h], preferred_element_type=jnp.float32)
                    + bk_ref[h]).reshape(wb, N_TOK, HEAD_DIM))
        v_l.append((jnp.dot(xb, wvp_ref[h], preferred_element_type=jnp.float32)
                    + bvp_ref[h]).reshape(wb, N_TOK, DIM))              # Wproj folded in
    # batch index s = h*wb + window  (matches the pre-broadcast bias layout)
    q = jnp.concatenate(q_l, axis=0)                                    # (nH*wb, N, hd)
    k = jnp.concatenate(k_l, axis=0)                                    # (nH*wb, N, hd)
    v = jnp.concatenate(v_l, axis=0)                                    # (nH*wb, N, C)

    # ONE batched score matmul + ONE softmax slab for every head/window of the block
    s = jnp.einsum("sqd,skd->sqk", q.astype(bf16), k.astype(bf16),
                   preferred_element_type=jnp.float32)                  # (nH*wb, N, N)
    s = s + bias_ref[...].reshape(NUM_HEADS * wb, N_TOK, N_TOK)         # plain aligned add
    s = s - jnp.max(s, axis=-1, keepdims=True)                          # softmax in f32
    e = jnp.exp(s)
    p = e / jnp.sum(e, axis=-1, keepdims=True)                          # exact division

    o = jnp.einsum("sqk,skd->sqd", p.astype(bf16), v.astype(bf16),
                   preferred_element_type=jnp.float32)                  # (nH*wb, N, C)

    # head-sum (output projection already folded into v); leading-dim slices are free
    out = o[0:wb]
    for h in range(1, NUM_HEADS):
        out = out + o[h * wb:(h + 1) * wb]
    o_ref[...] = out.reshape(wb * N_TOK, DIM) + bproj_ref[...]


# ---------------- wrapper ----------------
def window_attention(x, params, mask=None, *, windows_per_block=8):
    """x: (B_, N, C) windows, mask: (nW, N, N) or None. Returns (B_, N, C)."""
    B_, N, C = x.shape
    assert (N, C) == (N_TOK, DIM)

    wb = max(1, min(windows_per_block, B_))
    while B_ % wb:                      # block size must divide the window count
        wb -= 1
    n_blocks = B_ // wb
    m_blk = wb * N_TOK

    wq, bq, wk, bk, wvp, bvp, bproj = _prepare_weights(params)
    bias = _full_bias(params["rpb_table"], mask, B_)                    # (nH, B_, N, N)

    kernel = functools.partial(_window_attn_kernel, wb=wb)
    out2d = pl.pallas_call(
        kernel,
        out_shape=jax.ShapeDtypeStruct((B_ * N_TOK, DIM), jnp.float32),
        grid=(n_blocks,),
        in_specs=[
            pl.BlockSpec((m_blk, DIM), lambda i: (i, 0)),                        # x block
            pl.BlockSpec((NUM_HEADS, DIM, HEAD_DIM), lambda i: (0, 0, 0)),       # Wq (scaled)
            pl.BlockSpec((NUM_HEADS, 1, HEAD_DIM), lambda i: (0, 0, 0)),         # bq (scaled)
            pl.BlockSpec((NUM_HEADS, DIM, HEAD_DIM), lambda i: (0, 0, 0)),       # Wk
            pl.BlockSpec((NUM_HEADS, 1, HEAD_DIM), lambda i: (0, 0, 0)),         # bk
            pl.BlockSpec((NUM_HEADS, DIM, DIM), lambda i: (0, 0, 0)),            # Wv @ Wproj
            pl.BlockSpec((NUM_HEADS, 1, DIM), lambda i: (0, 0, 0)),              # bv @ Wproj
            pl.BlockSpec((1, DIM), lambda i: (0, 0)),                            # bproj
            pl.BlockSpec((NUM_HEADS, wb, N_TOK, N_TOK), lambda i: (0, i, 0, 0)), # bias block
        ],
        out_specs=pl.BlockSpec((m_blk, DIM), lambda i: (i, 0)),
        compiler_params=pltpu.CompilerParams(dimension_semantics=("parallel",)),
    )(x.reshape(B_ * N_TOK, DIM), wq, bq, wk, bk, wvp, bvp, bproj, bias)
    return out2d.reshape(B_, N_TOK, DIM)


# ---------------- plain-JAX reference (direct PyTorch translation, bf16 matmul casts) ------
def window_attention_ref(x, params, mask=None):
    bf16 = jnp.bfloat16
    B_, N, C = x.shape
    rel = params["rpb_table"][REL_INDEX.reshape(-1)].reshape(N, N, NUM_HEADS)
    rel = jnp.transpose(rel, (2, 0, 1))                                  # (nH, N, N)
    qkv = jnp.dot(x.reshape(-1, C).astype(bf16), params["wqkv"].astype(bf16),
                  preferred_element_type=jnp.float32) + params["bqkv"]
    qkv = qkv.reshape(B_, N, 3, NUM_HEADS, HEAD_DIM).transpose(2, 0, 3, 1, 4)
    q, k, v = qkv[0] * SCALE, qkv[1], qkv[2]
    attn = jnp.einsum("bhqd,bhkd->bhqk", q.astype(bf16), k.astype(bf16),
                      preferred_element_type=jnp.float32) + rel[None]
    if mask is not None:
        nW = mask.shape[0]
        attn = (attn.reshape(B_ // nW, nW, NUM_HEADS, N, N)
                + mask[None, :, None]).reshape(B_, NUM_HEADS, N, N)
    attn = jax.nn.softmax(attn, axis=-1)
    out = jnp.einsum("bhqk,bhkd->bhqd", attn.astype(bf16), v.astype(bf16),
                     preferred_element_type=jnp.float32)
    out = out.transpose(0, 2, 1, 3).reshape(B_ * N, C)
    out = jnp.dot(out.astype(bf16), params["wproj"].astype(bf16),
                  preferred_element_type=jnp.float32) + params["bproj"]
    return out.reshape(B_, N, C)


# ---------------- shifted-window mask (host-side, numpy) ----------------
def _window_partition_np(x, ws):
    B, H, W, C = x.shape
    x = x.reshape(B, H // ws, ws, W // ws, ws, C)
    return x.transpose(0, 1, 3, 2, 4, 5).reshape(-1, ws, ws, C)


def compute_attn_mask(H, W, ws, shift):
    Hp = int(np.ceil(H / ws)) * ws
    Wp = int(np.ceil(W / ws)) * ws
    img_mask = np.zeros((1, Hp, Wp, 1), np.float32)
    slices = (slice(0, -ws), slice(-ws, -shift), slice(-shift, None))
    cnt = 0
    for hs in slices:
        for wsl in slices:
            img_mask[:, hs, wsl, :] = cnt
            cnt += 1
    mw = _window_partition_np(img_mask, ws).reshape(-1, ws * ws)
    am = mw[:, None, :] - mw[:, :, None]
    return jnp.asarray(np.where(am != 0, -100.0, 0.0).astype(np.float32))   # (nW, N, N)


# ---------------- deterministic parameter init ----------------
def init_params(key):
    ks = jax.random.split(key, 5)
    num_rel = (2 * WINDOW - 1) ** 2
    return {
        "wqkv": 0.05 * jax.random.normal(ks[0], (DIM, 3 * DIM), jnp.float32),
        "bqkv": 0.02 * jax.random.normal(ks[1], (3 * DIM,), jnp.float32),
        "rpb_table": 0.02 * jax.random.normal(ks[2], (num_rel, NUM_HEADS), jnp.float32),
        "wproj": 0.05 * jax.random.normal(ks[3], (DIM, DIM), jnp.float32),
        "bproj": 0.02 * jax.random.normal(ks[4], (DIM,), jnp.float32),
    }


if __name__ == "__main__":
    key = jax.random.PRNGKey(0)
    kx, kp = jax.random.split(key)
    B, H, W = 2, 8, 8                               # 2 images of 8x8 tokens, 4x4 windows
    nW = (H // WINDOW) * (W // WINDOW)              # 4 windows per image
    B_ = B * nW                                     # 8 windows total, N=16 tokens, C=32
    x = jax.random.normal(kx, (B_, N_TOK, DIM), jnp.float32)
    params = init_params(kp)
    mask = compute_attn_mask(H, W, WINDOW, SHIFT)   # (nW, N, N) shifted-window mask

    # masked (SW-MSA) path -- single block of 8 windows (128-row slab)
    out_masked = jax.block_until_ready(window_attention(x, params, mask))
    ref_masked = jax.block_until_ready(window_attention_ref(x, params, mask))
    np.testing.assert_allclose(np.asarray(out_masked), np.asarray(ref_masked),
                               atol=4e-3, rtol=2e-2)

    # mask=None (W-MSA) path -- 2-block grid to exercise the pipelined/parallel grid path
    out_plain = jax.block_until_ready(window_attention(x, params, None, windows_per_block=4))
    ref_plain = jax.block_until_ready(window_attention_ref(x, params, None))
    np.testing.assert_allclose(np.asarray(out_plain), np.asarray(ref_plain),
                               atol=4e-3, rtol=2e-2)

    assert out_masked.shape == (B_, N_TOK, DIM)
    print("KERNEL_OK")
</pallas_src>

<mosaic_0001>
module attributes {stable_mosaic.version = 11 : i64} {
  func.func @_window_attn_kernel(%arg0: i32, %arg1: memref<128x32xf32, #tpu.memory_space<vmem>>, %arg2: memref<4x32x8xbf16, #tpu.memory_space<vmem>>, %arg3: memref<4x1x8xf32, #tpu.memory_space<vmem>>, %arg4: memref<4x32x8xbf16, #tpu.memory_space<vmem>>, %arg5: memref<4x1x8xf32, #tpu.memory_space<vmem>>, %arg6: memref<4x32x32xbf16, #tpu.memory_space<vmem>>, %arg7: memref<4x1x32xf32, #tpu.memory_space<vmem>>, %arg8: memref<1x32xf32, #tpu.memory_space<vmem>>, %arg9: memref<4x8x16x16xf32, #tpu.memory_space<vmem>>, %arg10: memref<128x32xf32, #tpu.memory_space<vmem>>) attributes {dimension_semantics = [#tpu.dimension_semantics<parallel>], iteration_bounds = array<i64: 1>, scalar_prefetch = 0 : i64, scratch_operands = 0 : i64, tpu.core_type = #tpu.core_type<tc>, window_params = [{transform_indices = @transform_0, window_bounds = array<i64: 128, 32>}, {pipeline_mode = #tpu.pipeline_mode<synchronous>, transform_indices = @transform_1, window_bounds = array<i64: 4, 32, 8>}, {pipeline_mode = #tpu.pipeline_mode<synchronous>, transform_indices = @transform_2, window_bounds = array<i64: 4, 1, 8>}, {pipeline_mode = #tpu.pipeline_mode<synchronous>, transform_indices = @transform_3, window_bounds = array<i64: 4, 32, 8>}, {pipeline_mode = #tpu.pipeline_mode<synchronous>, transform_indices = @transform_4, window_bounds = array<i64: 4, 1, 8>}, {pipeline_mode = #tpu.pipeline_mode<synchronous>, transform_indices = @transform_5, window_bounds = array<i64: 4, 32, 32>}, {pipeline_mode = #tpu.pipeline_mode<synchronous>, transform_indices = @transform_6, window_bounds = array<i64: 4, 1, 32>}, {pipeline_mode = #tpu.pipeline_mode<synchronous>, transform_indices = @transform_7, window_bounds = array<i64: 1, 32>}, {transform_indices = @transform_8, window_bounds = array<i64: 4, 8, 16, 16>}, {transform_indices = @transform_9, window_bounds = array<i64: 128, 32>}]} {
    %c0 = arith.constant 0 : index
    %c0_0 = arith.constant 0 : index
    %0 = vector.load %arg1[%c0, %c0_0] : memref<128x32xf32, #tpu.memory_space<vmem>>, vector<128x32xf32>
    %1 = arith.truncf %0 : vector<128x32xf32> to vector<128x32xbf16>
    %c0_1 = arith.constant 0 : index
    %c0_2 = arith.constant 0 : index
    %c0_3 = arith.constant 0 : index
    %2 = vector.load %arg2[%c0_1, %c0_2, %c0_3] : memref<4x32x8xbf16, #tpu.memory_space<vmem>>, vector<1x32x8xbf16>
    %3 = vector.shape_cast %2 : vector<1x32x8xbf16> to vector<32x8xbf16>
    %cst = arith.constant dense<0.000000e+00> : vector<128x8xf32>
    %4 = tpu.matmul %1, %3, %cst {dimension_numbers = #tpu.dot_dimension_numbers<[1], [0], [0], [1], [0, 0, 1, 1], [], []>} : vector<128x32xbf16>, vector<32x8xbf16>, vector<128x8xf32> -> vector<128x8xf32>
    %c0_4 = arith.constant 0 : index
    %c0_5 = arith.constant 0 : index
    %c0_6 = arith.constant 0 : index
    %5 = vector.load %arg3[%c0_4, %c0_5, %c0_6] : memref<4x1x8xf32, #tpu.memory_space<vmem>>, vector<1x1x8xf32>
    %6 = vector.shape_cast %5 : vector<1x1x8xf32> to vector<1x8xf32>
    %7 = vector.broadcast %6 : vector<1x8xf32> to vector<128x8xf32>
    %8 = arith.addf %4, %7 : vector<128x8xf32>
    %9 = vector.shape_cast %8 : vector<128x8xf32> to vector<8x16x8xf32>
    %c0_7 = arith.constant 0 : index
    %c0_8 = arith.constant 0 : index
    %c0_9 = arith.constant 0 : index
    %10 = vector.load %arg4[%c0_7, %c0_8, %c0_9] : memref<4x32x8xbf16, #tpu.memory_space<vmem>>, vector<1x32x8xbf16>
    %11 = vector.shape_cast %10 : vector<1x32x8xbf16> to vector<32x8xbf16>
    %cst_10 = arith.constant dense<0.000000e+00> : vector<128x8xf32>
    %12 = tpu.matmul %1, %11, %cst_10 {dimension_numbers = #tpu.dot_dimension_numbers<[1], [0], [0], [1], [0, 0, 1, 1], [], []>} : vector<128x32xbf16>, vector<32x8xbf16>, vector<128x8xf32> -> vector<128x8xf32>
    %c0_11 = arith.constant 0 : index
    %c0_12 = arith.constant 0 : index
    %c0_13 = arith.constant 0 : index
    %13 = vector.load %arg5[%c0_11, %c0_12, %c0_13] : memref<4x1x8xf32, #tpu.memory_space<vmem>>, vector<1x1x8xf32>
    %14 = vector.shape_cast %13 : vector<1x1x8xf32> to vector<1x8xf32>
    %15 = vector.broadcast %14 : vector<1x8xf32> to vector<128x8xf32>
    %16 = arith.addf %12, %15 : vector<128x8xf32>
    %17 = vector.shape_cast %16 : vector<128x8xf32> to vector<8x16x8xf32>
    %c0_14 = arith.constant 0 : index
    %c0_15 = arith.constant 0 : index
    %c0_16 = arith.constant 0 : index
    %18 = vector.load %arg6[%c0_14, %c0_15, %c0_16] : memref<4x32x32xbf16, #tpu.memory_space<vmem>>, vector<1x32x32xbf16>
    %19 = vector.shape_cast %18 : vector<1x32x32xbf16> to vector<32x32xbf16>
    %cst_17 = arith.constant dense<0.000000e+00> : vector<128x32xf32>
    %20 = tpu.matmul %1, %19, %cst_17 {dimension_numbers = #tpu.dot_dimension_numbers<[1], [0], [0], [1], [0, 0, 1, 1], [], []>} : vector<128x32xbf16>, vector<32x32xbf16>, vector<128x32xf32> -> vector<128x32xf32>
    %c0_18 = arith.constant 0 : index
    %c0_19 = arith.constant 0 : index
    %c0_20 = arith.constant 0 : index
    %21 = vector.load %arg7[%c0_18, %c0_19, %c0_20] : memref<4x1x32xf32, #tpu.memory_space<vmem>>, vector<1x1x32xf32>
    %22 = vector.shape_cast %21 : vector<1x1x32xf32> to vector<1x32xf32>
    %23 = vector.broadcast %22 : vector<1x32xf32> to vector<128x32xf32>
    %24 = arith.addf %20, %23 : vector<128x32xf32>
    %25 = vector.shape_cast %24 : vector<128x32xf32> to vector<8x16x32xf32>
    %c1 = arith.constant 1 : index
    %c0_21 = arith.constant 0 : index
    %c0_22 = arith.constant 0 : index
    %26 = vector.load %arg2[%c1, %c0_21, %c0_22] : memref<4x32x8xbf16, #tpu.memory_space<vmem>>, vector<1x32x8xbf16>
    %27 = vector.shape_cast %26 : vector<1x32x8xbf16> to vector<32x8xbf16>
    %cst_23 = arith.constant dense<0.000000e+00> : vector<128x8xf32>
    %28 = tpu.matmul %1, %27, %cst_23 {dimension_numbers = #tpu.dot_dimension_numbers<[1], [0], [0], [1], [0, 0, 1, 1], [], []>} : vector<128x32xbf16>, vector<32x8xbf16>, vector<128x8xf32> -> vector<128x8xf32>
    %c1_24 = arith.constant 1 : index
    %c0_25 = arith.constant 0 : index
    %c0_26 = arith.constant 0 : index
    %29 = vector.load %arg3[%c1_24, %c0_25, %c0_26] : memref<4x1x8xf32, #tpu.memory_space<vmem>>, vector<1x1x8xf32>
    %30 = vector.shape_cast %29 : vector<1x1x8xf32> to vector<1x8xf32>
    %31 = vector.broadcast %30 : vector<1x8xf32> to vector<128x8xf32>
    %32 = arith.addf %28, %31 : vector<128x8xf32>
    %33 = vector.shape_cast %32 : vector<128x8xf32> to vector<8x16x8xf32>
    %c1_27 = arith.constant 1 : index
    %c0_28 = arith.constant 0 : index
    %c0_29 = arith.constant 0 : index
    %34 = vector.load %arg4[%c1_27, %c0_28, %c0_29] : memref<4x32x8xbf16, #tpu.memory_space<vmem>>, vector<1x32x8xbf16>
    %35 = vector.shape_cast %34 : vector<1x32x8xbf16> to vector<32x8xbf16>
    %cst_30 = arith.constant dense<0.000000e+00> : vector<128x8xf32>
    %36 = tpu.matmul %1, %35, %cst_30 {dimension_numbers = #tpu.dot_dimension_numbers<[1], [0], [0], [1], [0, 0, 1, 1], [], []>} : vector<128x32xbf16>, vector<32x8xbf16>, vector<128x8xf32> -> vector<128x8xf32>
    %c1_31 = arith.constant 1 : index
    %c0_32 = arith.constant 0 : index
    %c0_33 = arith.constant 0 : index
    %37 = vector.load %arg5[%c1_31, %c0_32, %c0_33] : memref<4x1x8xf32, #tpu.memory_space<vmem>>, vector<1x1x8xf32>
    %38 = vector.shape_cast %37 : vector<1x1x8xf32> to vector<1x8xf32>
    %39 = vector.broadcast %38 : vector<1x8xf32> to vector<128x8xf32>
    %40 = arith.addf %36, %39 : vector<128x8xf32>
    %41 = vector.shape_cast %40 : vector<128x8xf32> to vector<8x16x8xf32>
    %c1_34 = arith.constant 1 : index
    %c0_35 = arith.constant 0 : index
    %c0_36 = arith.constant 0 : index
    %42 = vector.load %arg6[%c1_34, %c0_35, %c0_36] : memref<4x32x32xbf16, #tpu.memory_space<vmem>>, vector<1x32x32xbf16>
    %43 = vector.shape_cast %42 : vector<1x32x32xbf16> to vector<32x32xbf16>
    %cst_37 = arith.constant dense<0.000000e+00> : vector<128x32xf32>
    %44 = tpu.matmul %1, %43, %cst_37 {dimension_numbers = #tpu.dot_dimension_numbers<[1], [0], [0], [1], [0, 0, 1, 1], [], []>} : vector<128x32xbf16>, vector<32x32xbf16>, vector<128x32xf32> -> vector<128x32xf32>
    %c1_38 = arith.constant 1 : index
    %c0_39 = arith.constant 0 : index
    %c0_40 = arith.constant 0 : index
    %45 = vector.load %arg7[%c1_38, %c0_39, %c0_40] : memref<4x1x32xf32, #tpu.memory_space<vmem>>, vector<1x1x32xf32>
    %46 = vector.shape_cast %45 : vector<1x1x32xf32> to vector<1x32xf32>
    %47 = vector.broadcast %46 : vector<1x32xf32> to vector<128x32xf32>
    %48 = arith.addf %44, %47 : vector<128x32xf32>
    %49 = vector.shape_cast %48 : vector<128x32xf32> to vector<8x16x32xf32>
    %c2 = arith.constant 2 : index
    %c0_41 = arith.constant 0 : index
    %c0_42 = arith.constant 0 : index
    %50 = vector.load %arg2[%c2, %c0_41, %c0_42] : memref<4x32x8xbf16, #tpu.memory_space<vmem>>, vector<1x32x8xbf16>
    %51 = vector.shape_cast %50 : vector<1x32x8xbf16> to vector<32x8xbf16>
    %cst_43 = arith.constant dense<0.000000e+00> : vector<128x8xf32>
    %52 = tpu.matmul %1, %51, %cst_43 {dimension_numbers = #tpu.dot_dimension_numbers<[1], [0], [0], [1], [0, 0, 1, 1], [], []>} : vector<128x32xbf16>, vector<32x8xbf16>, vector<128x8xf32> -> vector<128x8xf32>
    %c2_44 = arith.constant 2 : index
    %c0_45 = arith.constant 0 : index
    %c0_46 = arith.constant 0 : index
    %53 = vector.load %arg3[%c2_44, %c0_45, %c0_46] : memref<4x1x8xf32, #tpu.memory_space<vmem>>, vector<1x1x8xf32>
    %54 = vector.shape_cast %53 : vector<1x1x8xf32> to vector<1x8xf32>
    %55 = vector.broadcast %54 : vector<1x8xf32> to vector<128x8xf32>
    %56 = arith.addf %52, %55 : vector<128x8xf32>
    %57 = vector.shape_cast %56 : vector<128x8xf32> to vector<8x16x8xf32>
    %c2_47 = arith.constant 2 : index
    %c0_48 = arith.constant 0 : index
    %c0_49 = arith.constant 0 : index
    %58 = vector.load %arg4[%c2_47, %c0_48, %c0_49] : memref<4x32x8xbf16, #tpu.memory_space<vmem>>, vector<1x32x8xbf16>
    %59 = vector.shape_cast %58 : vector<1x32x8xbf16> to vector<32x8xbf16>
    %cst_50 = arith.constant dense<0.000000e+00> : vector<128x8xf32>
    %60 = tpu.matmul %1, %59, %cst_50 {dimension_numbers = #tpu.dot_dimension_numbers<[1], [0], [0], [1], [0, 0, 1, 1], [], []>} : vector<128x32xbf16>, vector<32x8xbf16>, vector<128x8xf32> -> vector<128x8xf32>
    %c2_51 = arith.constant 2 : index
    %c0_52 = arith.constant 0 : index
    %c0_53 = arith.constant 0 : index
    %61 = vector.load %arg5[%c2_51, %c0_52, %c0_53] : memref<4x1x8xf32, #tpu.memory_space<vmem>>, vector<1x1x8xf32>
    %62 = vector.shape_cast %61 : vector<1x1x8xf32> to vector<1x8xf32>
    %63 = vector.broadcast %62 : vector<1x8xf32> to vector<128x8xf32>
    %64 = arith.addf %60, %63 : vector<128x8xf32>
    %65 = vector.shape_cast %64 : vector<128x8xf32> to vector<8x16x8xf32>
    %c2_54 = arith.constant 2 : index
    %c0_55 = arith.constant 0 : index
    %c0_56 = arith.constant 0 : index
    %66 = vector.load %arg6[%c2_54, %c0_55, %c0_56] : memref<4x32x32xbf16, #tpu.memory_space<vmem>>, vector<1x32x32xbf16>
    %67 = vector.shape_cast %66 : vector<1x32x32xbf16> to vector<32x32xbf16>
    %cst_57 = arith.constant dense<0.000000e+00> : vector<128x32xf32>
    %68 = tpu.matmul %1, %67, %cst_57 {dimension_numbers = #tpu.dot_dimension_numbers<[1], [0], [0], [1], [0, 0, 1, 1], [], []>} : vector<128x32xbf16>, vector<32x32xbf16>, vector<128x32xf32> -> vector<128x32xf32>
    %c2_58 = arith.constant 2 : index
    %c0_59 = arith.constant 0 : index
    %c0_60 = arith.constant 0 : index
    %69 = vector.load %arg7[%c2_58, %c0_59, %c0_60] : memref<4x1x32xf32, #tpu.memory_space<vmem>>, vector<1x1x32xf32>
    %70 = vector.shape_cast %69 : vector<1x1x32xf32> to vector<1x32xf32>
    %71 = vector.broadcast %70 : vector<1x32xf32> to vector<128x32xf32>
    %72 = arith.addf %68, %71 : vector<128x32xf32>
    %73 = vector.shape_cast %72 : vector<128x32xf32> to vector<8x16x32xf32>
    %c3 = arith.constant 3 : index
    %c0_61 = arith.constant 0 : index
    %c0_62 = arith.constant 0 : index
    %74 = vector.load %arg2[%c3, %c0_61, %c0_62] : memref<4x32x8xbf16, #tpu.memory_space<vmem>>, vector<1x32x8xbf16>
    %75 = vector.shape_cast %74 : vector<1x32x8xbf16> to vector<32x8xbf16>
    %cst_63 = arith.constant dense<0.000000e+00> : vector<128x8xf32>
    %76 = tpu.matmul %1, %75, %cst_63 {dimension_numbers = #tpu.dot_dimension_numbers<[1], [0], [0], [1], [0, 0, 1, 1], [], []>} : vector<128x32xbf16>, vector<32x8xbf16>, vector<128x8xf32> -> vector<128x8xf32>
    %c3_64 = arith.constant 3 : index
    %c0_65 = arith.constant 0 : index
    %c0_66 = arith.constant 0 : index
    %77 = vector.load %arg3[%c3_64, %c0_65, %c0_66] : memref<4x1x8xf32, #tpu.memory_space<vmem>>, vector<1x1x8xf32>
    %78 = vector.shape_cast %77 : vector<1x1x8xf32> to vector<1x8xf32>
    %79 = vector.broadcast %78 : vector<1x8xf32> to vector<128x8xf32>
    %80 = arith.addf %76, %79 : vector<128x8xf32>
    %81 = vector.shape_cast %80 : vector<128x8xf32> to vector<8x16x8xf32>
    %c3_67 = arith.constant 3 : index
    %c0_68 = arith.constant 0 : index
    %c0_69 = arith.constant 0 : index
    %82 = vector.load %arg4[%c3_67, %c0_68, %c0_69] : memref<4x32x8xbf16, #tpu.memory_space<vmem>>, vector<1x32x8xbf16>
    %83 = vector.shape_cast %82 : vector<1x32x8xbf16> to vector<32x8xbf16>
    %cst_70 = arith.constant dense<0.000000e+00> : vector<128x8xf32>
    %84 = tpu.matmul %1, %83, %cst_70 {dimension_numbers = #tpu.dot_dimension_numbers<[1], [0], [0], [1], [0, 0, 1, 1], [], []>} : vector<128x32xbf16>, vector<32x8xbf16>, vector<128x8xf32> -> vector<128x8xf32>
    %c3_71 = arith.constant 3 : index
    %c0_72 = arith.constant 0 : index
    %c0_73 = arith.constant 0 : index
    %85 = vector.load %arg5[%c3_71, %c0_72, %c0_73] : memref<4x1x8xf32, #tpu.memory_space<vmem>>, vector<1x1x8xf32>
    %86 = vector.shape_cast %85 : vector<1x1x8xf32> to vector<1x8xf32>
    %87 = vector.broadcast %86 : vector<1x8xf32> to vector<128x8xf32>
    %88 = arith.addf %84, %87 : vector<128x8xf32>
    %89 = vector.shape_cast %88 : vector<128x8xf32> to vector<8x16x8xf32>
    %c3_74 = arith.constant 3 : index
    %c0_75 = arith.constant 0 : index
    %c0_76 = arith.constant 0 : index
    %90 = vector.load %arg6[%c3_74, %c0_75, %c0_76] : memref<4x32x32xbf16, #tpu.memory_space<vmem>>, vector<1x32x32xbf16>
    %91 = vector.shape_cast %90 : vector<1x32x32xbf16> to vector<32x32xbf16>
    %cst_77 = arith.constant dense<0.000000e+00> : vector<128x32xf32>
    %92 = tpu.matmul %1, %91, %cst_77 {dimension_numbers = #tpu.dot_dimension_numbers<[1], [0], [0], [1], [0, 0, 1, 1], [], []>} : vector<128x32xbf16>, vector<32x32xbf16>, vector<128x32xf32> -> vector<128x32xf32>
    %c3_78 = arith.constant 3 : index
    %c0_79 = arith.constant 0 : index
    %c0_80 = arith.constant 0 : index
    %93 = vector.load %arg7[%c3_78, %c0_79, %c0_80] : memref<4x1x32xf32, #tpu.memory_space<vmem>>, vector<1x1x32xf32>
    %94 = vector.shape_cast %93 : vector<1x1x32xf32> to vector<1x32xf32>
    %95 = vector.broadcast %94 : vector<1x32xf32> to vector<128x32xf32>
    %96 = arith.addf %92, %95 : vector<128x32xf32>
    %97 = vector.shape_cast %96 : vector<128x32xf32> to vector<8x16x32xf32>
    %98 = tpu.concatenate %9, %33, %57, %81 in 0 : vector<8x16x8xf32>, vector<8x16x8xf32>, vector<8x16x8xf32>, vector<8x16x8xf32> -> vector<32x16x8xf32>
    %99 = tpu.concatenate %17, %41, %65, %89 in 0 : vector<8x16x8xf32>, vector<8x16x8xf32>, vector<8x16x8xf32>, vector<8x16x8xf32> -> vector<32x16x8xf32>
    %100 = tpu.concatenate %25, %49, %73, %97 in 0 : vector<8x16x32xf32>, vector<8x16x32xf32>, vector<8x16x32xf32>, vector<8x16x32xf32> -> vector<32x16x32xf32>
    %101 = arith.truncf %98 : vector<32x16x8xf32> to vector<32x16x8xbf16>
    %102 = arith.truncf %99 : vector<32x16x8xf32> to vector<32x16x8xbf16>
    "tpu.trace_start"() <{level = 10 : i32, message = "sqd,skd->sqk"}> : () -> ()
    %cst_81 = arith.constant dense<0.000000e+00> : vector<32x16x16xf32>
    %103 = tpu.matmul %101, %102, %cst_81 {dimension_numbers = #tpu.dot_dimension_numbers<[2], [2], [1], [1], [0, 0, 0, 1, 1, 1], [0], [0]>} : vector<32x16x8xbf16>, vector<32x16x8xbf16>, vector<32x16x16xf32> -> vector<32x16x16xf32>
    "tpu.trace_stop"() : () -> ()
    %c0_82 = arith.constant 0 : index
    %c0_83 = arith.constant 0 : index
    %c0_84 = arith.constant 0 : index
    %c0_85 = arith.constant 0 : index
    %104 = vector.load %arg9[%c0_82, %c0_83, %c0_84, %c0_85] : memref<4x8x16x16xf32, #tpu.memory_space<vmem>>, vector<4x8x16x16xf32>
    %105 = vector.shape_cast %104 : vector<4x8x16x16xf32> to vector<32x16x16xf32>
    %106 = arith.addf %103, %105 : vector<32x16x16xf32>
    %cst_86 = arith.constant dense<0xFF800000> : vector<32x16xf32>
    %107 = vector.multi_reduction <maximumf>, %106, %cst_86 [2] : vector<32x16x16xf32> to vector<32x16xf32>
    %108 = vector.shape_cast %107 : vector<32x16xf32> to vector<32x16x1xf32>
    %109 = vector.broadcast %108 : vector<32x16x1xf32> to vector<32x16x16xf32>
    %110 = arith.subf %106, %109 : vector<32x16x16xf32>
    %111 = math.exp %110 : vector<32x16x16xf32>
    %cst_87 = arith.constant dense<0.000000e+00> : vector<32x16xf32>
    %112 = vector.multi_reduction <add>, %111, %cst_87 [2] : vector<32x16x16xf32> to vector<32x16xf32>
    %113 = vector.shape_cast %112 : vector<32x16xf32> to vector<32x16x1xf32>
    %114 = vector.broadcast %113 : vector<32x16x1xf32> to vector<32x16x16xf32>
    %115 = arith.divf %111, %114 : vector<32x16x16xf32>
    %116 = arith.truncf %115 : vector<32x16x16xf32> to vector<32x16x16xbf16>
    %117 = arith.truncf %100 : vector<32x16x32xf32> to vector<32x16x32xbf16>
    "tpu.trace_start"() <{level = 10 : i32, message = "sqk,skd->sqd"}> : () -> ()
    %cst_88 = arith.constant dense<0.000000e+00> : vector<32x16x32xf32>
    %118 = tpu.matmul %116, %117, %cst_88 {dimension_numbers = #tpu.dot_dimension_numbers<[2], [1], [1], [2], [0, 0, 0, 1, 1, 2], [0], [0]>} : vector<32x16x16xbf16>, vector<32x16x32xbf16>, vector<32x16x32xf32> -> vector<32x16x32xf32>
    "tpu.trace_stop"() : () -> ()
    %119 = vector.extract_strided_slice %118 {offsets = [0, 0, 0], sizes = [8, 16, 32], strides = [1, 1, 1]} : vector<32x16x32xf32> to vector<8x16x32xf32>
    %120 = vector.extract_strided_slice %118 {offsets = [8, 0, 0], sizes = [8, 16, 32], strides = [1, 1, 1]} : vector<32x16x32xf32> to vector<8x16x32xf32>
    %121 = arith.addf %119, %120 : vector<8x16x32xf32>
    %122 = vector.extract_strided_slice %118 {offsets = [16, 0, 0], sizes = [8, 16, 32], strides = [1, 1, 1]} : vector<32x16x32xf32> to vector<8x16x32xf32>
    %123 = arith.addf %121, %122 : vector<8x16x32xf32>
    %124 = vector.extract_strided_slice %118 {offsets = [24, 0, 0], sizes = [8, 16, 32], strides = [1, 1, 1]} : vector<32x16x32xf32> to vector<8x16x32xf32>
    %125 = arith.addf %123, %124 : vector<8x16x32xf32>
    %126 = vector.shape_cast %125 : vector<8x16x32xf32> to vector<128x32xf32>
    %c0_89 = arith.constant 0 : index
    %c0_90 = arith.constant 0 : index
    %127 = vector.load %arg8[%c0_89, %c0_90] : memref<1x32xf32, #tpu.memory_space<vmem>>, vector<1x32xf32>
    %128 = vector.broadcast %127 : vector<1x32xf32> to vector<128x32xf32>
    %129 = arith.addf %126, %128 : vector<128x32xf32>
    %c0_91 = arith.constant 0 : index
    %c0_92 = arith.constant 0 : index
    %130 = vector.load %arg10[%c0_91, %c0_92] : memref<128x32xf32, #tpu.memory_space<vmem>>, vector<128x32xf32>
    tpu.vector_store %arg10[%c0_91, %c0_92], %129 {strides = array<i32>} : memref<128x32xf32, #tpu.memory_space<vmem>>, vector<128x32xf32>,
    return
  }
  func.func @transform_0(%arg0: i32) -> (i32, i32) {
    %c0_i32 = arith.constant 0 : i32
    %c0_i32_0 = arith.constant 0 : i32
    return %arg0, %c0_i32 : i32, i32
  }
  func.func @transform_1(%arg0: i32) -> (i32, i32, i32) {
    %c0_i32 = arith.constant 0 : i32
    %c0_i32_0 = arith.constant 0 : i32
    %c0_i32_1 = arith.constant 0 : i32
    %c0_i32_2 = arith.constant 0 : i32
    return %c0_i32, %c0_i32_0, %c0_i32_1 : i32, i32, i32
  }
  func.func @transform_2(%arg0: i32) -> (i32, i32, i32) {
    %c0_i32 = arith.constant 0 : i32
    %c0_i32_0 = arith.constant 0 : i32
    %c0_i32_1 = arith.constant 0 : i32
    %c0_i32_2 = arith.constant 0 : i32
    return %c0_i32, %c0_i32_0, %c0_i32_1 : i32, i32, i32
  }
  func.func @transform_3(%arg0: i32) -> (i32, i32, i32) {
    %c0_i32 = arith.constant 0 : i32
    %c0_i32_0 = arith.constant 0 : i32
    %c0_i32_1 = arith.constant 0 : i32
    %c0_i32_2 = arith.constant 0 : i32
    return %c0_i32, %c0_i32_0, %c0_i32_1 : i32, i32, i32
  }
  func.func @transform_4(%arg0: i32) -> (i32, i32, i32) {
    %c0_i32 = arith.constant 0 : i32
    %c0_i32_0 = arith.constant 0 : i32
    %c0_i32_1 = arith.constant 0 : i32
    %c0_i32_2 = arith.constant 0 : i32
    return %c0_i32, %c0_i32_0, %c0_i32_1 : i32, i32, i32
  }
  func.func @transform_5(%arg0: i32) -> (i32, i32, i32) {
    %c0_i32 = arith.constant 0 : i32
    %c0_i32_0 = arith.constant 0 : i32
    %c0_i32_1 = arith.constant 0 : i32
    %c0_i32_2 = arith.constant 0 : i32
    return %c0_i32, %c0_i32_0, %c0_i32_1 : i32, i32, i32
  }
  func.func @transform_6(%arg0: i32) -> (i32, i32, i32) {
    %c0_i32 = arith.constant 0 : i32
    %c0_i32_0 = arith.constant 0 : i32
    %c0_i32_1 = arith.constant 0 : i32
    %c0_i32_2 = arith.constant 0 : i32
    return %c0_i32, %c0_i32_0, %c0_i32_1 : i32, i32, i32
  }
  func.func @transform_7(%arg0: i32) -> (i32, i32) {
    %c0_i32 = arith.constant 0 : i32
    %c0_i32_0 = arith.constant 0 : i32
    %c0_i32_1 = arith.constant 0 : i32
    return %c0_i32, %c0_i32_0 : i32, i32
  }
  func.func @transform_8(%arg0: i32) -> (i32, i32, i32, i32) {
    %c0_i32 = arith.constant 0 : i32
    %c0_i32_0 = arith.constant 0 : i32
    %c0_i32_1 = arith.constant 0 : i32
    %c0_i32_2 = arith.constant 0 : i32
    return %c0_i32, %arg0, %c0_i32_0, %c0_i32_1 : i32, i32, i32, i32
  }
  func.func @transform_9(%arg0: i32) -> (i32, i32) {
    %c0_i32 = arith.constant 0 : i32
    %c0_i32_0 = arith.constant 0 : i32
    return %arg0, %c0_i32 : i32, i32
  }
}

</mosaic_0001>

<bundles_post_ra>
// kernel: tpu_custom_call.1
= control target key start
LH: loop header
LB: loop body
LE: loop exit
PB: predicated region body
PF: predicated region fallthrough
CT: control target
= control target key end

     0   :  { %14 = vsyncpa [#allocation3], 0  ;;  %s6880_s30 = smov [#allocation2]   ;;  %s8938_s0 = inlined_call_operand.vmem [shape: f32[128,32], index: 0, kind: input, shape index: {}]   ;;  %s8939_s1 = inlined_call_operand.vmem [shape: bf16[4,32,8], index: 1, kind: input, shape index: {}]   ;;  %s8940_s2 = inlined_call_operand.vmem [shape: f32[4,1,8], index: 2, kind: input, shape index: {}]   ;;  %s8941_s3 = inlined_call_operand.vmem [shape: bf16[4,32,8], index: 3, kind: input, shape index: {}]   ;;  %s8942_s4 = inlined_call_operand.vmem [shape: f32[4,1,8], index: 4, kind: input, shape index: {}]   ;;  %s8943_s5 = inlined_call_operand.vmem [shape: bf16[4,32,32], index: 5, kind: input, shape index: {}]   ;;  %s8944_s6 = inlined_call_operand.vmem [shape: f32[4,1,32], index: 6, kind: input, shape index: {}]   ;;  %s8945_s7 = inlined_call_operand.vmem [shape: f32[1,32], index: 7, kind: input, shape index: {}]   ;;  %s8946_s8 = inlined_call_operand.hbm [shape: f32[4,8,16,16], index: 8, kind: input, shape index: {}]   ;;  %s8947_s9 = inlined_call_operand.vmem [shape: f32[128,32], index: 9, kind: output, shape index: {}]  }
   0x1   :  { %s36_s10 = sshll.u32 %s6880_s30, 4  ;;  %s37_s10 = int_to_ptr.vmem [resolvable:$true] %s36_s10 }
   0x2   :  { %s6866_s11 = scalar_lea.vmem %s37_s10, 8192  ;;  %p6871_p1 = scmp.lt.s32.totalorder %s37_s10, %s37_s10 }
   0x3   :  { %p6867_p0 = scmp.ne.s32.totalorder %s37_s10, %s6866_s11  ;;  %p6872_p2 = scmp.lt.s32.totalorder %s6866_s11, %s6866_s11 }
   0x5   :  { %p6873_p3 = por %p6872_p2, %p6871_p1 }
   0x7   :  { %p6874_p4 = pnand %p6873_p3, %p6867_p0 }
   0x9   :  { %6877 = shalt.err (!%p6874_p4)
}
   0xa   :  { %s6881_s12 = smov 128   ;;  %s6882_s13 = smov 8  }
   0xb   :  { %42 = dma.hbm_to_vmem [thread:$0]  %s8946_s8, 8192, %s37_s10, [#allocation3], %s6881_s12, %s6881_s12, %s6882_s13  }
   0xc   :  { %6878 = dma.done.wait [#allocation3], 8192  }
   0xd   :  { %6879 = vsyncadd [#allocation3], 4294959104  ;;  %v6575_v0 = vld [vmem:[%s8939_s1 + $0x8] sm:$0xff]   ;;  %v6577_v2 = vld [vmem:[%s8939_s1] sm:$0xff]   ;;  %vm94_vm0 = vcmask 261120   ;;  %v8948_v48 = vmov 0.0  }
   0xe   :  { %v6576_v1 = vld [vmem:[%s8941_s3 + $0x8] sm:$0xff]   ;;  %5946 = vmatprep.subr.bf16.mxu0 %v6575_v0  ;;  %v6578_v3 = vld [vmem:[%s8941_s3] sm:$0xff]   ;;  %v49_v6 = vld [vmem:[%s8938_s0 + $0x10] sm:$0xff]  ;;  %vm6884_vm1 = vmmov 0   ;;  %vm1682_vm2 = vcmask 64512   ;;  %vm3187_vm3 = vcmask 130048  }
   0xf   :  { %5966 = vmatprep.subr.bf16.mxu1 %v6576_v1  ;;  %5947 = vmatpush3.bf16.msra.mxu0 %v6575_v0  ;;  %v47_v4 = vld [vmem:[%s8938_s0] sm:$0xff]  ;;  %v48_v5 = vld [vmem:[%s8938_s0 + $0x8] sm:$0xff]  ;;  %v50_v8 = vld [vmem:[%s8938_s0 + $0x18] sm:$0xff] }
  0x10   :  { %5967 = vmatpush3.bf16.msra.mxu1 %v6576_v1  ;;  %5948 = vmatprep.subr.bf16.mxu0 %v6577_v2  ;;  %v6959_v7 = vpack.c.bf16 %v48_v5, %v47_v4  ;;  %v51_v9 = vld [vmem:[%s8938_s0 + $0x20] sm:$0xff]  ;;  %v52_v10 = vld [vmem:[%s8938_s0 + $0x28] sm:$0xff]  ;;  %v6970_v11 = vpack.c.bf16 %v50_v8, %v49_v6  ;;  %v53_v13 = vld [vmem:[%s8938_s0 + $0x30] sm:$0xff] }
  0x11   :  { %5968 = vmatprep.subr.bf16.mxu1 %v6578_v3  ;;  %v6974_v12 = vpack.c.bf16 %v52_v10, %v51_v9  ;;  %v54_v14 = vld [vmem:[%s8938_s0 + $0x38] sm:$0xff]  ;;  %v55_v15 = vld [vmem:[%s8938_s0 + $0x40] sm:$0xff]  ;;  %v56_v16 = vld [vmem:[%s8938_s0 + $0x48] sm:$0xff] }
  0x12   :  { %5950 = vmatprep.mubr.msk.bf16.mxu0 %vm94_vm0, %v6959_v7  ;;  %5970 = vmatprep.mubr.msk.bf16.mxu1 %vm94_vm0, %v6959_v7  ;;  %v6579_v17 = vld [vmem:[%s8943_s5 + $0x8] sm:$0xff]   ;;  %v6580_v18 = vld [vmem:[%s8939_s1 + $0x18] sm:$0xff]   ;;  %v6581_v19 = vld [vmem:[%s8943_s5] sm:$0xff]   ;;  %v7010_v21 = vpack.c.bf16 %v54_v14, %v53_v13  ;;  %v7012_v22 = vpack.c.bf16 %v56_v16, %v55_v15 }
  0x13   :  { %5949 = vmatpush3.bf16.msra.mxu0 %v6577_v2  ;;  %v6582_v20 = vld [vmem:[%s8939_s1 + $0x10] sm:$0xff]   ;;  %v6583_v23 = vld [vmem:[%s8941_s3 + $0x18] sm:$0xff]   ;;  %v59_v27 = vld [vmem:[%s8938_s0 + $0x60] sm:$0xff] }
  0x14   :  { %5969 = vmatpush3.bf16.msra.mxu1 %v6578_v3  ;;  %5986 = vmatprep.subr.bf16.mxu0 %v6579_v17  ;;  %v57_v24 = vld [vmem:[%s8938_s0 + $0x50] sm:$0xff]  ;;  %v6584_v25 = vld [vmem:[%s8943_s5 + $0x18] sm:$0xff]   ;;  %v60_v28 = vld [vmem:[%s8938_s0 + $0x68] sm:$0xff] }
  0x15   :  { %6006 = vmatprep.subr.bf16.mxu1 %v6580_v18  ;;  %v58_v26 = vld [vmem:[%s8938_s0 + $0x58] sm:$0xff]  ;;  %v7042_v30 = vpack.c.bf16 %v60_v28, %v59_v27  ;;  %v61_v31 = vld [vmem:[%s8938_s0 + $0x70] sm:$0xff]  ;;  %v6587_v36 = vld [vmem:[%s8939_s1 + $0x28] sm:$0xff]  }
  0x16   :  { %5951 = vmatmul.mubr.msk.bf16.vlgmr.msra.gmra.mxu0 %vm94_vm0, %v6970_v11  ;;  %v7040_v29 = vpack.c.bf16 %v58_v26, %v57_v24  ;;  %v62_v32 = vld [vmem:[%s8938_s0 + $0x78] sm:$0xff]  ;;  %v6585_v34 = vld [vmem:[%s8941_s3 + $0x10] sm:$0xff]   ;;  %v6588_v37 = vld [vmem:[%s8941_s3 + $0x28] sm:$0xff]  }
  0x17   :  { %5971 = vmatmul.mubr.msk.bf16.vlgmr.msra.gmra.mxu1 %vm94_vm0, %v6970_v11  ;;  %5954 = vmatprep.mubr.msk.bf16.mxu0 %vm94_vm0, %v6974_v12  ;;  %v7058_v33 = vpack.c.bf16 %v62_v32, %v61_v31  ;;  %v6586_v35 = vld [vmem:[%s8943_s5 + $0x10] sm:$0xff]   ;;  %v6589_v38 = vld [vmem:[%s8939_s1 + $0x20] sm:$0xff]   ;;  %v6591_v40 = vld [vmem:[%s8943_s5 + $0x28] sm:$0xff]  }
  0x18   :  { %5974 = vmatprep.mubr.msk.bf16.mxu1 %vm94_vm0, %v6974_v12  ;;  %5987 = vmatpush3.bf16.msra.mxu0 %v6579_v17  ;;  %v6590_v39 = vld [vmem:[%s8941_s3 + $0x20] sm:$0xff]   ;;  %v6593_v41 = vld [vmem:[%s8939_s1 + $0x38] sm:$0xff]   ;;  %v6594_v43 = vld [vmem:[%s8939_s1 + $0x30] sm:$0xff]  }
  0x19   :  { %6007 = vmatpush3.bf16.msra.mxu1 %v6580_v18  ;;  %5988 = vmatprep.subr.bf16.mxu0 %v6581_v19  ;;  %v6592_v42 = vld [vmem:[%s8943_s5 + $0x20] sm:$0xff]   ;;  %v6595_v44 = vld [vmem:[%s8941_s3 + $0x38] sm:$0xff]   ;;  %v6596_v46 = vld [vmem:[%s8941_s3 + $0x30] sm:$0xff]  }
  0x1a   :  { %6008 = vmatprep.subr.bf16.mxu1 %v6582_v20  ;;  %v6597_v45 = vld [vmem:[%s8943_s5 + $0x38] sm:$0xff]   ;;  %v6598_v47 = vld [vmem:[%s8943_s5 + $0x30] sm:$0xff]   ;;  %v7275_v52 = vld [vmem:[%s8942_s4] ss:$0 sm:$0xff] }
  0x1b   :  { %v7284_v0 = vld [vmem:[%s8940_s2] ss:$0 sm:$0xff] }
  0x1c   :  { %5989 = vmatpush3.bf16.msra.mxu0 %v6581_v19 }
  0x1d   :  { %6009 = vmatpush3.bf16.msra.mxu1 %v6582_v20  ;;  %6026 = vmatprep.subr.bf16.mxu0 %v6583_v23 }
  0x1e   :  { %5955 = vmatmul.mubr.msk.bf16.gmra.mxu0 %vm94_vm0, %v7010_v21  ;;  %6046 = vmatprep.subr.bf16.mxu1 %v6584_v25 }
  0x1f   :  { %5975 = vmatmul.mubr.msk.bf16.gmra.mxu1 %vm94_vm0, %v7010_v21  ;;  %5958 = vmatprep.mubr.msk.bf16.mxu0 %vm94_vm0, %v7012_v22 }
  0x20   :  { %5978 = vmatprep.mubr.msk.bf16.mxu1 %vm94_vm0, %v7012_v22 }
  0x26   :  { %5959 = vmatmul.mubr.msk.bf16.gmra.mxu0 %vm94_vm0, %v7040_v29 }
  0x27   :  { %5979 = vmatmul.mubr.msk.bf16.gmra.mxu1 %vm94_vm0, %v7040_v29  ;;  %5962 = vmatprep.mubr.msk.bf16.mxu0 %vm94_vm0, %v7042_v30 }
  0x28   :  { %5982 = vmatprep.mubr.msk.bf16.mxu1 %vm94_vm0, %v7042_v30 }
  0x2e   :  { %5963 = vmatmul.mubr.msk.bf16.gmra.mxu0 %vm94_vm0, %v7058_v33 }
  0x2f   :  { %5983 = vmatmul.mubr.msk.bf16.gmra.mxu1 %vm94_vm0, %v7058_v33  ;;  %5990 = vmatprep.mubr.msk.bf16.mxu0 %vm94_vm0, %v6959_v7 }
  0x30   :  { %6010 = vmatprep.mubr.msk.bf16.mxu1 %vm94_vm0, %v6959_v7 }
  0x36   :  { %5991 = vmatmul.mubr.msk.bf16.vlgmr.msra.gmra.mxu0 %vm94_vm0, %v6970_v11 }
  0x37   :  { %6011 = vmatmul.mubr.msk.bf16.vlgmr.msra.gmra.mxu1 %vm94_vm0, %v6970_v11  ;;  %5994 = vmatprep.mubr.msk.bf16.mxu0 %vm94_vm0, %v6974_v12 }
  0x38   :  { %6014 = vmatprep.mubr.msk.bf16.mxu1 %vm94_vm0, %v6974_v12  ;;  %6027 = vmatpush3.bf16.msra.mxu0 %v6583_v23 }
  0x39   :  { %6047 = vmatpush3.bf16.msra.mxu1 %v6584_v25  ;;  %6028 = vmatprep.subr.bf16.mxu0 %v6585_v34 }
  0x3a   :  { %6048 = vmatprep.subr.bf16.mxu1 %v6586_v35 }
  0x3c   :  { %6029 = vmatpush3.bf16.msra.mxu0 %v6585_v34 }
  0x3d   :  { %6049 = vmatpush3.bf16.msra.mxu1 %v6586_v35  ;;  %6066 = vmatprep.subr.bf16.mxu0 %v6587_v36 }
  0x3e   :  { %5995 = vmatmul.mubr.msk.bf16.gmra.mxu0 %vm94_vm0, %v7010_v21  ;;  %6086 = vmatprep.subr.bf16.mxu1 %v6588_v37 }
  0x3f   :  { %6015 = vmatmul.mubr.msk.bf16.gmra.mxu1 %vm94_vm0, %v7010_v21  ;;  %5998 = vmatprep.mubr.msk.bf16.mxu0 %vm94_vm0, %v7012_v22 }
  0x40   :  { %6018 = vmatprep.mubr.msk.bf16.mxu1 %vm94_vm0, %v7012_v22 }
  0x46   :  { %5999 = vmatmul.mubr.msk.bf16.gmra.mxu0 %vm94_vm0, %v7040_v29 }
  0x47   :  { %6019 = vmatmul.mubr.msk.bf16.gmra.mxu1 %vm94_vm0, %v7040_v29  ;;  %6002 = vmatprep.mubr.msk.bf16.mxu0 %vm94_vm0, %v7042_v30 }
  0x48   :  { %6022 = vmatprep.mubr.msk.bf16.mxu1 %vm94_vm0, %v7042_v30 }
  0x4e   :  { %6003 = vmatmul.mubr.msk.bf16.gmra.mxu0 %vm94_vm0, %v7058_v33 }
  0x4f   :  { %6023 = vmatmul.mubr.msk.bf16.gmra.mxu1 %vm94_vm0, %v7058_v33  ;;  %6030 = vmatprep.mubr.msk.bf16.mxu0 %vm94_vm0, %v6959_v7 }
  0x50   :  { %6050 = vmatprep.mubr.msk.bf16.mxu1 %vm94_vm0, %v6959_v7 }
  0x56   :  { %6031 = vmatmul.mubr.msk.bf16.vlgmr.msra.gmra.mxu0 %vm94_vm0, %v6970_v11 }
  0x57   :  { %6051 = vmatmul.mubr.msk.bf16.vlgmr.msra.gmra.mxu1 %vm94_vm0, %v6970_v11  ;;  %6034 = vmatprep.mubr.msk.bf16.mxu0 %vm94_vm0, %v6974_v12 }
  0x58   :  { %6054 = vmatprep.mubr.msk.bf16.mxu1 %vm94_vm0, %v6974_v12  ;;  %6067 = vmatpush3.bf16.msra.mxu0 %v6587_v36 }
  0x59   :  { %6087 = vmatpush3.bf16.msra.mxu1 %v6588_v37  ;;  %6068 = vmatprep.subr.bf16.mxu0 %v6589_v38 }
  0x5a   :  { %6088 = vmatprep.subr.bf16.mxu1 %v6590_v39 }
  0x5c   :  { %6069 = vmatpush3.bf16.msra.mxu0 %v6589_v38 }
  0x5d   :  { %6089 = vmatpush3.bf16.msra.mxu1 %v6590_v39  ;;  %6106 = vmatprep.subr.bf16.mxu0 %v6591_v40 }
  0x5e   :  { %6035 = vmatmul.mubr.msk.bf16.gmra.mxu0 %vm94_vm0, %v7010_v21  ;;  %6126 = vmatprep.subr.bf16.mxu1 %v6593_v41 }
  0x5f   :  { %6055 = vmatmul.mubr.msk.bf16.gmra.mxu1 %vm94_vm0, %v7010_v21  ;;  %6038 = vmatprep.mubr.msk.bf16.mxu0 %vm94_vm0, %v7012_v22 }
  0x60   :  { %6058 = vmatprep.mubr.msk.bf16.mxu1 %vm94_vm0, %v7012_v22 }
  0x66   :  { %6039 = vmatmul.mubr.msk.bf16.gmra.mxu0 %vm94_vm0, %v7040_v29 }
  0x67   :  { %6059 = vmatmul.mubr.msk.bf16.gmra.mxu1 %vm94_vm0, %v7040_v29  ;;  %6042 = vmatprep.mubr.msk.bf16.mxu0 %vm94_vm0, %v7042_v30 }
  0x68   :  { %6062 = vmatprep.mubr.msk.bf16.mxu1 %vm94_vm0, %v7042_v30 }
  0x6e   :  { %6043 = vmatmul.mubr.msk.bf16.gmra.mxu0 %vm94_vm0, %v7058_v33 }
  0x6f   :  { %6063 = vmatmul.mubr.msk.bf16.gmra.mxu1 %vm94_vm0, %v7058_v33  ;;  %6070 = vmatprep.mubr.msk.bf16.mxu0 %vm94_vm0, %v6959_v7 }
  0x70   :  { %6090 = vmatprep.mubr.msk.bf16.mxu1 %vm94_vm0, %v6959_v7 }
  0x76   :  { %6071 = vmatmul.mubr.msk.bf16.vlgmr.msra.gmra.mxu0 %vm94_vm0, %v6970_v11 }
  0x77   :  { %6091 = vmatmul.mubr.msk.bf16.vlgmr.msra.gmra.mxu1 %vm94_vm0, %v6970_v11  ;;  %6074 = vmatprep.mubr.msk.bf16.mxu0 %vm94_vm0, %v6974_v12 }
  0x78   :  { %6094 = vmatprep.mubr.msk.bf16.mxu1 %vm94_vm0, %v6974_v12  ;;  %6107 = vmatpush3.bf16.msra.mxu0 %v6591_v40 }
  0x79   :  { %6108 = vmatprep.subr.bf16.mxu0 %v6592_v42  ;;  %6127 = vmatpush3.bf16.msra.mxu1 %v6593_v41 }
  0x7a   :  { %6128 = vmatprep.subr.bf16.mxu1 %v6594_v43 }
  0x7c   :  { %6109 = vmatpush3.bf16.msra.mxu0 %v6592_v42 }
  0x7d   :  { %6129 = vmatpush3.bf16.msra.mxu1 %v6594_v43  ;;  %6146 = vmatprep.subr.bf16.mxu0 %v6595_v44 }
  0x7e   :  { %6075 = vmatmul.mubr.msk.bf16.gmra.mxu0 %vm94_vm0, %v7010_v21  ;;  %6166 = vmatprep.subr.bf16.mxu1 %v6597_v45 }
  0x7f   :  { %6095 = vmatmul.mubr.msk.bf16.gmra.mxu1 %vm94_vm0, %v7010_v21  ;;  %6078 = vmatprep.mubr.msk.bf16.mxu0 %vm94_vm0, %v7012_v22 }
  0x80   :  { %6098 = vmatprep.mubr.msk.bf16.mxu1 %vm94_vm0, %v7012_v22 }
  0x86   :  { %6079 = vmatmul.mubr.msk.bf16.gmra.mxu0 %vm94_vm0, %v7040_v29 }
  0x87   :  { %6099 = vmatmul.mubr.msk.bf16.gmra.mxu1 %vm94_vm0, %v7040_v29  ;;  %6082 = vmatprep.mubr.msk.bf16.mxu0 %vm94_vm0, %v7042_v30 }
  0x88   :  { %6102 = vmatprep.mubr.msk.bf16.mxu1 %vm94_vm0, %v7042_v30 }
  0x8e   :  { %6083 = vmatmul.mubr.msk.bf16.gmra.mxu0 %vm94_vm0, %v7058_v33 }
  0x8f   :  { %6103 = vmatmul.mubr.msk.bf16.gmra.mxu1 %vm94_vm0, %v7058_v33  ;;  %6110 = vmatprep.mubr.msk.bf16.mxu0 %vm94_vm0, %v6959_v7 }
  0x90   :  { %6130 = vmatprep.mubr.msk.bf16.mxu1 %vm94_vm0, %v6959_v7 }
  0x96   :  { %6111 = vmatmul.mubr.msk.bf16.vlgmr.msra.gmra.mxu0 %vm94_vm0, %v6970_v11 }
  0x97   :  { %6114 = vmatprep.mubr.msk.bf16.mxu0 %vm94_vm0, %v6974_v12  ;;  %6131 = vmatmul.mubr.msk.bf16.vlgmr.msra.gmra.mxu1 %vm94_vm0, %v6970_v11 }
  0x98   :  { %6134 = vmatprep.mubr.msk.bf16.mxu1 %vm94_vm0, %v6974_v12  ;;  %6147 = vmatpush3.bf16.msra.mxu0 %v6595_v44 }
  0x99   :  { %6148 = vmatprep.subr.bf16.mxu0 %v6596_v46  ;;  %6167 = vmatpush3.bf16.msra.mxu1 %v6597_v45 }
  0x9a   :  { %6168 = vmatprep.subr.bf16.mxu1 %v6598_v47 }
  0x9c   :  { %6149 = vmatpush3.bf16.msra.mxu0 %v6596_v46 }
  0x9d   :  { %6169 = vmatpush3.bf16.msra.mxu1 %v6598_v47  ;;  %6186 = vmatprep.subr.bf16.mxu0 %v8948_v48 }
  0x9e   :  { %6115 = vmatmul.mubr.msk.bf16.gmra.mxu0 %vm94_vm0, %v7010_v21  ;;  %6192 = vmatprep.subr.bf16.mxu1 %v8948_v48 }
  0x9f   :  { %6118 = vmatprep.mubr.msk.bf16.mxu0 %vm94_vm0, %v7012_v22  ;;  %6135 = vmatmul.mubr.msk.bf16.gmra.mxu1 %vm94_vm0, %v7010_v21 }
  0xa0   :  { %6138 = vmatprep.mubr.msk.bf16.mxu1 %vm94_vm0, %v7012_v22 }
  0xa6   :  { %6119 = vmatmul.mubr.msk.bf16.gmra.mxu0 %vm94_vm0, %v7040_v29 }
  0xa7   :  { %6122 = vmatprep.mubr.msk.bf16.mxu0 %vm94_vm0, %v7042_v30  ;;  %6139 = vmatmul.mubr.msk.bf16.gmra.mxu1 %vm94_vm0, %v7040_v29 }
  0xa8   :  { %6142 = vmatprep.mubr.msk.bf16.mxu1 %vm94_vm0, %v7042_v30 }
  0xae   :  { %6123 = vmatmul.mubr.msk.bf16.gmra.mxu0 %vm94_vm0, %v7058_v33 }
  0xaf   :  { %6150 = vmatprep.mubr.msk.bf16.mxu0 %vm94_vm0, %v6959_v7  ;;  %6143 = vmatmul.mubr.msk.bf16.gmra.mxu1 %vm94_vm0, %v7058_v33 }
  0xb0   :  { %6170 = vmatprep.mubr.msk.bf16.mxu1 %vm94_vm0, %v6959_v7 }
  0xb6   :  { %6151 = vmatmul.mubr.msk.bf16.vlgmr.msra.gmra.mxu0 %vm94_vm0, %v6970_v11 }
  0xb7   :  { %6154 = vmatprep.mubr.msk.bf16.mxu0 %vm94_vm0, %v6974_v12  ;;  %6171 = vmatmul.mubr.msk.bf16.vlgmr.msra.gmra.mxu1 %vm94_vm0, %v6970_v11 }
  0xb8   :  { %6174 = vmatprep.mubr.msk.bf16.mxu1 %vm94_vm0, %v6974_v12 }
  0xbe   :  { %6155 = vmatmul.mubr.msk.bf16.gmra.mxu0 %vm94_vm0, %v7010_v21 }
  0xbf   :  { %6158 = vmatprep.mubr.msk.bf16.mxu0 %vm94_vm0, %v7012_v22  ;;  %6175 = vmatmul.mubr.msk.bf16.gmra.mxu1 %vm94_vm0, %v7010_v21 }
  0xc0   :  { %6178 = vmatprep.mubr.msk.bf16.mxu1 %vm94_vm0, %v7012_v22 }
  0xc6   :  { %6159 = vmatmul.mubr.msk.bf16.gmra.mxu0 %vm94_vm0, %v7040_v29 }
  0xc7   :  { %6162 = vmatprep.mubr.msk.bf16.mxu0 %vm94_vm0, %v7042_v30  ;;  %6179 = vmatmul.mubr.msk.bf16.gmra.mxu1 %vm94_vm0, %v7040_v29 }
  0xc8   :  { %6182 = vmatprep.mubr.msk.bf16.mxu1 %vm94_vm0, %v7042_v30 }
  0xce   :  { %6163 = vmatmul.mubr.msk.bf16.gmra.mxu0 %vm94_vm0, %v7058_v33 }
  0xcf   :  { %6183 = vmatmul.mubr.msk.bf16.gmra.mxu1 %vm94_vm0, %v7058_v33  ;;  %6188 = vmatprep.mubr.msk.bf16.mxu0 %vm6884_vm1, %v8948_v48 }
  0xd0   :  { %6194 = vmatprep.mubr.msk.bf16.mxu1 %vm6884_vm1, %v8948_v48 }
  0xd6   :  { %v5952_v49 = vpop.f32.mrf.mxu0 }
  0xd7   :  { %v5972_v50 = vpop.f32.mrf.mxu1  ;;  %v162_v6 = vadd.f32 %v5952_v49, %v7284_v0 }
  0xd8   :  { %v153_v51 = vpop.f32.mrf.mxu0  ;;  %v282_v56 = vadd.f32 %v5972_v50, %v7275_v52 }
  0xd9   :  { %v273_v53 = vpop.f32.mrf.mxu1  ;;  %v154_v12 = vadd.f32 %v7284_v0, %v153_v51 }
  0xda   :  { %v5953_v54 = vpop.f32.mrf.mxu0  ;;  %v274_v60 = vadd.f32 %v7275_v52, %v273_v53 }
  0xdb   :  { %v5973_v55 = vpop.f32.mrf.mxu1  ;;  %v165_v7 = vadd.f32 %v5953_v54, %v7284_v0 }
  0xdc   :  { %v285_v57 = vadd.f32 %v5973_v55, %v7275_v52  ;;  %v156_v58 = vpop.f32.mrf.mxu0 }
  0xdd   :  { %v276_v59 = vpop.f32.mrf.mxu1  ;;  %v157_v13 = vadd.f32 %v7284_v0, %v156_v58  ;;  %v1555_v18 = vpack.c.bf16 %v165_v7, %v162_v6 }
  0xde   :  { %v1587_v61 = vpack.c.bf16 %v285_v57, %v282_v56  ;;  %v277_v62 = vadd.f32 %v7275_v52, %v276_v59  ;;  %v5956_v63 = vpop.f32.mrf.mxu0 }
  0xdf   :  { %v5976_v1 = vpop.f32.mrf.mxu1  ;;  %v1554_v23 = vpack.c.bf16 %v157_v13, %v154_v12  ;;  %v178_v28 = vadd.f32 %v5956_v63, %v7284_v0 }
  0xe0   :  { %v1586_v2 = vpack.c.bf16 %v277_v62, %v274_v60  ;;  %v169_v3 = vpop.f32.mrf.mxu0  ;;  %v1734_v4 = vsel %vm1682_vm2, %v1587_v61, 0  ;;  %v298_v8 = vadd.f32 %v5976_v1, %v7275_v52 }
  0xe1   :  { %v289_v5 = vpop.f32.mrf.mxu1  ;;  %6193 = vmatpush3.bf16.xpose.msra.mxu1 %v1734_v4  ;;  %v170_v34 = vadd.f32 %v7284_v0, %v169_v3 }
  0xe2   :  { %v5957_v9 = vpop.f32.mrf.mxu0  ;;  %v1687_v10 = vsel %vm1682_vm2, %v1586_v2, 0  ;;  %6204 = vmatprep.subr.bf16.mxu1 %v8948_v48  ;;  %v290_v14 = vadd.f32 %v7275_v52, %v289_v5  ;;  %v7337_v5 = vld [vmem:[%s8944_s6] ss:$0 sm:$0xff] }
  0xe3   :  { %v5977_v11 = vpop.f32.mrf.mxu1  ;;  %6187 = vmatpush3.bf16.xpose.msra.mxu0 %v1687_v10  ;;  %v181_v29 = vadd.f32 %v5957_v9, %v7284_v0 }
  0xe4   :  { %v301_v15 = vadd.f32 %v5977_v11, %v7275_v52  ;;  %v172_v16 = vpop.f32.mrf.mxu0  ;;  %6198 = vmatprep.subr.bf16.mxu0 %v8948_v48 }
  0xe5   :  { %v292_v17 = vpop.f32.mrf.mxu1  ;;  %v173_v35 = vadd.f32 %v7284_v0, %v172_v16  ;;  %v1557_v40 = vpack.c.bf16 %v181_v29, %v178_v28 }
  0xe6   :  { %v1589_v19 = vpack.c.bf16 %v301_v15, %v298_v8  ;;  %v293_v20 = vadd.f32 %v7275_v52, %v292_v17  ;;  %v5960_v21 = vpop.f32.mrf.mxu0 }
  0xe7   :  { %v5980_v22 = vpop.f32.mrf.mxu1  ;;  %v1556_v45 = vpack.c.bf16 %v173_v35, %v170_v34  ;;  %v194_v51 = vadd.f32 %v5960_v21, %v7284_v0 }
  0xe8   :  { %v1588_v24 = vpack.c.bf16 %v293_v20, %v290_v14  ;;  %6195 = vmatmul.mubr.msk.bf16.vlgmr.msra.gmra.mxu1 %vm1682_vm2, %v1555_v18  ;;  %v185_v25 = vpop.f32.mrf.mxu0  ;;  %v1828_v26 = vsel %vm1682_vm2, %v1589_v19, 0  ;;  %v314_v30 = vadd.f32 %v5980_v22, %v7275_v52 }
  0xe9   :  { %v305_v27 = vpop.f32.mrf.mxu1  ;;  %6205 = vmatpush3.bf16.xpose.msra.mxu1 %v1828_v26  ;;  %6206 = vmatprep.mubr.msk.bf16.mxu1 %vm6884_vm1, %v8948_v48  ;;  %v186_v58 = vadd.f32 %v7284_v0, %v185_v25 }
  0xea   :  { %6189 = vmatmul.mubr.msk.bf16.vlgmr.msra.gmra.mxu0 %vm1682_vm2, %v1554_v23  ;;  %v5961_v31 = vpop.f32.mrf.mxu0  ;;  %v1781_v32 = vsel %vm1682_vm2, %v1588_v24, 0  ;;  %6216 = vmatprep.subr.bf16.mxu1 %v8948_v48  ;;  %v306_v36 = vadd.f32 %v7275_v52, %v305_v27 }
  0xeb   :  { %v5981_v33 = vpop.f32.mrf.mxu1  ;;  %6199 = vmatpush3.bf16.xpose.msra.mxu0 %v1781_v32  ;;  %6200 = vmatprep.mubr.msk.bf16.mxu0 %vm6884_vm1, %v8948_v48  ;;  %v197_v53 = vadd.f32 %v5961_v31, %v7284_v0 }
  0xec   :  { %v317_v37 = vadd.f32 %v5981_v33, %v7275_v52  ;;  %v188_v38 = vpop.f32.mrf.mxu0  ;;  %6210 = vmatprep.subr.bf16.mxu0 %v8948_v48 }
  0xed   :  { %v308_v39 = vpop.f32.mrf.mxu1  ;;  %v189_v59 = vadd.f32 %v7284_v0, %v188_v38  ;;  %v1559_v1 = vpack.c.bf16 %v197_v53, %v194_v51 }
  0xee   :  { %v1591_v41 = vpack.c.bf16 %v317_v37, %v314_v30  ;;  %v309_v42 = vadd.f32 %v7275_v52, %v308_v39  ;;  %v5964_v43 = vpop.f32.mrf.mxu0 }
  0xef   :  { %v5984_v44 = vpop.f32.mrf.mxu1  ;;  %v1558_v7 = vpack.c.bf16 %v189_v59, %v186_v58  ;;  %v210_v12 = vadd.f32 %v5964_v43, %v7284_v0 }
  0xf0   :  { %v1590_v46 = vpack.c.bf16 %v309_v42, %v306_v36  ;;  %6207 = vmatmul.mubr.msk.bf16.vlgmr.msra.gmra.mxu1 %vm1682_vm2, %v1557_v40  ;;  %v201_v47 = vpop.f32.mrf.mxu0  ;;  %v1922_v49 = vsel %vm1682_vm2, %v1591_v41, 0  ;;  %v330_v54 = vadd.f32 %v5984_v44, %v7275_v52 }
  0xf1   :  { %v321_v50 = vpop.f32.mrf.mxu1  ;;  %6217 = vmatpush3.bf16.xpose.msra.mxu1 %v1922_v49  ;;  %6218 = vmatprep.mubr.msk.bf16.mxu1 %vm6884_vm1, %v8948_v48  ;;  %v202_v18 = vadd.f32 %v7284_v0, %v201_v47 }
  0xf2   :  { %v5965_v55 = vpop.f32.mrf.mxu0  ;;  %6201 = vmatmul.mubr.msk.bf16.vlgmr.msra.gmra.mxu0 %vm1682_vm2, %v1556_v45  ;;  %v1875_v56 = vsel %vm1682_vm2, %v1590_v46, 0  ;;  %6228 = vmatprep.subr.bf16.mxu1 %v8948_v48  ;;  %v322_v60 = vadd.f32 %v7275_v52, %v321_v50 }
  0xf3   :  { %v5985_v57 = vpop.f32.mrf.mxu1  ;;  %6211 = vmatpush3.bf16.xpose.msra.mxu0 %v1875_v56  ;;  %6212 = vmatprep.mubr.msk.bf16.mxu0 %vm6884_vm1, %v8948_v48  ;;  %v213_v13 = vadd.f32 %v5965_v55, %v7284_v0 }
  0xf4   :  { %v333_v61 = vadd.f32 %v5985_v57, %v7275_v52  ;;  %v204_v62 = vpop.f32.mrf.mxu0  ;;  %6222 = vmatprep.subr.bf16.mxu0 %v8948_v48 }
  0xf5   :  { %v324_v63 = vpop.f32.mrf.mxu1  ;;  %v205_v19 = vadd.f32 %v7284_v0, %v204_v62  ;;  %v1561_v23 = vpack.c.bf16 %v213_v13, %v210_v12  ;;  %v7459_v12 = vld [vmem:[%s8944_s6 + $0x1] ss:$0 sm:$0xff] }
  0xf6   :  { %v1593_v2 = vpack.c.bf16 %v333_v61, %v330_v54  ;;  %v325_v3 = vadd.f32 %v7275_v52, %v324_v63  ;;  %v5992_v4 = vpop.f32.mrf.mxu0 }
  0xf7   :  { %v7339_v6 = vpop.f32.mrf.mxu1  ;;  %v7346_v11 = vadd.f32 %v5992_v4, %v7337_v5  ;;  %v1560_v27 = vpack.c.bf16 %v205_v19, %v202_v18 }
  0xf8   :  { %v1592_v8 = vpack.c.bf16 %v325_v3, %v322_v60  ;;  %6219 = vmatmul.mubr.msk.bf16.vlgmr.msra.gmra.mxu1 %vm1682_vm2, %v1559_v1  ;;  %v7342_v9 = vpop.f32.mrf.mxu0  ;;  %v2016_v10 = vsel %vm1682_vm2, %v1593_v2, 0 }
  0xf9   :  { %v7348_v52 = vpop.f32.mrf.mxu1  ;;  %6229 = vmatpush3.bf16.xpose.msra.mxu1 %v2016_v10  ;;  %6230 = vmatprep.mubr.msk.bf16.mxu1 %vm6884_vm1, %v8948_v48 }
  0xfa   :  { %v5993_v14 = vpop.f32.mrf.mxu0  ;;  %6213 = vmatmul.mubr.msk.bf16.vlgmr.msra.gmra.mxu0 %vm1682_vm2, %v1558_v7  ;;  %v1969_v15 = vsel %vm1682_vm2, %v1592_v8, 0  ;;  %6240 = vmatprep.subr.bf16.mxu1 %v8948_v48  ;;  %v7452_v7 = vld [vmem:[%s8942_s4 + $0x1] ss:$0 sm:$0xff] }
  0xfb   :  { %v7358_v16 = vadd.f32 %v5993_v14, %v7337_v5  ;;  %v7360_v17 = vpop.f32.mrf.mxu1  ;;  %6223 = vmatpush3.bf16.xpose.msra.mxu0 %v1969_v15  ;;  %6224 = vmatprep.mubr.msk.bf16.mxu0 %vm6884_vm1, %v8948_v48 }
  0xfc   :  { %v7366_v20 = vpop.f32.mrf.mxu0  ;;  %6234 = vmatprep.subr.bf16.mxu0 %v8948_v48 }
  0xfd   :  { %v7371_v22 = vpop.f32.mrf.mxu1 }
  0xfe   :  { %v5996_v24 = vpop.f32.mrf.mxu0 }
  0xff   :  { %v7374_v25 = vadd.f32 %v5996_v24, %v7337_v5  ;;  %v7376_v26 = vpop.f32.mrf.mxu1 }
 0x100   :  { %6231 = vmatmul.mubr.msk.bf16.vlgmr.msra.gmra.mxu1 %vm1682_vm2, %v1561_v23  ;;  %v409_v0 = vpop.f32.mrf.mxu0 }
 0x101   :  { %9007 = vst [vmem:[#allocation5_spill] sm:$0xff] %v7374_v25  ;;  %v7380_v28 = vadd.f32 %v7337_v5, %v409_v0  ;;  %v7382_v29 = vpop.f32.mrf.mxu1  ;;  %6242 = vmatprep.mubr.msk.bf16.mxu1 %vm6884_vm1, %v8948_v48  ;;  %v1667_v25 = vld [vmem:[#allocation2 + $0x188] sm:$0xff] }
 0x102   :  { %v5997_v30 = vpop.f32.mrf.mxu0  ;;  %6225 = vmatmul.mubr.msk.bf16.vlgmr.msra.gmra.mxu0 %vm1682_vm2, %v1560_v27 }
 0x103   :  { %9008 = vst [vmem:[#allocation6_spill] sm:$0xff] %v7380_v28  ;;  %v7388_v31 = vadd.f32 %v5997_v30, %v7337_v5  ;;  %v7390_v32 = vpop.f32.mrf.mxu1  ;;  %6236 = vmatprep.mubr.msk.bf16.mxu0 %vm6884_vm1, %v8948_v48 }
 0x104   :  { %v412_v33 = vpop.f32.mrf.mxu0 }
 0x105   :  { %9009 = vst [vmem:[#allocation7_spill] sm:$0xff] %v7388_v31  ;;  %v7397_v35 = vadd.f32 %v7337_v5, %v412_v33  ;;  %v7399_v36 = vpop.f32.mrf.mxu1 }
 0x106   :  { %v6000_v37 = vpop.f32.mrf.mxu0 }
 0x107   :  { %9010 = vst [vmem:[#allocation8_spill] sm:$0xff] %v7397_v35  ;;  %v7404_v39 = vadd.f32 %v6000_v37, %v7337_v5  ;;  %v7406_v40 = vpop.f32.mrf.mxu1 }
 0x108   :  { %v425_v41 = vpop.f32.mrf.mxu0 }
 0x109   :  { %9011 = vst [vmem:[#allocation9_spill] sm:$0xff] %v7404_v39  ;;  %v7409_v42 = vadd.f32 %v7337_v5, %v425_v41  ;;  %v7411_v43 = vpop.f32.mrf.mxu1 }
 0x10a   :  { %v6001_v44 = vpop.f32.mrf.mxu0 }
 0x10b   :  { %9012 = vst [vmem:[#allocation10_spill] sm:$0xff] %v7409_v42  ;;  %v7414_v45 = vadd.f32 %v6001_v44, %v7337_v5  ;;  %v7416_v46 = vpop.f32.mrf.mxu1  ;;  %v7478_v44 = vld [vmem:[%s8940_s2 + $0x1] ss:$0 sm:$0xff] }
 0x10c   :  { %v428_v47 = vpop.f32.mrf.mxu0 }
 0x10d   :  { %9013 = vst [vmem:[#allocation11_spill] sm:$0xff] %v7414_v45  ;;  %v7421_v50 = vadd.f32 %v7337_v5, %v428_v47  ;;  %v7423_v51 = vpop.f32.mrf.mxu1 }
 0x10e   :  { %v6004_v53 = vpop.f32.mrf.mxu0 }
 0x10f   :  { %9014 = vst [vmem:[#allocation12_spill] sm:$0xff] %v7421_v50  ;;  %v7428_v55 = vadd.f32 %v6004_v53, %v7337_v5  ;;  %v7430_v56 = vpop.f32.mrf.mxu1 }
 0x110   :  { %v441_v57 = vpop.f32.mrf.mxu0 }
 0x111   :  { %9015 = vst [vmem:[#allocation13_spill] sm:$0xff] %v7428_v55  ;;  %v7433_v58 = vadd.f32 %v7337_v5, %v441_v57  ;;  %v7435_v59 = vpop.f32.mrf.mxu1 }
 0x112   :  { %v6005_v60 = vpop.f32.mrf.mxu0 }
 0x113   :  { %9016 = vst [vmem:[#allocation14_spill] sm:$0xff] %v7433_v58  ;;  %v7438_v61 = vadd.f32 %v6005_v60, %v7337_v5  ;;  %v7440_v62 = vpop.f32.mrf.mxu1 }
 0x114   :  { %v444_v63 = vpop.f32.mrf.mxu0 }
 0x115   :  { %9017 = vst [vmem:[#allocation15_spill] sm:$0xff] %v7438_v61  ;;  %v7445_v2 = vadd.f32 %v7337_v5, %v444_v63  ;;  %v7447_v3 = vpop.f32.mrf.mxu1 }
 0x116   :  { %v6032_v4 = vpop.f32.mrf.mxu0 }
 0x117   :  { %9018 = vst [vmem:[#allocation16_spill] sm:$0xff] %v7445_v2  ;;  %v6052_v10 = vpop.f32.mrf.mxu1  ;;  %v646_v14 = vadd.f32 %v6032_v4, %v7452_v7 }
 0x118   :  { %v637_v13 = vpop.f32.mrf.mxu0  ;;  %v7465_v18 = vadd.f32 %v6052_v10, %v7459_v12  ;;  %v524_v10 = vadd.f32 %v7339_v6, %v7478_v44  ;;  %v519_v6 = vadd.f32 %v7478_v44, %v7371_v22 }
 0x119   :  { %v7462_v15 = vpop.f32.mrf.mxu1  ;;  %v638_v23 = vadd.f32 %v7452_v7, %v637_v13  ;;  %v527_v13 = vadd.f32 %v7360_v17, %v7478_v44 }
 0x11a   :  { %9019 = vst [vmem:[#allocation17_spill] sm:$0xff] %v7462_v15  ;;  %9020 = vst [vmem:[#allocation18_spill] sm:$0xff] %v7465_v18  ;;  %v6033_v19 = vpop.f32.mrf.mxu0 }
 0x11b   :  { %v649_v24 = vadd.f32 %v6033_v19, %v7452_v7  ;;  %v6053_v27 = vpop.f32.mrf.mxu1 }
 0x11c   :  { %v7470_v0 = vadd.f32 %v6053_v27, %v7459_v12  ;;  %v640_v30 = vpop.f32.mrf.mxu0 }
 0x11d   :  { %v1595_v33 = vpack.c.bf16 %v649_v24, %v646_v14  ;;  %v641_v37 = vadd.f32 %v7452_v7, %v640_v30  ;;  %v7473_v41 = vpop.f32.mrf.mxu1  ;;  %v516_v30 = vadd.f32 %v7478_v44, %v7348_v52 }
 0x11e   :  { %9021 = vst [vmem:[#allocation19_spill] sm:$0xff] %v7470_v0  ;;  %9022 = vst [vmem:[#allocation20_spill] sm:$0xff] %v7473_v41  ;;  %v6036_v53 = vpop.f32.mrf.mxu0 }
 0x11f   :  { %v1594_v57 = vpack.c.bf16 %v641_v37, %v638_v23  ;;  %v6056_v60 = vpop.f32.mrf.mxu1  ;;  %v2110_v63 = vsel %vm1682_vm2, %v1595_v33, 0  ;;  %v662_v14 = vadd.f32 %v6036_v53, %v7452_v7 }
 0x120   :  { %v653_v4 = vpop.f32.mrf.mxu0  ;;  %6241 = vmatpush3.bf16.xpose.msra.mxu1 %v2110_v63  ;;  %v7493_v23 = vadd.f32 %v6056_v60, %v7459_v12  ;;  %v1563_v60 = vpack.c.bf16 %v527_v13, %v524_v10  ;;  %v540_v10 = vadd.f32 %v7376_v26, %v7478_v44  ;;  %v543_v13 = vadd.f32 %v7390_v32, %v7478_v44 }
 0x121   :  { %v7488_v19 = vpop.f32.mrf.mxu1  ;;  %v2063_v24 = vsel %vm1682_vm2, %v1594_v57, 0  ;;  %6252 = vmatprep.subr.bf16.mxu1 %v8948_v48  ;;  %v654_v17 = vadd.f32 %v7452_v7, %v653_v4  ;;  %v1562_v4 = vpack.c.bf16 %v519_v6, %v516_v30  ;;  %v532_v26 = vadd.f32 %v7478_v44, %v7382_v29  ;;  %v7581_v29 = vld [vmem:[%s8942_s4 + $0x2] ss:$0 sm:$0xff] }
 0x122   :  { %9023 = vst [vmem:[#allocation21_spill] sm:$0xff] %v7488_v19  ;;  %9024 = vst [vmem:[#allocation22_spill] sm:$0xff] %v7493_v23  ;;  %v6037_v27 = vpop.f32.mrf.mxu0  ;;  %6235 = vmatpush3.bf16.xpose.msra.mxu0 %v2063_v24  ;;  %v535_v32 = vadd.f32 %v7478_v44, %v7399_v36 }
 0x123   :  { %v665_v33 = vadd.f32 %v6037_v27, %v7452_v7  ;;  %v6057_v37 = vpop.f32.mrf.mxu1  ;;  %6246 = vmatprep.subr.bf16.mxu0 %v8948_v48 }
 0x124   :  { %v7503_v53 = vadd.f32 %v6057_v37, %v7459_v12  ;;  %v656_v57 = vpop.f32.mrf.mxu0 }
 0x125   :  { %v1597_v63 = vpack.c.bf16 %v665_v33, %v662_v14  ;;  %v657_v24 = vadd.f32 %v7452_v7, %v656_v57  ;;  %v7506_v47 = vpop.f32.mrf.mxu1 }
 0x126   :  { %9025 = vst [vmem:[#allocation23_spill] sm:$0xff] %v7503_v53  ;;  %9026 = vst [vmem:[#allocation24_spill] sm:$0xff] %v7506_v47  ;;  %v6040_v22 = vpop.f32.mrf.mxu0 }
 0x127   :  { %v1596_v8 = vpack.c.bf16 %v657_v24, %v654_v17  ;;  %v6060_v27 = vpop.f32.mrf.mxu1  ;;  %6243 = vmatmul.mubr.msk.bf16.vlgmr.msra.gmra.mxu1 %vm1682_vm2, %v1563_v60  ;;  %v2204_v1 = vsel %vm1682_vm2, %v1597_v63, 0  ;;  %v678_v14 = vadd.f32 %v6040_v22, %v7452_v7  ;;  %v1565_v24 = vpack.c.bf16 %v543_v13, %v540_v10 }
 0x128   :  { %v669_v37 = vpop.f32.mrf.mxu0  ;;  %6253 = vmatpush3.bf16.xpose.msra.mxu1 %v2204_v1  ;;  %6254 = vmatprep.mubr.msk.bf16.mxu1 %vm6884_vm1, %v8948_v48  ;;  %v7525_v1 = vadd.f32 %v6060_v27, %v7459_v12  ;;  %v556_v10 = vadd.f32 %v7406_v40, %v7478_v44  ;;  %v559_v13 = vadd.f32 %v7416_v46, %v7478_v44 }
 0x129   :  { %v7519_v30 = vpop.f32.mrf.mxu1  ;;  %6237 = vmatmul.mubr.msk.bf16.vlgmr.msra.gmra.mxu0 %vm1682_vm2, %v1562_v4  ;;  %v2157_v6 = vsel %vm1682_vm2, %v1596_v8, 0  ;;  %6264 = vmatprep.subr.bf16.mxu1 %v8948_v48  ;;  %v670_v33 = vadd.f32 %v7452_v7, %v669_v37  ;;  %v1564_v37 = vpack.c.bf16 %v535_v32, %v532_v26  ;;  %v548_v40 = vadd.f32 %v7478_v44, %v7411_v43 }
 0x12a   :  { %9027 = vst [vmem:[#allocation25_spill] sm:$0xff] %v7519_v30  ;;  %9028 = vst [vmem:[#allocation26_spill] sm:$0xff] %v7525_v1  ;;  %v6041_v17 = vpop.f32.mrf.mxu0  ;;  %6247 = vmatpush3.bf16.xpose.msra.mxu0 %v2157_v6  ;;  %6248 = vmatprep.mubr.msk.bf16.mxu0 %vm6884_vm1, %v8948_v48  ;;  %v551_v46 = vadd.f32 %v7478_v44, %v7423_v51 }
 0x12b   :  { %v681_v8 = vadd.f32 %v6041_v17, %v7452_v7  ;;  %v6061_v57 = vpop.f32.mrf.mxu1  ;;  %6258 = vmatprep.subr.bf16.mxu0 %v8948_v48 }
 0x12c   :  { %v7537_v60 = vadd.f32 %v6061_v57, %v7459_v12  ;;  %v672_v63 = vpop.f32.mrf.mxu0 }
 0x12d   :  { %v1599_v22 = vpack.c.bf16 %v681_v8, %v678_v14  ;;  %v673_v4 = vadd.f32 %v7452_v7, %v672_v63  ;;  %v7540_v27 = vpop.f32.mrf.mxu1 }
 0x12e   :  { %9029 = vst [vmem:[#allocation27_spill] sm:$0xff] %v7537_v60  ;;  %9030 = vst [vmem:[#allocation28_spill] sm:$0xff] %v7540_v27  ;;  %v6044_v36 = vpop.f32.mrf.mxu0 }
 0x12f   :  { %v1598_v6 = vpack.c.bf16 %v673_v4, %v670_v33  ;;  %v6064_v17 = vpop.f32.mrf.mxu1  ;;  %6255 = vmatmul.mubr.msk.bf16.vlgmr.msra.gmra.mxu1 %vm1682_vm2, %v1565_v24  ;;  %v2298_v52 = vsel %vm1682_vm2, %v1599_v22, 0  ;;  %v694_v14 = vadd.f32 %v6044_v36, %v7452_v7  ;;  %v1567_v36 = vpack.c.bf16 %v559_v13, %v556_v10 }
 0x130   :  { %v685_v57 = vpop.f32.mrf.mxu0  ;;  %6265 = vmatpush3.bf16.xpose.msra.mxu1 %v2298_v52  ;;  %6266 = vmatprep.mubr.msk.bf16.mxu1 %vm6884_vm1, %v8948_v48  ;;  %v7559_v52 = vadd.f32 %v6064_v17, %v7459_v12  ;;  %v575_v13 = vadd.f32 %v7440_v62, %v7478_v44  ;;  %v567_v62 = vadd.f32 %v7478_v44, %v7447_v3 }
 0x131   :  { %v7553_v26 = vpop.f32.mrf.mxu1  ;;  %6249 = vmatmul.mubr.msk.bf16.vlgmr.msra.gmra.mxu0 %vm1682_vm2, %v1564_v37  ;;  %v2251_v32 = vsel %vm1682_vm2, %v1598_v6, 0  ;;  %6276 = vmatprep.subr.bf16.mxu1 %v8948_v48  ;;  %v686_v8 = vadd.f32 %v7452_v7, %v685_v57  ;;  %v1566_v57 = vpack.c.bf16 %v551_v46, %v548_v40 }
 0x132   :  { %9031 = vst [vmem:[#allocation29_spill] sm:$0xff] %v7553_v26  ;;  %9032 = vst [vmem:[#allocation30_spill] sm:$0xff] %v7559_v52  ;;  %v6045_v33 = vpop.f32.mrf.mxu0  ;;  %6259 = vmatpush3.bf16.xpose.msra.mxu0 %v2251_v32  ;;  %6260 = vmatprep.mubr.msk.bf16.mxu0 %vm6884_vm1, %v8948_v48  ;;  %v9055_v26 = vmov 0.0  }
 0x133   :  { %v697_v63 = vadd.f32 %v6045_v33, %v7452_v7  ;;  %v6065_v24 = vpop.f32.mrf.mxu1  ;;  %6270 = vmatprep.subr.bf16.mxu0 %v8948_v48 }
 0x134   :  { %v7571_v22 = vadd.f32 %v6065_v24, %v7459_v12  ;;  %v688_v4 = vpop.f32.mrf.mxu0 }
 0x135   :  { %v1601_v37 = vpack.c.bf16 %v697_v63, %v694_v14  ;;  %v689_v6 = vadd.f32 %v7452_v7, %v688_v4  ;;  %v7574_v17 = vpop.f32.mrf.mxu1  ;;  %v572_v7 = vadd.f32 %v7430_v56, %v7478_v44  ;;  %v564_v56 = vadd.f32 %v7478_v44, %v7435_v59  ;;  %v7608_v59 = vld [vmem:[%s8940_s2 + $0x2] ss:$0 sm:$0xff] }
 0x136   :  { %9033 = vst [vmem:[#allocation31_spill] sm:$0xff] %v7571_v22  ;;  %9034 = vst [vmem:[#allocation32_spill] sm:$0xff] %v7574_v17  ;;  %v6072_v51 = vpop.f32.mrf.mxu0 }
 0x137   :  { %v1600_v32 = vpack.c.bf16 %v689_v6, %v686_v8  ;;  %v6092_v33 = vpop.f32.mrf.mxu1  ;;  %6267 = vmatmul.mubr.msk.bf16.vlgmr.msra.gmra.mxu1 %vm1682_vm2, %v1567_v36  ;;  %v2392_v12 = vsel %vm1682_vm2, %v1601_v37, 0  ;;  %v1569_v37 = vpack.c.bf16 %v575_v13, %v572_v7  ;;  %v890_v13 = vadd.f32 %v6072_v51, %v7608_v59 }
 0x138   :  { %v881_v10 = vpop.f32.mrf.mxu0  ;;  %6277 = vmatpush3.bf16.xpose.msra.mxu1 %v2392_v12  ;;  %6278 = vmatprep.mubr.msk.bf16.mxu1 %vm6884_vm1, %v8948_v48  ;;  %v1012_v46 = vadd.f32 %v6092_v33, %v7581_v29  ;;  %v1568_v12 = vpack.c.bf16 %v567_v62, %v564_v56 }
 0x139   :  { %v1003_v14 = vpop.f32.mrf.mxu1  ;;  %6261 = vmatmul.mubr.msk.bf16.vlgmr.msra.gmra.mxu0 %vm1682_vm2, %v1566_v57  ;;  %v2345_v40 = vsel %vm1682_vm2, %v1600_v32, 0  ;;  %6288 = vmatprep.subr.bf16.mxu1 %v8948_v48 }
 0x13a   :  { %v6073_v8 = vpop.f32.mrf.mxu0  ;;  %6271 = vmatpush3.bf16.xpose.msra.mxu0 %v2345_v40  ;;  %6272 = vmatprep.mubr.msk.bf16.mxu0 %vm6884_vm1, %v8948_v48  ;;  %v1004_v24 = vadd.f32 %v7581_v29, %v1003_v14 }
 0x13b   :  { %v6093_v63 = vpop.f32.mrf.mxu1  ;;  %6282 = vmatprep.subr.bf16.mxu0 %v8948_v48 }
 0x13c   :  { %v1015_v4 = vadd.f32 %v6093_v63, %v7581_v29  ;;  %v884_v36 = vpop.f32.mrf.mxu0 }
 0x13d   :  { %v1006_v6 = vpop.f32.mrf.mxu1 }
 0x13e   :  { %v1603_v57 = vpack.c.bf16 %v1015_v4, %v1012_v46  ;;  %v1007_v32 = vadd.f32 %v7581_v29, %v1006_v6  ;;  %v6076_v33 = vpop.f32.mrf.mxu0  ;;  %v893_v46 = vadd.f32 %v6073_v8, %v7608_v59  ;;  %v882_v4 = vadd.f32 %v7608_v59, %v881_v10 }
 0x13f   :  { %v6096_v3 = vpop.f32.mrf.mxu1  ;;  %6279 = vmatmul.mubr.msk.bf16.vlgmr.msra.gmra.mxu1 %vm1682_vm2, %v1569_v37  ;;  %v885_v37 = vadd.f32 %v7608_v59, %v884_v36 }
 0x140   :  { %v1602_v44 = vpack.c.bf16 %v1007_v32, %v1004_v24  ;;  %v897_v14 = vpop.f32.mrf.mxu0  ;;  %v2486_v40 = vsel %vm1682_vm2, %v1603_v57, 0  ;;  %6290 = vmatprep.mubr.msk.bf16.mxu1 %vm6884_vm1, %v8948_v48  ;;  %v1028_v56 = vadd.f32 %v6096_v3, %v7581_v29  ;;  %v1571_v32 = vpack.c.bf16 %v893_v46, %v890_v13 }
 0x141   :  { %v1019_v7 = vpop.f32.mrf.mxu1  ;;  %6289 = vmatpush3.bf16.xpose.msra.mxu1 %v2486_v40  ;;  %6273 = vmatmul.mubr.msk.bf16.vlgmr.msra.gmra.mxu0 %vm1682_vm2, %v1568_v12  ;;  %v1570_v43 = vpack.c.bf16 %v885_v37, %v882_v4 }
 0x142   :  { %v6077_v62 = vpop.f32.mrf.mxu0  ;;  %v2439_v63 = vsel %vm1682_vm2, %v1602_v44, 0  ;;  %6300 = vmatprep.subr.bf16.mxu1 %v8948_v48  ;;  %6284 = vmatprep.mubr.msk.bf16.mxu0 %vm6884_vm1, %v8948_v48  ;;  %v1020_v51 = vadd.f32 %v7581_v29, %v1019_v7 }
 0x143   :  { %v6097_v24 = vpop.f32.mrf.mxu1  ;;  %6283 = vmatpush3.bf16.xpose.msra.mxu0 %v2439_v63  ;;  %v909_v13 = vadd.f32 %v6077_v62, %v7608_v59 }
 0x144   :  { %v1031_v8 = vadd.f32 %v6097_v24, %v7581_v29  ;;  %v900_v6 = vpop.f32.mrf.mxu0  ;;  %6294 = vmatprep.subr.bf16.mxu0 %v8948_v48  ;;  %v906_v24 = vadd.f32 %v6076_v33, %v7608_v59 }
 0x145   :  { %v1022_v57 = vpop.f32.mrf.mxu1  ;;  %v901_v33 = vadd.f32 %v7608_v59, %v900_v6 }
 0x146   :  { %v1605_v12 = vpack.c.bf16 %v1031_v8, %v1028_v56  ;;  %v1023_v3 = vadd.f32 %v7581_v29, %v1022_v57  ;;  %v6080_v44 = vpop.f32.mrf.mxu0 }
 0x147   :  { %v6100_v40 = vpop.f32.mrf.mxu1 }
 0x148   :  { %v1604_v63 = vpack.c.bf16 %v1023_v3, %v1020_v51  ;;  %6291 = vmatmul.mubr.msk.bf16.vlgmr.msra.gmra.mxu1 %vm1682_vm2, %v1571_v32  ;;  %v913_v10 = vpop.f32.mrf.mxu0  ;;  %v2580_v36 = vsel %vm1682_vm2, %v1605_v12, 0  ;;  %v1044_v46 = vadd.f32 %v6100_v40, %v7581_v29  ;;  %v898_v51 = vadd.f32 %v7608_v59, %v897_v14 }
 0x149   :  { %v1035_v7 = vpop.f32.mrf.mxu1  ;;  %6301 = vmatpush3.bf16.xpose.msra.mxu1 %v2580_v36  ;;  %6302 = vmatprep.mubr.msk.bf16.mxu1 %vm6884_vm1, %v8948_v48  ;;  %v1573_v32 = vpack.c.bf16 %v909_v13, %v906_v24 }
 0x14a   :  { %v6081_v56 = vpop.f32.mrf.mxu0  ;;  %6285 = vmatmul.mubr.msk.bf16.vlgmr.msra.gmra.mxu0 %vm1682_vm2, %v1570_v43  ;;  %v2533_v4 = vsel %vm1682_vm2, %v1604_v63, 0  ;;  %6312 = vmatprep.subr.bf16.mxu1 %v8948_v48  ;;  %v1036_v62 = vadd.f32 %v7581_v29, %v1035_v7  ;;  %v1572_v36 = vpack.c.bf16 %v901_v33, %v898_v51 }
 0x14b   :  { %v6101_v37 = vpop.f32.mrf.mxu1  ;;  %6295 = vmatpush3.bf16.xpose.msra.mxu0 %v2533_v4  ;;  %6296 = vmatprep.mubr.msk.bf16.mxu0 %vm6884_vm1, %v8948_v48  ;;  %v925_v24 = vadd.f32 %v6081_v56, %v7608_v59 }
 0x14c   :  { %v1047_v8 = vadd.f32 %v6101_v37, %v7581_v29  ;;  %v916_v57 = vpop.f32.mrf.mxu0  ;;  %6306 = vmatprep.subr.bf16.mxu0 %v8948_v48  ;;  %v922_v37 = vadd.f32 %v6080_v44, %v7608_v59 }
 0x14d   :  { %v1038_v43 = vpop.f32.mrf.mxu1  ;;  %v917_v44 = vadd.f32 %v7608_v59, %v916_v57 }
 0x14e   :  { %v1607_v12 = vpack.c.bf16 %v1047_v8, %v1044_v46  ;;  %v1039_v3 = vadd.f32 %v7581_v29, %v1038_v43  ;;  %v6084_v40 = vpop.f32.mrf.mxu0 }
 0x14f   :  { %v6104_v63 = vpop.f32.mrf.mxu1 }
 0x150   :  { %v1606_v4 = vpack.c.bf16 %v1039_v3, %v1036_v62  ;;  %6303 = vmatmul.mubr.msk.bf16.vlgmr.msra.gmra.mxu1 %vm1682_vm2, %v1573_v32  ;;  %v929_v14 = vpop.f32.mrf.mxu0  ;;  %v2674_v6 = vsel %vm1682_vm2, %v1607_v12, 0  ;;  %v1060_v13 = vadd.f32 %v6104_v63, %v7581_v29  ;;  %v914_v62 = vadd.f32 %v7608_v59, %v913_v10 }
 0x151   :  { %v1051_v7 = vpop.f32.mrf.mxu1  ;;  %6313 = vmatpush3.bf16.xpose.msra.mxu1 %v2674_v6  ;;  %6314 = vmatprep.mubr.msk.bf16.mxu1 %vm6884_vm1, %v8948_v48  ;;  %v1575_v12 = vpack.c.bf16 %v925_v24, %v922_v37  ;;  %v938_v37 = vadd.f32 %v6084_v40, %v7608_v59 }
 0x152   :  { %v6085_v46 = vpop.f32.mrf.mxu0  ;;  %6297 = vmatmul.mubr.msk.bf16.vlgmr.msra.gmra.mxu0 %vm1682_vm2, %v1572_v36  ;;  %v2627_v51 = vsel %vm1682_vm2, %v1606_v4, 0  ;;  %6324 = vmatprep.subr.bf16.mxu1 %v8948_v48  ;;  %v1052_v56 = vadd.f32 %v7581_v29, %v1051_v7  ;;  %v5574_v4 = vld [vmem:[%s8944_s6 + $0x2] ss:$0 sm:$0xff]  ;;  %v1574_v57 = vpack.c.bf16 %v917_v44, %v914_v62 }
 0x153   :  { %v6105_v33 = vpop.f32.mrf.mxu1  ;;  %6307 = vmatpush3.bf16.xpose.msra.mxu0 %v2627_v51  ;;  %6308 = vmatprep.mubr.msk.bf16.mxu0 %vm6884_vm1, %v8948_v48  ;;  %v941_v24 = vadd.f32 %v6085_v46, %v7608_v59 }
 0x154   :  { %v1063_v8 = vadd.f32 %v6105_v33, %v7581_v29  ;;  %v932_v43 = vpop.f32.mrf.mxu0  ;;  %6318 = vmatprep.subr.bf16.mxu0 %v8948_v48 }
 0x155   :  { %v1054_v32 = vpop.f32.mrf.mxu1  ;;  %v933_v40 = vadd.f32 %v7608_v59, %v932_v43 }
 0x156   :  { %v1609_v3 = vpack.c.bf16 %v1063_v8, %v1060_v13  ;;  %v1055_v63 = vadd.f32 %v7581_v29, %v1054_v32  ;;  %v6112_v36 = vpop.f32.mrf.mxu0  ;;  %v930_v8 = vadd.f32 %v7608_v59, %v929_v14 }
 0x157   :  { %v7667_v10 = vpop.f32.mrf.mxu1  ;;  %v7673_v33 = vadd.f32 %v6112_v36, %v5574_v4 }
 0x158   :  { %v1608_v6 = vpack.c.bf16 %v1055_v63, %v1052_v56  ;;  %6315 = vmatmul.mubr.msk.bf16.vlgmr.msra.gmra.mxu1 %vm1682_vm2, %v1575_v12  ;;  %v7670_v7 = vpop.f32.mrf.mxu0  ;;  %v2768_v51 = vsel %vm1682_vm2, %v1609_v3, 0  ;;  %v1577_v3 = vpack.c.bf16 %v941_v24, %v938_v37 }
 0x159   :  { %9035 = vst [vmem:[#allocation33_spill] sm:$0xff] %v7670_v7  ;;  %9036 = vst [vmem:[#allocation34_spill] sm:$0xff] %v7673_v33  ;;  %6325 = vmatpush3.bf16.xpose.msra.mxu1 %v2768_v51  ;;  %6326 = vmatprep.mubr.msk.bf16.mxu1 %vm6884_vm1, %v8948_v48  ;;  %v7677_v29 = vpop.f32.mrf.mxu1 }
 0x15a   :  { %v6113_v13 = vpop.f32.mrf.mxu0  ;;  %6309 = vmatmul.mubr.msk.bf16.vlgmr.msra.gmra.mxu0 %vm1682_vm2, %v1574_v57  ;;  %v2721_v62 = vsel %vm1682_vm2, %v1608_v6, 0  ;;  %6336 = vmatprep.subr.bf16.mxu1 %v8948_v48  ;;  %v1576_v57 = vpack.c.bf16 %v933_v40, %v930_v8 }
 0x15b   :  { %v7684_v44 = vadd.f32 %v6113_v13, %v5574_v4  ;;  %6319 = vmatpush3.bf16.xpose.msra.mxu0 %v2721_v62  ;;  %6320 = vmatprep.mubr.msk.bf16.mxu0 %vm6884_vm1, %v8948_v48  ;;  %v7688_v56 = vpop.f32.mrf.mxu1 }
 0x15c   :  { %v7692_v46 = vpop.f32.mrf.mxu0  ;;  %6330 = vmatprep.subr.bf16.mxu0 %v8948_v48 }
 0x15d   :  { %9037 = vst [vmem:[#allocation35_spill] sm:$0xff] %v7684_v44  ;;  %9038 = vst [vmem:[#allocation36_spill] sm:$0xff] %v7692_v46  ;;  %v7697_v12 = vpop.f32.mrf.mxu1 }
 0x15e   :  { %v6116_v63 = vpop.f32.mrf.mxu0 }
 0x15f   :  { %v7699_v36 = vpop.f32.mrf.mxu1  ;;  %v7704_v14 = vadd.f32 %v6116_v63, %v5574_v4 }
 0x160   :  { %6327 = vmatmul.mubr.msk.bf16.vlgmr.msra.gmra.mxu1 %vm1682_vm2, %v1577_v3  ;;  %v7702_v6 = vpop.f32.mrf.mxu0 }
 0x161   :  { %9039 = vst [vmem:[#allocation37_spill] sm:$0xff] %v7702_v6  ;;  %9040 = vst [vmem:[#allocation38_spill] sm:$0xff] %v7704_v14  ;;  %v7706_v59 = vpop.f32.mrf.mxu1  ;;  %6338 = vmatprep.mubr.msk.bf16.mxu1 %vm6884_vm1, %v8948_v48 }
 0x162   :  { %v6117_v43 = vpop.f32.mrf.mxu0  ;;  %6321 = vmatmul.mubr.msk.bf16.vlgmr.msra.gmra.mxu0 %vm1682_vm2, %v1576_v57 }
 0x163   :  { %v7711_v51 = vadd.f32 %v6117_v43, %v5574_v4  ;;  %v7713_v37 = vpop.f32.mrf.mxu1  ;;  %6332 = vmatprep.mubr.msk.bf16.mxu0 %vm6884_vm1, %v8948_v48 }
 0x164   :  { %v7717_v24 = vpop.f32.mrf.mxu0 }
 0x165   :  { %9041 = vst [vmem:[#allocation39_spill] sm:$0xff] %v7711_v51  ;;  %9042 = vst [vmem:[#allocation40_spill] sm:$0xff] %v7717_v24  ;;  %v7721_v62 = vpop.f32.mrf.mxu1 }
 0x166   :  { %v6120_v8 = vpop.f32.mrf.mxu0 }
 0x167   :  { %v7723_v40 = vpop.f32.mrf.mxu1  ;;  %v7727_v63 = vadd.f32 %v6120_v8, %v5574_v4 }
 0x168   :  { %v7725_v3 = vpop.f32.mrf.mxu0 }
 0x169   :  { %9043 = vst [vmem:[#allocation41_spill] sm:$0xff] %v7725_v3  ;;  %9044 = vst [vmem:[#allocation42_spill] sm:$0xff] %v7727_v63  ;;  %v7729_v57 = vpop.f32.mrf.mxu1 }
 0x16a   :  { %v6121_v43 = vpop.f32.mrf.mxu0 }
 0x16b   :  { %v7731_v32 = vadd.f32 %v6121_v43, %v5574_v4  ;;  %v7733_v54 = vpop.f32.mrf.mxu1 }
 0x16c   :  { %v7735_v49 = vpop.f32.mrf.mxu0 }
 0x16d   :  { %9045 = vst [vmem:[#allocation43_spill] sm:$0xff] %v7731_v32  ;;  %9046 = vst [vmem:[#allocation44_spill] sm:$0xff] %v7735_v49  ;;  %v7739_v38 = vpop.f32.mrf.mxu1 }
 0x16e   :  { %v6124_v34 = vpop.f32.mrf.mxu0 }
 0x16f   :  { %v7741_v21 = vpop.f32.mrf.mxu1  ;;  %v7745_v8 = vadd.f32 %v6124_v34, %v5574_v4  ;;  %v7762_v34 = vld [vmem:[%s8942_s4 + $0x3] ss:$0 sm:$0xff] }
 0x170   :  { %v7743_v48 = vpop.f32.mrf.mxu0 }
 0x171   :  { %9047 = vst [vmem:[#allocation45_spill] sm:$0xff] %v7743_v48  ;;  %9048 = vst [vmem:[#allocation46_spill] sm:$0xff] %v7745_v8  ;;  %v7747_v3 = vpop.f32.mrf.mxu1 }
 0x172   :  { %v6125_v43 = vpop.f32.mrf.mxu0 }
 0x173   :  { %v7749_v14 = vadd.f32 %v6125_v43, %v5574_v4  ;;  %v7751_v51 = vpop.f32.mrf.mxu1  ;;  %v7767_v4 = vld [vmem:[%s8944_s6 + $0x3] ss:$0 sm:$0xff] }
 0x174   :  { %v7753_v49 = vpop.f32.mrf.mxu0 }
 0x175   :  { %9049 = vst [vmem:[#allocation47_spill] sm:$0xff] %v7749_v14  ;;  %9050 = vst [vmem:[#allocation48_spill] sm:$0xff] %v7753_v49  ;;  %v7757_v63 = vpop.f32.mrf.mxu1 }
 0x176   :  { %v6152_v32 = vpop.f32.mrf.mxu0 }
 0x177   :  { %v6172_v48 = vpop.f32.mrf.mxu1  ;;  %v1378_v49 = vadd.f32 %v6152_v32, %v7762_v34  ;;  %v7786_v32 = vld [vmem:[%s8940_s2 + $0x3] ss:$0 sm:$0xff] }
 0x178   :  { %v1369_v43 = vpop.f32.mrf.mxu0  ;;  %v7773_v8 = vadd.f32 %v6172_v48, %v7767_v4 }
 0x179   :  { %v7770_v24 = vpop.f32.mrf.mxu1  ;;  %v1370_v14 = vadd.f32 %v7762_v34, %v1369_v43 }
 0x17a   :  { %9051 = vst [vmem:[#allocation49_spill] sm:$0xff] %v7770_v24  ;;  %v6153_v13 = vpop.f32.mrf.mxu0  ;;  %9052 = vst [vmem:[#allocation50_spill] sm:$0xff] %v7773_v8 }
 0x17b   :  { %v1381_v6 = vadd.f32 %v6153_v13, %v7762_v34  ;;  %v6173_v33 = vpop.f32.mrf.mxu1 }
 0x17c   :  { %v1372_v44 = vpop.f32.mrf.mxu0  ;;  %v7778_v46 = vadd.f32 %v6173_v33, %v7767_v4 }
 0x17d   :  { %v1611_v7 = vpack.c.bf16 %v1381_v6, %v1378_v49  ;;  %v1373_v52 = vadd.f32 %v7762_v34, %v1372_v44  ;;  %v7781_v22 = vpop.f32.mrf.mxu1  ;;  %v1256_v49 = vadd.f32 %v7667_v10, %v7786_v32  ;;  %v1259_v44 = vadd.f32 %v7688_v56, %v7786_v32 }
 0x17e   :  { %9053 = vst [vmem:[#allocation51_spill] sm:$0xff] %v7778_v46  ;;  %9054 = vst [vmem:[#allocation52_spill] sm:$0xff] %v7781_v22  ;;  %v6156_v48 = vpop.f32.mrf.mxu0  ;;  %v1251_v10 = vadd.f32 %v7786_v32, %v7697_v12 }
 0x17f   :  { %v1610_v13 = vpack.c.bf16 %v1373_v52, %v1370_v14  ;;  %v2862_v24 = vsel %vm1682_vm2, %v1611_v7, 0  ;;  %v6176_v17 = vpop.f32.mrf.mxu1  ;;  %v1394_v6 = vadd.f32 %v6156_v48, %v7762_v34  ;;  %v1248_v14 = vadd.f32 %v7786_v32, %v7677_v29 }
 0x180   :  { %v1385_v33 = vpop.f32.mrf.mxu0  ;;  %6337 = vmatpush3.bf16.xpose.msra.mxu1 %v2862_v24  ;;  %v7801_v7 = vadd.f32 %v6176_v17, %v7767_v4 }
 0x181   :  { %v2815_v22 = vsel %vm1682_vm2, %v1610_v13, 0  ;;  %6348 = vmatprep.subr.bf16.mxu1 %v9055_v26  ;;  %v7798_v1 = vpop.f32.mrf.mxu1  ;;  %v1386_v56 = vadd.f32 %v7762_v34, %v1385_v33  ;;  %v1578_v33 = vpack.c.bf16 %v1251_v10, %v1248_v14 }
 0x182   :  { %9056 = vst [vmem:[#allocation53_spill] sm:$0xff] %v7798_v1  ;;  %v6157_v52 = vpop.f32.mrf.mxu0  ;;  %6331 = vmatpush3.bf16.xpose.msra.mxu0 %v2815_v22  ;;  %9057 = vst [vmem:[#allocation54_spill] sm:$0xff] %v7801_v7  ;;  %v1579_v22 = vpack.c.bf16 %v1259_v44, %v1256_v49  ;;  %v1272_v49 = vadd.f32 %v7699_v36, %v7786_v32  ;;  %v1275_v44 = vadd.f32 %v7713_v37, %v7786_v32 }
 0x183   :  { %v1397_v24 = vadd.f32 %v6157_v52, %v7762_v34  ;;  %6342 = vmatprep.subr.bf16.mxu0 %v9055_v26  ;;  %v6177_v48 = vpop.f32.mrf.mxu1  ;;  %v1264_v37 = vadd.f32 %v7786_v32, %v7706_v59 }
 0x184   :  { %v1388_v13 = vpop.f32.mrf.mxu0  ;;  %v7811_v43 = vadd.f32 %v6177_v48, %v7767_v4 }
 0x185   :  { %v1613_v17 = vpack.c.bf16 %v1397_v24, %v1394_v6  ;;  %v1389_v1 = vadd.f32 %v7762_v34, %v1388_v13  ;;  %v7814_v8 = vpop.f32.mrf.mxu1 }
 0x186   :  { %9058 = vst [vmem:[#allocation55_spill] sm:$0xff] %v7811_v43  ;;  %9059 = vst [vmem:[#allocation56_spill] sm:$0xff] %v7814_v8  ;;  %v6160_v29 = vpop.f32.mrf.mxu0  ;;  %v1649_v43 = vld [vmem:[#allocation2 + $0xf8] sm:$0xff] }
 0x187   :  { %v1612_v46 = vpack.c.bf16 %v1389_v1, %v1386_v56  ;;  %6339 = vmatmul.mubr.msk.bf16.vlgmr.msra.gmra.mxu1 %vm1682_vm2, %v1579_v22  ;;  %v2956_v52 = vsel %vm1682_vm2, %v1613_v17, 0  ;;  %v6180_v60 = vpop.f32.mrf.mxu1  ;;  %v1410_v6 = vadd.f32 %v6160_v29, %v7762_v34  ;;  %v1267_v56 = vadd.f32 %v7786_v32, %v7721_v62 }
 0x188   :  { %v1401_v27 = vpop.f32.mrf.mxu0  ;;  %6349 = vmatpush3.bf16.xpose.msra.mxu1 %v2956_v52  ;;  %6350 = vmatprep.mubr.msk.bf16.mxu1 %vm6884_vm1, %v9055_v26  ;;  %v7835_v36 = vadd.f32 %v6180_v60, %v7767_v4  ;;  %v1581_v17 = vpack.c.bf16 %v1275_v44, %v1272_v49  ;;  %v1288_v44 = vadd.f32 %v7723_v40, %v7786_v32 }
 0x189   :  { %6333 = vmatmul.mubr.msk.bf16.vlgmr.msra.gmra.mxu0 %vm1682_vm2, %v1578_v33  ;;  %v2909_v1 = vsel %vm1682_vm2, %v1612_v46, 0  ;;  %6360 = vmatprep.subr.bf16.mxu1 %v9055_v26  ;;  %v7830_v14 = vpop.f32.mrf.mxu1  ;;  %v1402_v46 = vadd.f32 %v7762_v34, %v1401_v27  ;;  %v1580_v27 = vpack.c.bf16 %v1267_v56, %v1264_v37  ;;  %v1283_v40 = vadd.f32 %v7786_v32, %v7739_v38 }
 0x18a   :  { %9060 = vst [vmem:[#allocation57_spill] sm:$0xff] %v7830_v14  ;;  %v6161_v10 = vpop.f32.mrf.mxu0  ;;  %6343 = vmatpush3.bf16.xpose.msra.mxu0 %v2909_v1  ;;  %6344 = vmatprep.mubr.msk.bf16.mxu0 %vm6884_vm1, %v9055_v26  ;;  %9061 = vst [vmem:[#allocation58_spill] sm:$0xff] %v7835_v36  ;;  %v1648_v14 = vld [vmem:[#allocation2 + $0xf0] sm:$0xff] }
 0x18b   :  { %v1413_v24 = vadd.f32 %v6161_v10, %v7762_v34  ;;  %6354 = vmatprep.subr.bf16.mxu0 %v9055_v26  ;;  %v6181_v48 = vpop.f32.mrf.mxu1 }
 0x18c   :  { %v1404_v13 = vpop.f32.mrf.mxu0  ;;  %v7845_v22 = vadd.f32 %v6181_v48, %v7767_v4 }
 0x18d   :  { %v1615_v60 = vpack.c.bf16 %v1413_v24, %v1410_v6  ;;  %v1405_v29 = vadd.f32 %v7762_v34, %v1404_v13  ;;  %v7848_v33 = vpop.f32.mrf.mxu1  ;;  %v1291_v6 = vadd.f32 %v7733_v54, %v7786_v32  ;;  %v1280_v54 = vadd.f32 %v7786_v32, %v7729_v57 }
 0x18e   :  { %9062 = vst [vmem:[#allocation59_spill] sm:$0xff] %v7845_v22  ;;  %9063 = vst [vmem:[#allocation60_spill] sm:$0xff] %v7848_v33  ;;  %v6164_v59 = vpop.f32.mrf.mxu0  ;;  %v1645_v22 = vld [vmem:[#allocation2 + $0xd8] sm:$0xff] }
 0x18f   :  { %v1614_v52 = vpack.c.bf16 %v1405_v29, %v1402_v46  ;;  %6351 = vmatmul.mubr.msk.bf16.vlgmr.msra.gmra.mxu1 %vm1682_vm2, %v1581_v17  ;;  %v3050_v1 = vsel %vm1682_vm2, %v1615_v60, 0  ;;  %v6184_v10 = vpop.f32.mrf.mxu1  ;;  %v1426_v37 = vadd.f32 %v6164_v59, %v7762_v34 }
 0x190   :  { %v1417_v12 = vpop.f32.mrf.mxu0  ;;  %6361 = vmatpush3.bf16.xpose.msra.mxu1 %v3050_v1  ;;  %6362 = vmatprep.mubr.msk.bf16.mxu1 %vm6884_vm1, %v9055_v26  ;;  %v7857_v49 = vadd.f32 %v6184_v10, %v7767_v4 }
 0x191   :  { %6345 = vmatmul.mubr.msk.bf16.vlgmr.msra.gmra.mxu0 %vm1682_vm2, %v1580_v27  ;;  %v3003_v56 = vsel %vm1682_vm2, %v1614_v52, 0  ;;  %6372 = vmatprep.subr.bf16.mxu1 %v9055_v26  ;;  %v1539_v46 = vpop.f32.mrf.mxu1  ;;  %v1418_v13 = vadd.f32 %v7762_v34, %v1417_v12  ;;  %v1583_v27 = vpack.c.bf16 %v1291_v6, %v1288_v44  ;;  %v1582_v12 = vpack.c.bf16 %v1283_v40, %v1280_v54 }
 0x192   :  { %9064 = vst [vmem:[#allocation61_spill] sm:$0xff] %v7857_v49  ;;  %v6165_v24 = vpop.f32.mrf.mxu0  ;;  %6355 = vmatpush3.bf16.xpose.msra.mxu0 %v3003_v56  ;;  %6356 = vmatprep.mubr.msk.bf16.mxu0 %vm6884_vm1, %v9055_v26  ;;  %v7870_v48 = vadd.f32 %v7767_v4, %v1539_v46  ;;  %v1304_v44 = vadd.f32 %v7741_v21, %v7786_v32 }
 0x193   :  { %v1429_v17 = vadd.f32 %v6165_v24, %v7762_v34  ;;  %6366 = vmatprep.subr.bf16.mxu0 %v9055_v26  ;;  %v6185_v60 = vpop.f32.mrf.mxu1  ;;  %v1299_v24 = vadd.f32 %v7786_v32, %v7757_v63  ;;  %v394_v21 = vadd.f32 %v7337_v5, %v7342_v9  ;;  %v1621_v63 = vld [vmem:[#allocation2 + $0x18] sm:$0xff] }
 0x194   :  { %9065 = vst [vmem:[#allocation62_spill] sm:$0xff] %v7870_v48  ;;  %v1420_v29 = vpop.f32.mrf.mxu0  ;;  %v7880_v59 = vadd.f32 %v6185_v60, %v7767_v4  ;;  %v1640_v48 = vld [vmem:[#allocation2 + $0xb0] sm:$0xff] }
 0x195   :  { %v1617_v52 = vpack.c.bf16 %v1429_v17, %v1426_v37  ;;  %v1421_v1 = vadd.f32 %v7762_v34, %v1420_v29  ;;  %v1542_v10 = vpop.f32.mrf.mxu1  ;;  %v1296_v37 = vadd.f32 %v7786_v32, %v7747_v3  ;;  %v9068_v17 = vpack.c.bf16 %v7358_v16, %v7346_v11  ;;  %v1637_v34 = vld [vmem:[#allocation2 + $0x98] sm:$0xff] }
 0x196   :  { %9066 = vst [vmem:[#allocation63_spill] sm:$0xff] %v7880_v59  ;;  %v7886_v38 = vadd.f32 %v7767_v4, %v1542_v10  ;;  %v1307_v4 = vadd.f32 %v7751_v51, %v7786_v32  ;;  %v397_v51 = vadd.f32 %v7337_v5, %v7366_v20  ;;  %v1620_v5 = vld [vmem:[#allocation2 + $0x10] sm:$0xff]  ;;  %v1618_v20 = vld [vmem:[#allocation2] sm:$0xff] }
 0x197   :  { %v1616_v56 = vpack.c.bf16 %v1421_v1, %v1418_v13  ;;  %6363 = vmatmul.mubr.msk.bf16.vlgmr.msra.gmra.mxu1 %vm1682_vm2, %v1583_v27  ;;  %v3144_v46 = vsel %vm1682_vm2, %v1617_v52, 0  ;;  %v1584_v40 = vpack.c.bf16 %v1299_v24, %v1296_v37  ;;  %v1619_v52 = vld [vmem:[#allocation2 + $0x8] sm:$0xff]  ;;  %v1644_v59 = vld [vmem:[#allocation2 + $0xd0] sm:$0xff] }
 0x198   :  { %9067 = vst [vmem:[#allocation64_spill] sm:$0xff] %v7886_v38  ;;  %6373 = vmatpush3.bf16.xpose.msra.mxu1 %v3144_v46  ;;  %6374 = vmatprep.mubr.msk.bf16.mxu1 %vm6884_vm1, %v9055_v26  ;;  %v1585_v54 = vpack.c.bf16 %v1307_v4, %v1304_v44  ;;  %v3924_v13 = vpack.c.bf16 %v397_v51, %v394_v21  ;;  %v1624_v46 = vld [vmem:[#allocation2 + $0x30] sm:$0xff] }
 0x199   :  { %6357 = vmatmul.mubr.msk.bf16.vlgmr.msra.gmra.mxu0 %vm1682_vm2, %v1582_v12  ;;  %v3097_v6 = vsel %vm1682_vm2, %v1616_v56, 0  ;;  %6384 = vmatprep.subr.bf16.mxu1 %v9055_v26 }
 0x19a   :  { %6367 = vmatpush3.bf16.xpose.msra.mxu0 %v3097_v6  ;;  %6368 = vmatprep.mubr.msk.bf16.mxu0 %vm6884_vm1, %v9055_v26 }
 0x19b   :  { %6378 = vmatprep.subr.bf16.mxu0 %v9055_v26 }
 0x19f   :  { %6375 = vmatmul.mubr.msk.bf16.vlgmr.msra.gmra.mxu1 %vm1682_vm2, %v1585_v54  ;;  %v1622_v54 = vld [vmem:[#allocation2 + $0x20] sm:$0xff] }
 0x1a0   :  { %6385 = vmatpush3.bf16.msra.mxu1 %v9068_v17  ;;  %6386 = vmatprep.mubr.msk.bf16.mxu1 %vm6884_vm1, %v9055_v26 }
 0x1a1   :  { %6369 = vmatmul.mubr.msk.bf16.vlgmr.msra.gmra.mxu0 %vm1682_vm2, %v1584_v40  ;;  %6396 = vmatprep.subr.bf16.mxu1 %v9055_v26 }
 0x1a2   :  { %6379 = vmatpush3.bf16.msra.mxu0 %v3924_v13  ;;  %6380 = vmatprep.mubr.msk.bf16.mxu0 %vm6884_vm1, %v9055_v26  ;;  %v1625_v13 = vld [vmem:[#allocation2 + $0x38] sm:$0xff] }
 0x1a3   :  { %6390 = vmatprep.subr.bf16.mxu0 %v9055_v26 }
 0x1a8   :  { %v1770_v9 = vpop.f32.mrf.mxu1 }
 0x1a9   :  { %v7923_v3 = vadd.f32 %v1770_v9, %v1620_v5  ;;  %v1623_v9 = vld [vmem:[#allocation2 + $0x28] sm:$0xff] }
 0x1aa   :  { %v1723_v11 = vpop.f32.mrf.mxu0  ;;  %v6196_v16 = vpop.f32.mrf.mxu1 }
 0x1ab   :  { %v7925_v32 = vadd.f32 %v1723_v11, %v1618_v20  ;;  %v3194_v60 = vsel %vm3187_vm3, %v7923_v3, -inf }
 0x1ac   :  { %3195 = vmax.xlane.f32.xlu1 %v3194_v60  ;;  %v6190_v29 = vpop.f32.mrf.mxu0  ;;  %v1773_v27 = vpop.f32.mrf.mxu1 }
 0x1ad   :  { %v7929_v1 = vadd.f32 %v1773_v27, %v1621_v63  ;;  %v3188_v10 = vsel %vm3187_vm3, %v7925_v32, -inf  ;;  %v1628_v29 = vld [vmem:[#allocation2 + $0x50] sm:$0xff] }
 0x1ae   :  { %v6197_v12 = vpop.f32.mrf.mxu1  ;;  %3189 = vmax.xlane.f32.xlu0 %v3188_v10  ;;  %v1726_v56 = vpop.f32.mrf.mxu0 }
 0x1af   :  { %v7933_v44 = vadd.f32 %v1726_v56, %v1619_v52  ;;  %v3197_v4 = vsel %vm3187_vm3, %v7929_v1, -inf }
 0x1b0   :  { %3198 = vmax.xlane.f32.xlu1 %v3197_v4  ;;  %v1864_v6 = vpop.f32.mrf.mxu1  ;;  %v6191_v37 = vpop.f32.mrf.mxu0 }
 0x1b1   :  { %v7937_v24 = vadd.f32 %v1864_v6, %v1624_v46  ;;  %v3191_v21 = vsel %vm3187_vm3, %v7933_v44, -inf  ;;  %v1629_v6 = vld [vmem:[#allocation2 + $0x58] sm:$0xff]  ;;  %v1626_v37 = vld [vmem:[#allocation2 + $0x40] sm:$0xff] }
 0x1b2   :  { %v6208_v51 = vpop.f32.mrf.mxu1  ;;  %3192 = vmax.xlane.f32.xlu0 %v3191_v21  ;;  %v1817_v40 = vpop.f32.mrf.mxu0 }
 0x1b3   :  { %v7941_v20 = vadd.f32 %v1817_v40, %v1622_v54  ;;  %v3206_v16 = vsel %vm3187_vm3, %v7937_v24, -inf }
 0x1b4   :  { %v1867_v17 = vpop.f32.mrf.mxu1  ;;  %v6202_v5 = vpop.f32.mrf.mxu0 }
 0x1b5   :  { %v7943_v11 = vadd.f32 %v1867_v17, %v1625_v13  ;;  %v3200_v46 = vsel %vm3187_vm3, %v7941_v20, -inf  ;;  %v1627_v13 = vld [vmem:[#allocation2 + $0x48] sm:$0xff] }
 0x1b6   :  { %v6209_v63 = vpop.f32.mrf.mxu1  ;;  %3207 = vmax.xlane.f32.xlu0 %v3206_v16  ;;  %v1820_v60 = vpop.f32.mrf.mxu0 }
 0x1b7   :  { %v3209_v27 = vsel %vm3187_vm3, %v7943_v11, -inf  ;;  %v7949_v52 = vadd.f32 %v1820_v60, %v1623_v9  ;;  %v1632_v63 = vld [vmem:[#allocation2 + $0x70] sm:$0xff] }
 0x1b8   :  { %3210 = vmax.xlane.f32.xlu1 %v3209_v27  ;;  %v1958_v10 = vpop.f32.mrf.mxu1  ;;  %v6203_v12 = vpop.f32.mrf.mxu0 }
 0x1b9   :  { %v7951_v56 = vadd.f32 %v1958_v10, %v1628_v29  ;;  %v3203_v51 = vsel %vm3187_vm3, %v7949_v52, -inf }
 0x1ba   :  { %v6220_v4 = vpop.f32.mrf.mxu1  ;;  %3201 = vmax.xlane.f32.xlu0 %v3200_v46  ;;  %v1911_v21 = vpop.f32.mrf.mxu0 }
 0x1bb   :  { %v7959_v5 = vadd.f32 %v1911_v21, %v1626_v37  ;;  %v3218_v9 = vsel %vm3187_vm3, %v7951_v56, -inf  ;;  %v1633_v37 = vld [vmem:[#allocation2 + $0x78] sm:$0xff]  ;;  %v1630_v21 = vld [vmem:[#allocation2 + $0x60] sm:$0xff] }
 0x1bc   :  { %v1961_v54 = vpop.f32.mrf.mxu1  ;;  %3204 = vmax.xlane.f32.xlu1 %v3203_v51  ;;  %v6214_v40 = vpop.f32.mrf.mxu0 }
 0x1bd   :  { %v7957_v17 = vadd.f32 %v1961_v54, %v1629_v6  ;;  %v3212_v4 = vsel %vm3187_vm3, %v7959_v5, -inf }
 0x1be   :  { %v6221_v16 = vpop.f32.mrf.mxu1  ;;  %3219 = vmax.xlane.f32.xlu0 %v3218_v9  ;;  %v1914_v60 = vpop.f32.mrf.mxu0  ;;  %v1631_v9 = vld [vmem:[#allocation2 + $0x68] sm:$0xff] }
 0x1bf   :  { %v3221_v29 = vsel %vm3187_vm3, %v7957_v17, -inf  ;;  %v7965_v27 = vadd.f32 %v1914_v60, %v1627_v13 }
 0x1c0   :  { %v2052_v10 = vpop.f32.mrf.mxu1  ;;  %3222 = vmax.xlane.f32.xlu1 %v3221_v29  ;;  %v6215_v12 = vpop.f32.mrf.mxu0 }
 0x1c1   :  { %v7967_v46 = vadd.f32 %v2052_v10, %v1632_v63  ;;  %v3215_v54 = vsel %vm3187_vm3, %v7965_v27, -inf }
 0x1c2   :  { %v6232_v6 = vpop.f32.mrf.mxu1  ;;  %3213 = vmax.xlane.f32.xlu0 %v3212_v4  ;;  %v2005_v51 = vpop.f32.mrf.mxu0 }
 0x1c3   :  { %v7975_v60 = vadd.f32 %v2005_v51, %v1630_v21  ;;  %v3230_v63 = vsel %vm3187_vm3, %v7967_v46, -inf  ;;  %v1636_v21 = vld [vmem:[#allocation2 + $0x90] sm:$0xff] }
 0x1c4   :  { %v2055_v40 = vpop.f32.mrf.mxu1  ;;  %3216 = vmax.xlane.f32.xlu1 %v3215_v54  ;;  %v6226_v13 = vpop.f32.mrf.mxu0 }
 0x1c5   :  { %v7973_v16 = vadd.f32 %v2055_v40, %v1633_v37  ;;  %v3224_v54 = vsel %vm3187_vm3, %v7975_v60, -inf  ;;  %v1634_v40 = vld [vmem:[#allocation2 + $0x80] sm:$0xff] }
 0x1c6   :  { %3231 = vmax.xlane.f32.xlu0 %v3230_v63  ;;  %v2008_v29 = vpop.f32.mrf.mxu0  ;;  %v6233_v10 = vpop.f32.mrf.mxu1 }
 0x1c7   :  { %v3233_v12 = vsel %vm3187_vm3, %v7973_v16, -inf  ;;  %v7981_v4 = vadd.f32 %v2008_v29, %v1631_v9 }
 0x1c8   :  { %3234 = vmax.xlane.f32.xlu1 %v3233_v12  ;;  %v6227_v6 = vpop.f32.mrf.mxu0 }
 0x1c9   :  { %v3227_v37 = vsel %vm3187_vm3, %v7981_v4, -inf }
 0x1ca   :  { %3225 = vmax.xlane.f32.xlu0 %v3224_v54  ;;  %v1635_v54 = vld [vmem:[#allocation2 + $0x88] sm:$0xff] }
 0x1cc   :  { %3228 = vmax.xlane.f32.xlu1 %v3227_v37 }
 0x1e7   :  { %v2146_v51 = vpop.f32.mrf.mxu1 }
 0x1e8   :  { %v7987_v13 = vadd.f32 %v2146_v51, %v1636_v21 }
 0x1e9   :  { %v2099_v63 = vpop.f32.mrf.mxu0  ;;  %v6244_v10 = vpop.f32.mrf.mxu1 }
 0x1ea   :  { %v7989_v9 = vadd.f32 %v2099_v63, %v1634_v40  ;;  %v3242_v29 = vsel %vm3187_vm3, %v7987_v13, -inf  ;;  %v1638_v10 = vld [vmem:[#allocation2 + $0xa0] sm:$0xff] }
 0x1eb   :  { %v2149_v12 = vpop.f32.mrf.mxu1  ;;  %3243 = vmax.xlane.f32.xlu0 %v3242_v29  ;;  %v6238_v6 = vpop.f32.mrf.mxu0 }
 0x1ec   :  { %v7993_v57 = vadd.f32 %v2149_v12, %v1637_v34  ;;  %v3236_v51 = vsel %vm3187_vm3, %v7989_v9, -inf  ;;  %v1641_v6 = vld [vmem:[#allocation2 + $0xb8] sm:$0xff] }
 0x1ed   :  { %v2102_v37 = vpop.f32.mrf.mxu0  ;;  %v6245_v62 = vpop.f32.mrf.mxu1 }
 0x1ee   :  { %v7995_v38 = vadd.f32 %v2102_v37, %v1635_v54  ;;  %v3245_v21 = vsel %vm3187_vm3, %v7993_v57, -inf }
 0x1ef   :  { %v2240_v40 = vpop.f32.mrf.mxu1  ;;  %3246 = vmax.xlane.f32.xlu1 %v3245_v21  ;;  %3237 = vmax.xlane.f32.xlu0 %v3236_v51  ;;  %v6239_v63 = vpop.f32.mrf.mxu0  ;;  %v1639_v51 = vld [vmem:[#allocation2 + $0xa8] sm:$0xff] }
 0x1f0   :  { %v8001_v29 = vadd.f32 %v2240_v40, %v1640_v48  ;;  %v3239_v37 = vsel %vm3187_vm3, %v7995_v38, -inf }
 0x1f1   :  { %v2193_v34 = vpop.f32.mrf.mxu0  ;;  %v6256_v12 = vpop.f32.mrf.mxu1 }
 0x1f2   :  { %v8003_v62 = vadd.f32 %v2193_v34, %v1638_v10  ;;  %v3254_v54 = vsel %vm3187_vm3, %v8001_v29, -inf }
 0x1f3   :  { %v2243_v49 = vpop.f32.mrf.mxu1  ;;  %3255 = vmax.xlane.f32.xlu0 %v3254_v54  ;;  %3240 = vmax.xlane.f32.xlu1 %v3239_v37  ;;  %v6250_v21 = vpop.f32.mrf.mxu0  ;;  %v1642_v37 = vld [vmem:[#allocation2 + $0xc0] sm:$0xff] }
 0x1f4   :  { %v8009_v63 = vadd.f32 %v2243_v49, %v1641_v6  ;;  %v3248_v34 = vsel %vm3187_vm3, %v8003_v62, -inf }
 0x1f5   :  { %v2196_v48 = vpop.f32.mrf.mxu0  ;;  %v6257_v40 = vpop.f32.mrf.mxu1 }
 0x1f6   :  { %v8011_v12 = vadd.f32 %v2196_v48, %v1639_v51  ;;  %v3257_v10 = vsel %vm3187_vm3, %v8009_v63, -inf }
 0x1f7   :  { %v2334_v36 = vpop.f32.mrf.mxu1  ;;  %3258 = vmax.xlane.f32.xlu1 %v3257_v10  ;;  %3249 = vmax.xlane.f32.xlu0 %v3248_v34  ;;  %v6251_v54 = vpop.f32.mrf.mxu0  ;;  %v1643_v34 = vld [vmem:[#allocation2 + $0xc8] sm:$0xff] }
 0x1f8   :  { %v8017_v21 = vadd.f32 %v2334_v36, %v1644_v59  ;;  %v3251_v48 = vsel %vm3187_vm3, %v8011_v12, -inf }
 0x1f9   :  { %v2287_v49 = vpop.f32.mrf.mxu0  ;;  %v6268_v6 = vpop.f32.mrf.mxu1 }
 0x1fa   :  { %v8019_v40 = vadd.f32 %v2287_v49, %v1642_v37  ;;  %v3266_v51 = vsel %vm3187_vm3, %v8017_v21, -inf }
 0x1fb   :  { %v2337_v33 = vpop.f32.mrf.mxu1  ;;  %3267 = vmax.xlane.f32.xlu0 %v3266_v51  ;;  %3252 = vmax.xlane.f32.xlu1 %v3251_v48  ;;  %v6262_v10 = vpop.f32.mrf.mxu0  ;;  %v1646_v48 = vld [vmem:[#allocation2 + $0xe0] sm:$0xff] }
 0x1fc   :  { %v8025_v54 = vadd.f32 %v2337_v33, %v1645_v22  ;;  %v3260_v49 = vsel %vm3187_vm3, %v8019_v40, -inf }
 0x1fd   :  { %v2290_v36 = vpop.f32.mrf.mxu0  ;;  %v6269_v59 = vpop.f32.mrf.mxu1 }
 0x1fe   :  { %v8027_v6 = vadd.f32 %v2290_v36, %v1643_v34  ;;  %v3269_v37 = vsel %vm3187_vm3, %v8025_v54, -inf }
 0x1ff   :  { %v2428_v7 = vpop.f32.mrf.mxu1  ;;  %3270 = vmax.xlane.f32.xlu1 %v3269_v37  ;;  %3261 = vmax.xlane.f32.xlu0 %v3260_v49  ;;  %v6263_v51 = vpop.f32.mrf.mxu0  ;;  %v1647_v49 = vld [vmem:[#allocation2 + $0xe8] sm:$0xff] }
 0x200   :  { %v8033_v10 = vadd.f32 %v2428_v7, %v1648_v14  ;;  %v3263_v36 = vsel %vm3187_vm3, %v8027_v6, -inf }
 0x201   :  { %v2381_v22 = vpop.f32.mrf.mxu0  ;;  %v6280_v33 = vpop.f32.mrf.mxu1 }
 0x202   :  { %v8035_v59 = vadd.f32 %v2381_v22, %v1646_v48  ;;  %v3278_v34 = vsel %vm3187_vm3, %v8033_v10, -inf  ;;  %v1652_v33 = vld [vmem:[#allocation2 + $0x110] sm:$0xff] }
 0x203   :  { %v2431_v8 = vpop.f32.mrf.mxu1  ;;  %3279 = vmax.xlane.f32.xlu0 %v3278_v34  ;;  %3264 = vmax.xlane.f32.xlu1 %v3263_v36  ;;  %v6274_v37 = vpop.f32.mrf.mxu0  ;;  %v1650_v36 = vld [vmem:[#allocation2 + $0x100] sm:$0xff] }
 0x204   :  { %v8041_v51 = vadd.f32 %v2431_v8, %v1649_v43  ;;  %v3272_v22 = vsel %vm3187_vm3, %v8035_v59, -inf  ;;  %v1653_v43 = vld [vmem:[#allocation2 + $0x118] sm:$0xff] }
 0x205   :  { %v2384_v7 = vpop.f32.mrf.mxu0  ;;  %v6281_v14 = vpop.f32.mrf.mxu1 }
 0x206   :  { %v8043_v30 = vadd.f32 %v2384_v7, %v1647_v49  ;;  %v3281_v48 = vsel %vm3187_vm3, %v8041_v51, -inf }
 0x207   :  { %3282 = vmax.xlane.f32.xlu1 %v3281_v48  ;;  %3273 = vmax.xlane.f32.xlu0 %v3272_v22  ;;  %v6275_v23 = vpop.f32.mrf.mxu0 }
 0x208   :  { %v2522_v34 = vpop.f32.mrf.mxu1  ;;  %v3275_v49 = vsel %vm3187_vm3, %v8043_v30, -inf  ;;  %v1651_v23 = vld [vmem:[#allocation2 + $0x108] sm:$0xff] }
 0x209   :  { %v8049_v37 = vadd.f32 %v2522_v34, %v1652_v33  ;;  %v1656_v34 = vld [vmem:[#allocation2 + $0x130] sm:$0xff] }
 0x20a   :  { %v6292_v8 = vpop.f32.mrf.mxu1  ;;  %v2475_v7 = vpop.f32.mrf.mxu0 }
 0x20b   :  { %v3290_v14 = vsel %vm3187_vm3, %v8049_v37, -inf  ;;  %3276 = vmax.xlane.f32.xlu1 %v3275_v49  ;;  %v8055_v53 = vadd.f32 %v2475_v7, %v1650_v36  ;;  %v1654_v7 = vld [vmem:[#allocation2 + $0x120] sm:$0xff] }
 0x20c   :  { %v2525_v47 = vpop.f32.mrf.mxu1  ;;  %3291 = vmax.xlane.f32.xlu0 %v3290_v14  ;;  %v6286_v48 = vpop.f32.mrf.mxu0 }
 0x20d   :  { %v8057_v22 = vadd.f32 %v2525_v47, %v1653_v43  ;;  %v3284_v18 = vsel %vm3187_vm3, %v8055_v53, -inf  ;;  %v1657_v43 = vld [vmem:[#allocation2 + $0x138] sm:$0xff] }
 0x20e   :  { %v6293_v33 = vpop.f32.mrf.mxu1  ;;  %v2478_v8 = vpop.f32.mrf.mxu0 }
 0x20f   :  { %v3293_v19 = vsel %vm3187_vm3, %v8057_v22, -inf  ;;  %v8063_v0 = vadd.f32 %v2478_v8, %v1651_v23 }
 0x210   :  { %v2616_v49 = vpop.f32.mrf.mxu1  ;;  %3294 = vmax.xlane.f32.xlu1 %v3293_v19  ;;  %3285 = vmax.xlane.f32.xlu0 %v3284_v18  ;;  %v6287_v36 = vpop.f32.mrf.mxu0  ;;  %v1655_v18 = vld [vmem:[#allocation2 + $0x128] sm:$0xff] }
 0x211   :  { %v8065_v14 = vadd.f32 %v2616_v49, %v1656_v34  ;;  %v3287_v41 = vsel %vm3187_vm3, %v8063_v0, -inf  ;;  %v1660_v49 = vld [vmem:[#allocation2 + $0x150] sm:$0xff] }
 0x212   :  { %v6304_v47 = vpop.f32.mrf.mxu1  ;;  %v2569_v48 = vpop.f32.mrf.mxu0 }
 0x213   :  { %v3302_v33 = vsel %vm3187_vm3, %v8065_v14, -inf  ;;  %v8071_v15 = vadd.f32 %v2569_v48, %v1654_v7 }
 0x214   :  { %v2619_v23 = vpop.f32.mrf.mxu1  ;;  %3303 = vmax.xlane.f32.xlu0 %v3302_v33  ;;  %3288 = vmax.xlane.f32.xlu1 %v3287_v41  ;;  %v6298_v19 = vpop.f32.mrf.mxu0  ;;  %v1658_v41 = vld [vmem:[#allocation2 + $0x140] sm:$0xff] }
 0x215   :  { %v8073_v8 = vadd.f32 %v2619_v23, %v1657_v43  ;;  %v3296_v58 = vsel %vm3187_vm3, %v8071_v15, -inf  ;;  %v1661_v23 = vld [vmem:[#allocation2 + $0x158] sm:$0xff] }
 0x216   :  { %v6305_v34 = vpop.f32.mrf.mxu1  ;;  %v2572_v36 = vpop.f32.mrf.mxu0 }
 0x217   :  { %v3305_v47 = vsel %vm3187_vm3, %v8073_v8, -inf  ;;  %v8079_v2 = vadd.f32 %v2572_v36, %v1655_v18 }
 0x218   :  { %v2710_v7 = vpop.f32.mrf.mxu1  ;;  %3306 = vmax.xlane.f32.xlu1 %v3305_v47  ;;  %3297 = vmax.xlane.f32.xlu0 %v3296_v58  ;;  %v6299_v48 = vpop.f32.mrf.mxu0  ;;  %v1659_v58 = vld [vmem:[#allocation2 + $0x148] sm:$0xff] }
 0x219   :  { %v8081_v33 = vadd.f32 %v2710_v7, %v1660_v49  ;;  %v3299_v55 = vsel %vm3187_vm3, %v8079_v2, -inf  ;;  %v1664_v7 = vld [vmem:[#allocation2 + $0x170] sm:$0xff] }
 0x21a   :  { %v6316_v43 = vpop.f32.mrf.mxu1  ;;  %v2663_v19 = vpop.f32.mrf.mxu0 }
 0x21b   :  { %v3314_v34 = vsel %vm3187_vm3, %v8081_v33, -inf  ;;  %v8087_v61 = vadd.f32 %v2663_v19, %v1658_v41 }
 0x21c   :  { %v2713_v18 = vpop.f32.mrf.mxu1  ;;  %3315 = vmax.xlane.f32.xlu0 %v3314_v34  ;;  %3300 = vmax.xlane.f32.xlu1 %v3299_v55  ;;  %v6310_v36 = vpop.f32.mrf.mxu0  ;;  %v1662_v55 = vld [vmem:[#allocation2 + $0x160] sm:$0xff] }
 0x21d   :  { %v8089_v47 = vadd.f32 %v2713_v18, %v1661_v23  ;;  %v3308_v42 = vsel %vm3187_vm3, %v8087_v61, -inf  ;;  %v1665_v18 = vld [vmem:[#allocation2 + $0x178] sm:$0xff] }
 0x21e   :  { %v6317_v49 = vpop.f32.mrf.mxu1  ;;  %v2666_v48 = vpop.f32.mrf.mxu0 }
 0x21f   :  { %v3317_v43 = vsel %vm3187_vm3, %v8089_v47, -inf  ;;  %v8095_v50 = vadd.f32 %v2666_v48, %v1659_v58 }
 0x220   :  { %v2804_v41 = vpop.f32.mrf.mxu1  ;;  %3318 = vmax.xlane.f32.xlu1 %v3317_v43  ;;  %3309 = vmax.xlane.f32.xlu0 %v3308_v42  ;;  %v6311_v19 = vpop.f32.mrf.mxu0  ;;  %v1663_v42 = vld [vmem:[#allocation2 + $0x168] sm:$0xff] }
 0x221   :  { %v8097_v34 = vadd.f32 %v2804_v41, %v1664_v7  ;;  %v3311_v39 = vsel %vm3187_vm3, %v8095_v50, -inf }
 0x222   :  { %v6328_v23 = vpop.f32.mrf.mxu1  ;;  %v2757_v36 = vpop.f32.mrf.mxu0 }
 0x223   :  { %v3326_v49 = vsel %vm3187_vm3, %v8097_v34, -inf  ;;  %v8103_v45 = vadd.f32 %v2757_v36, %v1662_v55 }
 0x224   :  { %v2807_v58 = vpop.f32.mrf.mxu1  ;;  %3327 = vmax.xlane.f32.xlu0 %v3326_v49  ;;  %3312 = vmax.xlane.f32.xlu1 %v3311_v39  ;;  %v6322_v48 = vpop.f32.mrf.mxu0 }
 0x225   :  { %v8105_v43 = vadd.f32 %v2807_v58, %v1665_v18  ;;  %v3320_v23 = vsel %vm3187_vm3, %v8103_v45, -inf }
 0x226   :  { %v2760_v7 = vpop.f32.mrf.mxu0  ;;  %v6329_v41 = vpop.f32.mrf.mxu1 }
 0x227   :  { %v3329_v19 = vsel %vm3187_vm3, %v8105_v43, -inf  ;;  %v8111_v28 = vadd.f32 %v2760_v7, %v1663_v42 }
 0x228   :  { %3330 = vmax.xlane.f32.xlu1 %v3329_v19  ;;  %3321 = vmax.xlane.f32.xlu0 %v3320_v23  ;;  %v6323_v55 = vpop.f32.mrf.mxu0 }
 0x229   :  { %v3323_v39 = vsel %vm3187_vm3, %v8111_v28, -inf }
 0x22c   :  { %3324 = vmax.xlane.f32.xlu1 %v3323_v39 }
 0x235   :  { %v3196_v36 = vpop.xlane.xlu1 %3195 }
 0x236   :  { %v3382_v18 = vsub.f32 %v7923_v3, %v3196_v36 }
 0x237   :  { %v3190_v49 = vpop.xlane.xlu0 %3189 }
 0x238   :  { %v3448_v58 = vmul.f32 1.442695, %v3382_v18  ;;  %v3380_v48 = vsub.f32 %v7925_v32, %v3190_v49 }
 0x239   :  { %v3199_v41 = vpop.xlane.xlu1 %3198 }
 0x23a   :  { %6599 = vpow2.f32 %v3448_v58  ;;  %v3444_v35 = vmul.f32 1.442695, %v3380_v48  ;;  %v3383_v42 = vsub.f32 %v7929_v1, %v3199_v41 }
 0x23b   :  { %v3193_v7 = vpop.xlane.xlu0 %3192 }
 0x23c   :  { %v3450_v19 = vmul.f32 1.442695, %v3383_v42  ;;  %v3381_v23 = vsub.f32 %v7933_v44, %v3193_v7  ;;  %6601 = vpow2.f32 %v3444_v35 }
 0x23e   :  { %6603 = vpow2.f32 %v3450_v19  ;;  %v3446_v55 = vmul.f32 1.442695, %v3381_v23  ;;  %v1668_v23 = vld [vmem:[#allocation2 + $0x190] sm:$0xff] }
 0x23f   :  { %v3208_v39 = vpop.xlane.xlu0 %3207 }
 0x240   :  { %6605 = vpow2.f32 %v3446_v55  ;;  %v3386_v3 = vsub.f32 %v7937_v24, %v3208_v39 }
 0x241   :  { %v3211_v36 = vpop.xlane.xlu1 %3210 }
 0x242   :  { %v3387_v32 = vsub.f32 %v7943_v11, %v3211_v36  ;;  %v3456_v49 = vmul.f32 1.442695, %v3386_v3 }
 0x243   :  { %v3202_v18 = vpop.xlane.xlu0 %3201 }
 0x244   :  { %v3384_v58 = vsub.f32 %v7941_v20, %v3202_v18  ;;  %v3458_v42 = vmul.f32 1.442695, %v3387_v32  ;;  %6607 = vpow2.f32 %v3456_v49  ;;  %v1669_v49 = vld [vmem:[#allocation2 + $0x198] sm:$0xff] }
 0x245   :  { %v3205_v48 = vpop.xlane.xlu1 %3204 }
 0x246   :  { %v3385_v35 = vsub.f32 %v7949_v52, %v3205_v48  ;;  %v3452_v44 = vmul.f32 1.442695, %v3384_v58  ;;  %6609 = vpow2.f32 %v3458_v42 }
 0x247   :  { %v8122_v1 = vpop.eup %6599  ;;  %v2898_v41 = vpop.f32.mrf.mxu1 }
 0x248   :  { %9069 = vst [vmem:[#allocation65_spill] sm:$0xff] %v8122_v1  ;;  %v3578_v7 = vsel %vm3187_vm3, %v8122_v1, 0.0  ;;  %v3454_v39 = vmul.f32 1.442695, %v3385_v35  ;;  %v3220_v3 = vpop.xlane.xlu0 %3219  ;;  %6611 = vpow2.f32 %v3452_v44  ;;  %v8135_v32 = vadd.f32 %v2898_v41, %v1668_v23 }
 0x249   :  { %v2851_v24 = vpop.f32.mrf.mxu0  ;;  %v8127_v19 = vpop.eup %6601  ;;  %3579 = vadd.xlane.f32.xlu0 %v3578_v7  ;;  %v1666_v7 = vld [vmem:[#allocation2 + $0x180] sm:$0xff]  ;;  %v3390_v41 = vsub.f32 %v7951_v56, %v3220_v3 }
 0x24a   :  { %9070 = vst [vmem:[#allocation66_spill] sm:$0xff] %v8127_v19  ;;  %v6340_v11 = vpop.f32.mrf.mxu1  ;;  %v3572_v58 = vsel %vm3187_vm3, %v8127_v19, 0.0  ;;  %v3223_v35 = vpop.xlane.xlu1 %3222  ;;  %6613 = vpow2.f32 %v3454_v39  ;;  %v8144_v23 = vadd.f32 %v2851_v24, %v1666_v7 }
 0x24b   :  { %v8129_v55 = vpop.eup %6603  ;;  %v6334_v20 = vpop.f32.mrf.mxu0  ;;  %v3464_v24 = vmul.f32 1.442695, %v3390_v41 }
 0x24c   :  { %9071 = vst [vmem:[#allocation67_spill] sm:$0xff] %v8129_v55  ;;  %v2901_v36 = vpop.f32.mrf.mxu1  ;;  %v3581_v52 = vsel %vm3187_vm3, %v8129_v55, 0.0 }
 0x24d   :  { %v8133_v18 = vpop.eup %6605  ;;  %3582 = vadd.xlane.f32.xlu1 %v3581_v52  ;;  %v2854_v48 = vpop.f32.mrf.mxu0  ;;  %3573 = vadd.xlane.f32.xlu0 %v3572_v58  ;;  %v8139_v20 = vadd.f32 %v2901_v36, %v1669_v49  ;;  %v3338_v52 = vsel %vm3187_vm3, %v8135_v32, -inf  ;;  %v3391_v36 = vsub.f32 %v7957_v17, %v3223_v35  ;;  %6615 = vpow2.f32 %v3464_v24 }
 0x24e   :  { %9072 = vst [vmem:[#allocation68_spill] sm:$0xff] %v8133_v18  ;;  %v6341_v42 = vpop.f32.mrf.mxu1  ;;  %v3575_v44 = vsel %vm3187_vm3, %v8133_v18, 0.0  ;;  %v8149_v49 = vadd.f32 %v2854_v48, %v1667_v25  ;;  %v3217_v7 = vpop.xlane.xlu1 %3216 }
 0x24f   :  { %v6335_v11 = vpop.f32.mrf.mxu0  ;;  %v3214_v42 = vpop.xlane.xlu0 %3213  ;;  %v3341_v56 = vsel %vm3187_vm3, %v8139_v20, -inf  ;;  %v3466_v25 = vmul.f32 1.442695, %v3391_v36  ;;  %v3389_v48 = vsub.f32 %v7965_v27, %v3217_v7  ;;  %v1672_v36 = vld [vmem:[#allocation2 + $0x1b0] sm:$0xff] }
 0x250   :  { %v2992_v26 = vpop.f32.mrf.mxu1  ;;  %v3388_v3 = vsub.f32 %v7959_v5, %v3214_v42  ;;  %v3335_v41 = vsel %vm3187_vm3, %v8149_v49, -inf }
 0x251   :  { %3576 = vadd.xlane.f32.xlu1 %v3575_v44  ;;  %v2945_v58 = vpop.f32.mrf.mxu0  ;;  %3339 = vmax.xlane.f32.xlu0 %v3338_v52  ;;  %v3332_v44 = vsel %vm3187_vm3, %v8144_v23, -inf  ;;  %v8156_v52 = vpop.eup %6607  ;;  %6617 = vpow2.f32 %v3466_v25  ;;  %v1670_v25 = vld [vmem:[#allocation2 + $0x1a0] sm:$0xff] }
 0x252   :  { %v6352_v11 = vpop.f32.mrf.mxu1  ;;  %9073 = vst [vmem:[#allocation69_spill] sm:$0xff] %v8156_v52  ;;  %v3460_v42 = vmul.f32 1.442695, %v3388_v3 }
 0x253   :  { %v6346_v39 = vpop.f32.mrf.mxu0  ;;  %v8163_v5 = vpop.eup %6609 }
 0x254   :  { %v2995_v31 = vpop.f32.mrf.mxu1  ;;  %9074 = vst [vmem:[#allocation70_spill] sm:$0xff] %v8163_v5  ;;  %v3590_v39 = vsel %vm3187_vm3, %v8156_v52, 0.0  ;;  %v3593_v24 = vsel %vm3187_vm3, %v8163_v5, 0.0  ;;  %6619 = vpow2.f32 %v3460_v42  ;;  %v1673_v52 = vld [vmem:[#allocation2 + $0x1b8] sm:$0xff] }
 0x255   :  { %3342 = vmax.xlane.f32.xlu1 %v3341_v56  ;;  %v2948_v18 = vpop.f32.mrf.mxu0  ;;  %3333 = vmax.xlane.f32.xlu0 %v3332_v44  ;;  %v8169_v44 = vpop.eup %6611  ;;  %v8183_v1 = vadd.f32 %v2995_v31, %v1673_v52 }
 0x256   :  { %v6353_v11 = vpop.f32.mrf.mxu1  ;;  %9075 = vst [vmem:[#allocation71_spill] sm:$0xff] %v8169_v44  ;;  %v3584_v55 = vsel %vm3187_vm3, %v8169_v44, 0.0 }
 0x257   :  { %v6347_v17 = vpop.f32.mrf.mxu0  ;;  %v3462_v11 = vmul.f32 1.442695, %v3389_v48  ;;  %v8175_v3 = vpop.eup %6613 }
 0x258   :  { %v8159_v35 = vpop.f32.mrf.mxu1  ;;  %v3232_v17 = vpop.xlane.xlu0 %3231  ;;  %9076 = vst [vmem:[#allocation72_spill] sm:$0xff] %v8175_v3 }
 0x259   :  { %3336 = vmax.xlane.f32.xlu1 %v3335_v41  ;;  %v8167_v56 = vpop.f32.mrf.mxu0  ;;  %3591 = vadd.xlane.f32.xlu0 %v3590_v39  ;;  %v8177_v41 = vadd.f32 %v2992_v26, %v1672_v36  ;;  %6621 = vpow2.f32 %v3462_v11  ;;  %v3587_v26 = vsel %vm3187_vm3, %v8175_v3, 0.0  ;;  %v3394_v42 = vsub.f32 %v7967_v46, %v3232_v17 }
 0x25a   :  { %v6364_v27 = vpop.f32.mrf.mxu1  ;;  %v8190_v36 = vadd.f32 %v2945_v58, %v1670_v25  ;;  %v3353_v46 = vsel %vm3187_vm3, %v8183_v1, -inf }
 0x25b   :  { %v6358_v7 = vpop.f32.mrf.mxu0  ;;  %v3235_v27 = vpop.xlane.xlu1 %3234  ;;  %v3350_v44 = vsel %vm3187_vm3, %v8177_v41, -inf  ;;  %v3472_v58 = vmul.f32 1.442695, %v3394_v42 }
 0x25c   :  { %v8171_v19 = vpop.f32.mrf.mxu1  ;;  %9077 = vst [vmem:[#allocation73_spill] sm:$0xff] %v8190_v36  ;;  %v3395_v11 = vsub.f32 %v7973_v16, %v3235_v27 }
 0x25d   :  { %3594 = vadd.xlane.f32.xlu1 %v3593_v24  ;;  %v8181_v39 = vpop.f32.mrf.mxu0  ;;  %3585 = vadd.xlane.f32.xlu0 %v3584_v55  ;;  %v1671_v24 = vld [vmem:[#allocation2 + $0x1a8] sm:$0xff]  ;;  %6623 = vpow2.f32 %v3472_v58  ;;  %v1677_v58 = vld [vmem:[#allocation2 + $0x1d8] sm:$0xff] }
 0x25e   :  { %v6365_v48 = vpop.f32.mrf.mxu1  ;;  %v3474_v27 = vmul.f32 1.442695, %v3395_v11 }
 0x25f   :  { %v6359_v7 = vpop.f32.mrf.mxu0  ;;  %v3226_v48 = vpop.xlane.xlu0 %3225 }
 0x260   :  { %v8185_v5 = vpop.f32.mrf.mxu1  ;;  %v8197_v7 = vadd.f32 %v2948_v18, %v1671_v24  ;;  %v3392_v17 = vsub.f32 %v7975_v60, %v3226_v48  ;;  %v3229_v25 = vpop.xlane.xlu1 %3228  ;;  %6625 = vpow2.f32 %v3474_v27 }
 0x261   :  { %3588 = vadd.xlane.f32.xlu1 %v3587_v26  ;;  %v8194_v55 = vpop.f32.mrf.mxu0  ;;  %3351 = vmax.xlane.f32.xlu0 %v3350_v44  ;;  %v3344_v26 = vsel %vm3187_vm3, %v8190_v36, -inf  ;;  %v3393_v24 = vsub.f32 %v7981_v4, %v3229_v25  ;;  %v1676_v36 = vld [vmem:[#allocation2 + $0x1d0] sm:$0xff] }
 0x262   :  { %v6376_v31 = vpop.f32.mrf.mxu1  ;;  %v3347_v42 = vsel %vm3187_vm3, %v8197_v7, -inf  ;;  %v3468_v60 = vmul.f32 1.442695, %v3392_v17  ;;  %v8224_v25 = vadd.f32 %v8159_v35, %v1676_v36 }
 0x263   :  { %v6370_v52 = vpop.f32.mrf.mxu0  ;;  %v8208_v31 = vpop.eup %6615 }
 0x264   :  { %v8199_v3 = vpop.f32.mrf.mxu1  ;;  %v8213_v52 = vpop.eup %6617  ;;  %v3602_v48 = vsel %vm3187_vm3, %v8208_v31, 0.0  ;;  %6627 = vpow2.f32 %v3468_v60  ;;  %v3362_v35 = vsel %vm3187_vm3, %v8224_v25, -inf }
 0x265   :  { %3354 = vmax.xlane.f32.xlu1 %v3353_v46  ;;  %v8206_v44 = vpop.f32.mrf.mxu0  ;;  %3345 = vmax.xlane.f32.xlu0 %v3344_v26  ;;  %v8217_v46 = vpop.eup %6619  ;;  %v3470_v26 = vmul.f32 1.442695, %v3393_v24  ;;  %v3605_v4 = vsel %vm3187_vm3, %v8213_v52, 0.0 }
 0x266   :  { %v6377_v16 = vpop.f32.mrf.mxu1  ;;  %9078 = vst [vmem:[#allocation74_spill] sm:$0xff] %v8217_v46  ;;  %v8221_v11 = vpop.eup %6621  ;;  %v3596_v17 = vsel %vm3187_vm3, %v8217_v46, 0.0 }
 0x267   :  { %v6371_v18 = vpop.f32.mrf.mxu0  ;;  %9079 = vst [vmem:[#allocation75_spill] sm:$0xff] %v8221_v11  ;;  %v1674_v16 = vld [vmem:[#allocation2 + $0x1c0] sm:$0xff]  ;;  %6629 = vpow2.f32 %v3470_v26  ;;  %v3599_v27 = vsel %vm3187_vm3, %v8221_v11, 0.0 }
 0x268   :  { %v8229_v18 = vadd.f32 %v8171_v19, %v1677_v58  ;;  %v8234_v24 = vadd.f32 %v8167_v56, %v1674_v16 }
 0x269   :  { %3348 = vmax.xlane.f32.xlu1 %v3347_v42  ;;  %3603 = vadd.xlane.f32.xlu0 %v3602_v48  ;;  %v1675_v42 = vld [vmem:[#allocation2 + $0x1c8] sm:$0xff] }
 0x26a   :  { %v8239_v36 = vadd.f32 %v8181_v39, %v1675_v42  ;;  %v3365_v19 = vsel %vm3187_vm3, %v8229_v18, -inf  ;;  %v3356_v56 = vsel %vm3187_vm3, %v8234_v24, -inf  ;;  %v8246_v26 = vpop.eup %6623 }
 0x26c   :  { %v3359_v39 = vsel %vm3187_vm3, %v8239_v36, -inf }
 0x26d   :  { %3606 = vadd.xlane.f32.xlu1 %v3605_v4  ;;  %3597 = vadd.xlane.f32.xlu0 %v3596_v17  ;;  %v8250_v16 = vpop.eup %6625 }
 0x26e   :  { %9080 = vst [vmem:[#allocation76_spill] sm:$0xff] %v8250_v16 }
 0x271   :  { %3600 = vadd.xlane.f32.xlu1 %v3599_v27  ;;  %3363 = vmax.xlane.f32.xlu0 %v3362_v35  ;;  %v1680_v27 = vld [vmem:[#allocation2 + $0x1f0] sm:$0xff]  ;;  %v3614_v35 = vsel %vm3187_vm3, %v8246_v26, 0.0 }
 0x274   :  { %v3244_v60 = vpop.xlane.xlu0 %3243 }
 0x275   :  { %v3398_v48 = vsub.f32 %v7987_v13, %v3244_v60  ;;  %3366 = vmax.xlane.f32.xlu1 %v3365_v19  ;;  %3357 = vmax.xlane.f32.xlu0 %v3356_v56  ;;  %v8256_v60 = vpop.eup %6627  ;;  %v8259_v56 = vadd.f32 %v8185_v5, %v1680_v27 }
 0x277   :  { %v3480_v4 = vmul.f32 1.442695, %v3398_v48 }
 0x278   :  { %v3247_v58 = vpop.xlane.xlu1 %3246  ;;  %v3238_v17 = vpop.xlane.xlu0 %3237 }
 0x279   :  { %6631 = vpow2.f32 %v3480_v4  ;;  %v3399_v42 = vsub.f32 %v7993_v57, %v3247_v58  ;;  %v3396_v13 = vsub.f32 %v7989_v9, %v3238_v17  ;;  %3360 = vmax.xlane.f32.xlu1 %v3359_v39  ;;  %3615 = vadd.xlane.f32.xlu0 %v3614_v35  ;;  %v3617_v4 = vsel %vm3187_vm3, %v8250_v16, 0.0  ;;  %v8263_v57 = vpop.eup %6629  ;;  %v1678_v9 = vld [vmem:[#allocation2 + $0x1e0] sm:$0xff]  ;;  %v1681_v58 = vld [vmem:[#allocation2 + $0x1f8] sm:$0xff] }
 0x27a   :  { %v8273_v35 = vadd.f32 %v8199_v3, %v1681_v58 }
 0x27b   :  { %v3482_v19 = vmul.f32 1.442695, %v3399_v42  ;;  %v3476_v48 = vmul.f32 1.442695, %v3396_v13  ;;  %v3608_v42 = vsel %vm3187_vm3, %v8256_v60, 0.0  ;;  %v8270_v13 = vadd.f32 %v8194_v55, %v1678_v9 }
 0x27c   :  { %v3256_v11 = vpop.xlane.xlu0 %3255  ;;  %v3241_v46 = vpop.xlane.xlu1 %3240 }
 0x27d   :  { %6633 = vpow2.f32 %v3482_v19  ;;  %v3402_v17 = vsub.f32 %v8001_v29, %v3256_v11  ;;  %v3397_v39 = vsub.f32 %v7995_v38, %v3241_v46  ;;  %3618 = vadd.xlane.f32.xlu1 %v3617_v4  ;;  %3609 = vadd.xlane.f32.xlu0 %v3608_v42  ;;  %v3611_v29 = vsel %vm3187_vm3, %v8263_v57, 0.0  ;;  %v1679_v38 = vld [vmem:[#allocation2 + $0x1e8] sm:$0xff] }
 0x27e   :  { %6635 = vpow2.f32 %v3476_v48  ;;  %v3374_v48 = vsel %vm3187_vm3, %v8259_v56, -inf  ;;  %v8282_v4 = vadd.f32 %v8206_v44, %v1679_v38 }
 0x27f   :  { %v3488_v5 = vmul.f32 1.442695, %v3402_v17  ;;  %v3478_v27 = vmul.f32 1.442695, %v3397_v39  ;;  %v3377_v17 = vsel %vm3187_vm3, %v8273_v35, -inf }
 0x280   :  { %v3259_v16 = vpop.xlane.xlu1 %3258  ;;  %v3250_v19 = vpop.xlane.xlu0 %3249 }
 0x281   :  { %6637 = vpow2.f32 %v3488_v5  ;;  %v3403_v46 = vsub.f32 %v8009_v63, %v3259_v16  ;;  %v3400_v11 = vsub.f32 %v8003_v62, %v3250_v19  ;;  %3612 = vadd.xlane.f32.xlu1 %v3611_v29  ;;  %3375 = vmax.xlane.f32.xlu0 %v3374_v48  ;;  %v3368_v16 = vsel %vm3187_vm3, %v8270_v13, -inf }
 0x282   :  { %6639 = vpow2.f32 %v3478_v27 }
 0x283   :  { %v3490_v55 = vmul.f32 1.442695, %v3403_v46  ;;  %v3484_v3 = vmul.f32 1.442695, %v3400_v11 }
 0x284   :  { %v3268_v9 = vpop.xlane.xlu0 %3267  ;;  %v3253_v58 = vpop.xlane.xlu1 %3252 }
 0x285   :  { %6641 = vpow2.f32 %v3490_v55  ;;  %v3406_v63 = vsub.f32 %v8017_v21, %v3268_v9  ;;  %v3401_v62 = vsub.f32 %v8011_v12, %v3253_v58  ;;  %3378 = vmax.xlane.f32.xlu1 %v3377_v17  ;;  %3369 = vmax.xlane.f32.xlu0 %v3368_v16  ;;  %v3371_v21 = vsel %vm3187_vm3, %v8282_v4, -inf }
 0x286   :  { %v8290_v39 = vpop.eup %6631  ;;  %6643 = vpow2.f32 %v3484_v3 }
 0x287   :  { %v3496_v44 = vmul.f32 1.442695, %v3406_v63  ;;  %v3486_v42 = vmul.f32 1.442695, %v3401_v62  ;;  %v3626_v5 = vsel %vm3187_vm3, %v8290_v39, 0.0 }
 0x288   :  { %v3271_v27 = vpop.xlane.xlu1 %3270  ;;  %v3262_v19 = vpop.xlane.xlu0 %3261 }
 0x289   :  { %6645 = vpow2.f32 %v3496_v44  ;;  %v3407_v12 = vsub.f32 %v8025_v54, %v3271_v27  ;;  %v3404_v29 = vsub.f32 %v8019_v40, %v3262_v19  ;;  %3372 = vmax.xlane.f32.xlu1 %v3371_v21  ;;  %3627 = vadd.xlane.f32.xlu0 %v3626_v5 }
 0x28a   :  { %v8298_v38 = vpop.eup %6633  ;;  %6647 = vpow2.f32 %v3486_v42 }
 0x28b   :  { %v8300_v46 = vpop.eup %6635  ;;  %v3498_v11 = vmul.f32 1.442695, %v3407_v12  ;;  %v3492_v48 = vmul.f32 1.442695, %v3404_v29  ;;  %v3629_v55 = vsel %vm3187_vm3, %v8298_v38, 0.0 }
 0x28c   :  { %v3280_v3 = vpop.xlane.xlu0 %3279  ;;  %v3265_v9 = vpop.xlane.xlu1 %3264  ;;  %v3620_v58 = vsel %vm3187_vm3, %v8300_v46, 0.0 }
 0x28d   :  { %6649 = vpow2.f32 %v3498_v11  ;;  %v3410_v40 = vsub.f32 %v8033_v10, %v3280_v3  ;;  %v3405_v54 = vsub.f32 %v8027_v6, %v3265_v9  ;;  %3630 = vadd.xlane.f32.xlu1 %v3629_v55  ;;  %3621 = vadd.xlane.f32.xlu0 %v3620_v58 }
 0x28e   :  { %v8308_v17 = vpop.eup %6637  ;;  %6651 = vpow2.f32 %v3492_v48 }
 0x28f   :  { %v8310_v63 = vpop.eup %6639  ;;  %v3504_v62 = vmul.f32 1.442695, %v3410_v40  ;;  %v3494_v16 = vmul.f32 1.442695, %v3405_v54  ;;  %v3638_v44 = vsel %vm3187_vm3, %v8308_v17, 0.0 }
 0x290   :  { %v3283_v42 = vpop.xlane.xlu1 %3282  ;;  %v3274_v5 = vpop.xlane.xlu0 %3273  ;;  %v3623_v27 = vsel %vm3187_vm3, %v8310_v63, 0.0 }
 0x291   :  { %6653 = vpow2.f32 %v3504_v62  ;;  %v3411_v6 = vsub.f32 %v8041_v51, %v3283_v42  ;;  %v3408_v10 = vsub.f32 %v8035_v59, %v3274_v5  ;;  %3624 = vadd.xlane.f32.xlu1 %v3623_v27  ;;  %3639 = vadd.xlane.f32.xlu0 %v3638_v44 }
 0x292   :  { %v8318_v19 = vpop.eup %6641  ;;  %6655 = vpow2.f32 %v3494_v16 }
 0x293   :  { %v8320_v21 = vpop.eup %6643  ;;  %v3506_v12 = vmul.f32 1.442695, %v3411_v6  ;;  %v3500_v29 = vmul.f32 1.442695, %v3408_v10  ;;  %v3641_v11 = vsel %vm3187_vm3, %v8318_v19, 0.0 }
 0x294   :  { %v3277_v48 = vpop.xlane.xlu1 %3276  ;;  %v3632_v55 = vsel %vm3187_vm3, %v8320_v21, 0.0 }
 0x295   :  { %6657 = vpow2.f32 %v3506_v12  ;;  %v3292_v51 = vpop.xlane.xlu0 %3291  ;;  %v3409_v59 = vsub.f32 %v8043_v30, %v3277_v48  ;;  %3642 = vadd.xlane.f32.xlu1 %v3641_v11  ;;  %3633 = vadd.xlane.f32.xlu0 %v3632_v55 }
 0x296   :  { %v8327_v3 = vpop.eup %6645  ;;  %6659 = vpow2.f32 %v3500_v29  ;;  %v3414_v9 = vsub.f32 %v8049_v37, %v3292_v51 }
 0x297   :  { %v8330_v58 = vpop.eup %6647  ;;  %v3502_v40 = vmul.f32 1.442695, %v3409_v59  ;;  %v3650_v54 = vsel %vm3187_vm3, %v8327_v3, 0.0 }
 0x298   :  { %v3512_v62 = vmul.f32 1.442695, %v3414_v9  ;;  %v3635_v16 = vsel %vm3187_vm3, %v8330_v58, 0.0 }
 0x299   :  { %6661 = vpow2.f32 %v3502_v40  ;;  %v3295_v44 = vpop.xlane.xlu1 %3294  ;;  %v3286_v30 = vpop.xlane.xlu0 %3285  ;;  %3636 = vadd.xlane.f32.xlu1 %v3635_v16  ;;  %3651 = vadd.xlane.f32.xlu0 %v3650_v54 }
 0x29a   :  { %v8336_v42 = vpop.eup %6649  ;;  %6663 = vpow2.f32 %v3512_v62  ;;  %v3415_v37 = vsub.f32 %v8057_v22, %v3295_v44  ;;  %v3412_v5 = vsub.f32 %v8055_v53, %v3286_v30 }
 0x29b   :  { %v8340_v27 = vpop.eup %6651  ;;  %v3653_v6 = vsel %vm3187_vm3, %v8336_v42, 0.0 }
 0x29c   :  { %v3514_v10 = vmul.f32 1.442695, %v3415_v37  ;;  %v3508_v12 = vmul.f32 1.442695, %v3412_v5  ;;  %v3644_v29 = vsel %vm3187_vm3, %v8340_v27, 0.0 }
 0x29d   :  { %v3304_v11 = vpop.xlane.xlu0 %3303  ;;  %v3289_v48 = vpop.xlane.xlu1 %3288  ;;  %3654 = vadd.xlane.f32.xlu1 %v3653_v6  ;;  %3645 = vadd.xlane.f32.xlu0 %v3644_v29 }
 0x29e   :  { %v8346_v55 = vpop.eup %6653  ;;  %6665 = vpow2.f32 %v3514_v10  ;;  %v3418_v22 = vsub.f32 %v8065_v14, %v3304_v11  ;;  %v3413_v53 = vsub.f32 %v8063_v0, %v3289_v48 }
 0x29f   :  { %v8350_v51 = vpop.eup %6655  ;;  %6667 = vpow2.f32 %v3508_v12  ;;  %v3662_v59 = vsel %vm3187_vm3, %v8346_v55, 0.0 }
 0x2a0   :  { %v3520_v9 = vmul.f32 1.442695, %v3418_v22  ;;  %v3510_v40 = vmul.f32 1.442695, %v3413_v53  ;;  %v3647_v54 = vsel %vm3187_vm3, %v8350_v51, 0.0 }
 0x2a1   :  { %v3307_v62 = vpop.xlane.xlu1 %3306  ;;  %v3298_v16 = vpop.xlane.xlu0 %3297  ;;  %3648 = vadd.xlane.f32.xlu1 %v3647_v54  ;;  %3663 = vadd.xlane.f32.xlu0 %v3662_v59 }
 0x2a2   :  { %v8356_v44 = vpop.eup %6657  ;;  %6669 = vpow2.f32 %v3520_v9  ;;  %v3419_v0 = vsub.f32 %v8073_v8, %v3307_v62  ;;  %v3416_v14 = vsub.f32 %v8071_v15, %v3298_v16 }
 0x2a3   :  { %v8360_v30 = vpop.eup %6659  ;;  %6671 = vpow2.f32 %v3510_v40  ;;  %v3665_v37 = vsel %vm3187_vm3, %v8356_v44, 0.0 }
 0x2a4   :  { %v3522_v5 = vmul.f32 1.442695, %v3419_v0  ;;  %v3516_v6 = vmul.f32 1.442695, %v3416_v14  ;;  %v3656_v10 = vsel %vm3187_vm3, %v8360_v30, 0.0 }
 0x2a5   :  { %v3316_v12 = vpop.xlane.xlu0 %3315  ;;  %v3301_v29 = vpop.xlane.xlu1 %3300  ;;  %3666 = vadd.xlane.f32.xlu1 %v3665_v37  ;;  %3657 = vadd.xlane.f32.xlu0 %v3656_v10 }
 0x2a6   :  { %v8366_v11 = vpop.eup %6661  ;;  %6673 = vpow2.f32 %v3522_v5  ;;  %v3422_v15 = vsub.f32 %v8081_v33, %v3316_v12  ;;  %v3417_v8 = vsub.f32 %v8079_v2, %v3301_v29 }
 0x2a7   :  { %v8370_v48 = vpop.eup %6663  ;;  %6675 = vpow2.f32 %v3516_v6  ;;  %v3659_v22 = vsel %vm3187_vm3, %v8366_v11, 0.0 }
 0x2a8   :  { %v3528_v53 = vmul.f32 1.442695, %v3422_v15  ;;  %v3518_v59 = vmul.f32 1.442695, %v3417_v8  ;;  %v3674_v9 = vsel %vm3187_vm3, %v8370_v48, 0.0 }
 0x2a9   :  { %v3319_v40 = vpop.xlane.xlu1 %3318  ;;  %v3310_v54 = vpop.xlane.xlu0 %3309  ;;  %3660 = vadd.xlane.f32.xlu1 %v3659_v22  ;;  %3675 = vadd.xlane.f32.xlu0 %v3674_v9 }
 0x2aa   :  { %6677 = vpow2.f32 %v3528_v53  ;;  %v3423_v33 = vsub.f32 %v8089_v47, %v3319_v40  ;;  %v3420_v2 = vsub.f32 %v8087_v61, %v3310_v54 }
 0x2ab   :  { %v8378_v62 = vpop.eup %6665  ;;  %6679 = vpow2.f32 %v3518_v59 }
 0x2ac   :  { %v8380_v16 = vpop.eup %6667  ;;  %v3530_v0 = vmul.f32 1.442695, %v3423_v33  ;;  %v3524_v14 = vmul.f32 1.442695, %v3420_v2  ;;  %v3677_v37 = vsel %vm3187_vm3, %v8378_v62, 0.0 }
 0x2ad   :  { %v3328_v5 = vpop.xlane.xlu0 %3327  ;;  %v3313_v6 = vpop.xlane.xlu1 %3312  ;;  %v3668_v10 = vsel %vm3187_vm3, %v8380_v16, 0.0  ;;  %3678 = vadd.xlane.f32.xlu1 %v3677_v37 }
 0x2ae   :  { %6681 = vpow2.f32 %v3530_v0  ;;  %v3426_v61 = vsub.f32 %v8097_v34, %v3328_v5  ;;  %v3421_v47 = vsub.f32 %v8095_v50, %v3313_v6  ;;  %3669 = vadd.xlane.f32.xlu0 %v3668_v10 }
 0x2af   :  { %v8388_v12 = vpop.eup %6669  ;;  %6683 = vpow2.f32 %v3524_v14 }
 0x2b0   :  { %v8390_v29 = vpop.eup %6671  ;;  %v3536_v15 = vmul.f32 1.442695, %v3426_v61  ;;  %v3526_v8 = vmul.f32 1.442695, %v3421_v47  ;;  %v3686_v22 = vsel %vm3187_vm3, %v8388_v12, 0.0 }
 0x2b1   :  { %v3331_v53 = vpop.xlane.xlu1 %3330  ;;  %v3322_v59 = vpop.xlane.xlu0 %3321  ;;  %v3671_v9 = vsel %vm3187_vm3, %v8390_v29, 0.0 }
 0x2b2   :  { %6685 = vpow2.f32 %v3536_v15  ;;  %v3427_v34 = vsub.f32 %v8105_v43, %v3331_v53  ;;  %v3424_v50 = vsub.f32 %v8103_v45, %v3322_v59  ;;  %3687 = vadd.xlane.f32.xlu0 %v3686_v22  ;;  %3672 = vadd.xlane.f32.xlu1 %v3671_v9 }
 0x2b3   :  { %v8398_v40 = vpop.eup %6673  ;;  %6687 = vpow2.f32 %v3526_v8 }
 0x2b4   :  { %v8400_v54 = vpop.eup %6675  ;;  %v3538_v33 = vmul.f32 1.442695, %v3427_v34  ;;  %v3532_v2 = vmul.f32 1.442695, %v3424_v50  ;;  %v3689_v0 = vsel %vm3187_vm3, %v8398_v40, 0.0 }
 0x2b5   :  { %v3325_v14 = vpop.xlane.xlu1 %3324  ;;  %v3680_v37 = vsel %vm3187_vm3, %v8400_v54, 0.0 }
 0x2b6   :  { %6689 = vpow2.f32 %v3538_v33  ;;  %v3425_v43 = vsub.f32 %v8111_v28, %v3325_v14  ;;  %3681 = vadd.xlane.f32.xlu0 %v3680_v37  ;;  %3690 = vadd.xlane.f32.xlu1 %v3689_v0 }
 0x2b7   :  { %v8407_v45 = vpop.eup %6677  ;;  %6691 = vpow2.f32 %v3532_v2 }
 0x2b8   :  { %v8409_v5 = vpop.eup %6679  ;;  %v3534_v6 = vmul.f32 1.442695, %v3425_v43  ;;  %v3698_v10 = vsel %vm3187_vm3, %v8407_v45, 0.0 }
 0x2b9   :  { %v3683_v61 = vsel %vm3187_vm3, %v8409_v5, 0.0 }
 0x2ba   :  { %6693 = vpow2.f32 %v3534_v6  ;;  %3699 = vadd.xlane.f32.xlu0 %v3698_v10  ;;  %3684 = vadd.xlane.f32.xlu1 %v3683_v61 }
 0x2bb   :  { %v8415_v47 = vpop.eup %6681 }
 0x2bc   :  { %v8417_v28 = vpop.eup %6683  ;;  %v3701_v15 = vsel %vm3187_vm3, %v8415_v47, 0.0 }
 0x2bd   :  { %v3692_v8 = vsel %vm3187_vm3, %v8417_v28, 0.0 }
 0x2be   :  { %3693 = vadd.xlane.f32.xlu0 %v3692_v8  ;;  %3702 = vadd.xlane.f32.xlu1 %v3701_v15 }
 0x2bf   :  { %v8423_v22 = vpop.eup %6685 }
 0x2c0   :  { %9081 = vst [vmem:[#allocation77_spill] sm:$0xff] %v8423_v22  ;;  %v8425_v53 = vpop.eup %6687  ;;  %v3710_v59 = vsel %vm3187_vm3, %v8423_v22, 0.0 }
 0x2c1   :  { %9082 = vst [vmem:[#allocation78_spill] sm:$0xff] %v8425_v53  ;;  %v3695_v9 = vsel %vm3187_vm3, %v8425_v53, 0.0 }
 0x2c2   :  { %3711 = vadd.xlane.f32.xlu0 %v3710_v59  ;;  %3696 = vadd.xlane.f32.xlu1 %v3695_v9 }
 0x2c3   :  { %v8431_v34 = vpop.eup %6689 }
 0x2c4   :  { %9083 = vst [vmem:[#allocation79_spill] sm:$0xff] %v8431_v34  ;;  %v8433_v50 = vpop.eup %6691  ;;  %v3713_v33 = vsel %vm3187_vm3, %v8431_v34, 0.0 }
 0x2c5   :  { %9084 = vst [vmem:[#allocation80_spill] sm:$0xff] %v8433_v50  ;;  %v3704_v2 = vsel %vm3187_vm3, %v8433_v50, 0.0 }
 0x2c6   :  { %3705 = vadd.xlane.f32.xlu0 %v3704_v2  ;;  %3714 = vadd.xlane.f32.xlu1 %v3713_v33 }
 0x2c7   :  { %v8439_v0 = vpop.eup %6693 }
 0x2c8   :  { %9085 = vst [vmem:[#allocation81_spill] sm:$0xff] %v8439_v0  ;;  %v3707_v14 = vsel %vm3187_vm3, %v8439_v0, 0.0 }
 0x2ca   :  { %3708 = vadd.xlane.f32.xlu1 %v3707_v14 }
 0x2d2   :  { %v3580_v37 = vpop.xlane.xlu0 %3579 }
 0x2d3   :  { %6695 = vrcp.f32 %v3580_v37 }
 0x2d6   :  { %v3583_v43 = vpop.xlane.xlu1 %3582  ;;  %v3574_v6 = vpop.xlane.xlu0 %3573 }
 0x2d7   :  { %6697 = vrcp.f32 %v3583_v43 }
 0x2d8   :  { %6699 = vrcp.f32 %v3574_v6 }
 0x2da   :  { %v3577_v10 = vpop.xlane.xlu1 %3576  ;;  %v3340_v61 = vpop.xlane.xlu0 %3339 }
 0x2db   :  { %6701 = vrcp.f32 %v3577_v10  ;;  %v3430_v15 = vsub.f32 %v8135_v32, %v3340_v61  ;;  %v9086_v10 = vld [vmem:[#allocation65_spill] sm:$0xff]  ;;  %v9087_v61 = vld [vmem:[#allocation67_spill] sm:$0xff] }
 0x2dd   :  { %v3544_v8 = vmul.f32 1.442695, %v3430_v15 }
 0x2de   :  { %v3343_v59 = vpop.xlane.xlu1 %3342  ;;  %v3334_v33 = vpop.xlane.xlu0 %3333 }
 0x2df   :  { %v3431_v9 = vsub.f32 %v8139_v20, %v3343_v59  ;;  %6703 = vpow2.f32 %v3544_v8  ;;  %v3428_v2 = vsub.f32 %v8144_v23, %v3334_v33  ;;  %v9088_v33 = vld [vmem:[#allocation66_spill] sm:$0xff] }
 0x2e0   :  { %v6696_v0 = vpop.eup %6695 }
 0x2e1   :  { %v3546_v14 = vmul.f32 1.442695, %v3431_v9  ;;  %v3540_v37 = vmul.f32 1.442695, %v3428_v2  ;;  %v3769_v32 = vmul.f32 %v6696_v0, %v9086_v10 }
 0x2e2   :  { %v3337_v50 = vpop.xlane.xlu1 %3336  ;;  %v3592_v43 = vpop.xlane.xlu0 %3591 }
 0x2e3   :  { %6705 = vpow2.f32 %v3546_v14  ;;  %v3429_v6 = vsub.f32 %v8149_v49, %v3337_v50  ;;  %v9089_v14 = vld [vmem:[#allocation68_spill] sm:$0xff]  ;;  %v9090_v49 = vld [vmem:[#allocation7_spill] sm:$0xff]  ;;  %v9091_v50 = vld [vmem:[#allocation5_spill] sm:$0xff] }
 0x2e4   :  { %v6698_v34 = vpop.eup %6697  ;;  %6707 = vpow2.f32 %v3540_v37  ;;  %v9092_v0 = vpack.c.bf16 %v9090_v49, %v9091_v50  ;;  %v9093_v37 = vmov 0.0  }
 0x2e5   :  { %v3771_v15 = vmul.f32 %v6698_v34, %v9087_v61  ;;  %v3542_v22 = vmul.f32 1.442695, %v3429_v6  ;;  %v6700_v20 = vpop.eup %6699  ;;  %6709 = vrcp.f32 %v3592_v43  ;;  %v9094_v61 = vld [vmem:[#allocation8_spill] sm:$0xff] }
 0x2e6   :  { %v3595_v8 = vpop.xlane.xlu1 %3594  ;;  %v3586_v23 = vpop.xlane.xlu0 %3585  ;;  %v3765_v2 = vmul.f32 %v6700_v20, %v9088_v33 }
 0x2e7   :  { %v3893_v59 = vpack.c.bf16 %v3771_v15, %v3769_v32  ;;  %6711 = vpow2.f32 %v3542_v22  ;;  %v9095_v15 = vld [vmem:[#allocation6_spill] sm:$0xff] }
 0x2e8   :  { %v6702_v9 = vpop.eup %6701  ;;  %6713 = vrcp.f32 %v3586_v23  ;;  %v9096_v20 = vpack.c.bf16 %v9094_v61, %v9095_v15 }
 0x2e9   :  { %v3767_v53 = vmul.f32 %v6702_v9, %v9089_v14  ;;  %6715 = vrcp.f32 %v3595_v8  ;;  %6387 = vmatmul.mubr.msk.bf16.vlgmr.msra.gmra.mxu1 %vm3187_vm3, %v3893_v59  ;;  %v9097_v9 = vld [vmem:[#allocation73_spill] sm:$0xff] }
 0x2ea   :  { %6397 = vmatpush3.bf16.msra.mxu1 %v9092_v0  ;;  %v3589_v34 = vpop.xlane.xlu1 %3588  ;;  %6398 = vmatprep.mubr.msk.bf16.mxu1 %vm6884_vm1, %v9093_v37  ;;  %v3352_v22 = vpop.xlane.xlu0 %3351 }
 0x2eb   :  { %v3892_v43 = vpack.c.bf16 %v3767_v53, %v3765_v2  ;;  %6717 = vrcp.f32 %v3589_v34  ;;  %6408 = vmatprep.subr.bf16.mxu1 %v9093_v37  ;;  %v3434_v6 = vsub.f32 %v8177_v41, %v3352_v22 }
 0x2ec   :  { %v8459_v10 = vpop.eup %6703 }
 0x2ed   :  { %6381 = vmatmul.mubr.msk.bf16.vlgmr.msra.gmra.mxu0 %vm3187_vm3, %v3892_v43  ;;  %v3552_v32 = vmul.f32 1.442695, %v3434_v6  ;;  %v3722_v59 = vsel %vm3187_vm3, %v8459_v10, 0.0 }
 0x2ee   :  { %6391 = vmatpush3.bf16.msra.mxu0 %v9096_v20  ;;  %v3355_v8 = vpop.xlane.xlu1 %3354  ;;  %6392 = vmatprep.mubr.msk.bf16.mxu0 %vm6884_vm1, %v9093_v37  ;;  %v3346_v23 = vpop.xlane.xlu0 %3345 }
 0x2ef   :  { %v3435_v53 = vsub.f32 %v8183_v1, %v3355_v8  ;;  %3723 = vadd.xlane.f32.xlu0 %v3722_v59  ;;  %6402 = vmatprep.subr.bf16.mxu0 %v9093_v37  ;;  %6719 = vpow2.f32 %v3552_v32  ;;  %v3432_v33 = vsub.f32 %v9097_v9, %v3346_v23  ;;  %v9099_v59 = vld [vmem:[#allocation69_spill] sm:$0xff]  ;;  %v9100_v23 = vld [vmem:[#allocation70_spill] sm:$0xff] }
 0x2f0   :  { %v8471_v41 = vpop.eup %6705 }
 0x2f1   :  { %v8474_v2 = vpop.eup %6707  ;;  %v3554_v14 = vmul.f32 1.442695, %v3435_v53  ;;  %v3725_v49 = vsel %vm3187_vm3, %v8471_v41, 0.0  ;;  %v3548_v50 = vmul.f32 1.442695, %v3432_v33 }
 0x2f2   :  { %v3349_v0 = vpop.xlane.xlu1 %3348  ;;  %v3716_v1 = vsel %vm3187_vm3, %v8474_v2, 0.0  ;;  %3726 = vadd.xlane.f32.xlu1 %v3725_v49  ;;  %v6710_v34 = vpop.eup %6709 }
 0x2f3   :  { %6721 = vpow2.f32 %v3554_v14  ;;  %v3604_v43 = vpop.xlane.xlu0 %3603  ;;  %v3433_v22 = vsub.f32 %v8197_v7, %v3349_v0  ;;  %3717 = vadd.xlane.f32.xlu0 %v3716_v1  ;;  %v3777_v53 = vmul.f32 %v6710_v34, %v9099_v59  ;;  %v9101_v14 = vld [vmem:[#allocation71_spill] sm:$0xff]  ;;  %v9102_v0 = vld [vmem:[#allocation72_spill] sm:$0xff]  ;;  %v9104_v34 = vld [vmem:[#allocation9_spill] sm:$0xff] }
 0x2f4   :  { %v8481_v6 = vpop.eup %6711  ;;  %6723 = vpow2.f32 %v3548_v50 }
 0x2f5   :  { %9098 = vst [vmem:[#allocation65_spill] sm:$0xff] %v8481_v6  ;;  %v6714_v32 = vpop.eup %6713  ;;  %v3550_v61 = vmul.f32 1.442695, %v3433_v22  ;;  %v3719_v15 = vsel %vm3187_vm3, %v8481_v6, 0.0  ;;  %6725 = vrcp.f32 %v3604_v43 }
 0x2f6   :  { %v6716_v20 = vpop.eup %6715  ;;  %v3607_v8 = vpop.xlane.xlu1 %3606  ;;  %3720 = vadd.xlane.f32.xlu1 %v3719_v15  ;;  %v3773_v49 = vmul.f32 %v6714_v32, %v9101_v14  ;;  %v9103_v15 = vld [vmem:[#allocation11_spill] sm:$0xff] }
 0x2f7   :  { %v3779_v9 = vmul.f32 %v6716_v20, %v9100_v23  ;;  %6727 = vpow2.f32 %v3550_v61  ;;  %v3598_v33 = vpop.xlane.xlu0 %3597  ;;  %v9105_v59 = vpack.c.bf16 %v9103_v15, %v9104_v34 }
 0x2f8   :  { %v6718_v7 = vpop.eup %6717  ;;  %6729 = vrcp.f32 %v3598_v33 }
 0x2f9   :  { %v3895_v50 = vpack.c.bf16 %v3779_v9, %v3777_v53  ;;  %v3775_v1 = vmul.f32 %v6718_v7, %v9102_v0  ;;  %6731 = vrcp.f32 %v3607_v8  ;;  %v9106_v8 = vld [vmem:[#allocation12_spill] sm:$0xff]  ;;  %v9107_v53 = vld [vmem:[#allocation10_spill] sm:$0xff] }
 0x2fa   :  { %v3601_v22 = vpop.xlane.xlu1 %3600  ;;  %v9108_v23 = vpack.c.bf16 %v9106_v8, %v9107_v53 }
 0x2fb   :  { %v3894_v6 = vpack.c.bf16 %v3775_v1, %v3773_v49  ;;  %6399 = vmatmul.mubr.msk.bf16.vlgmr.msra.gmra.mxu1 %vm3187_vm3, %v3895_v50  ;;  %v3364_v43 = vpop.xlane.xlu0 %3363  ;;  %6733 = vrcp.f32 %v3601_v22 }
 0x2fc   :  { %6409 = vmatpush3.bf16.msra.mxu1 %v9105_v59  ;;  %v3438_v61 = vsub.f32 %v8224_v25, %v3364_v43  ;;  %6410 = vmatprep.mubr.msk.bf16.mxu1 %vm6884_vm1, %v9093_v37  ;;  %v8496_v32 = vpop.eup %6719 }
 0x2fd   :  { %6393 = vmatmul.mubr.msk.bf16.vlgmr.msra.gmra.mxu0 %vm3187_vm3, %v3894_v6  ;;  %6420 = vmatprep.subr.bf16.mxu1 %v9093_v37  ;;  %v3734_v33 = vsel %vm3187_vm3, %v8496_v32, 0.0 }
 0x2fe   :  { %v3560_v20 = vmul.f32 1.442695, %v3438_v61  ;;  %6403 = vmatpush3.bf16.msra.mxu0 %v9108_v23  ;;  %v3367_v9 = vpop.xlane.xlu1 %3366  ;;  %6404 = vmatprep.mubr.msk.bf16.mxu0 %vm6884_vm1, %v9093_v37 }
 0x2ff   :  { %v3439_v25 = vsub.f32 %v8229_v18, %v3367_v9  ;;  %v3358_v7 = vpop.xlane.xlu0 %3357  ;;  %3735 = vadd.xlane.f32.xlu0 %v3734_v33  ;;  %6414 = vmatprep.subr.bf16.mxu0 %v9093_v37 }
 0x300   :  { %v8509_v6 = vpop.eup %6721  ;;  %6735 = vpow2.f32 %v3560_v20  ;;  %v3436_v14 = vsub.f32 %v8234_v24, %v3358_v7 }
 0x301   :  { %v8512_v49 = vpop.eup %6723  ;;  %v3562_v50 = vmul.f32 1.442695, %v3439_v25  ;;  %v3737_v0 = vsel %vm3187_vm3, %v8509_v6, 0.0  ;;  %v9109_v25 = vld [vmem:[#allocation74_spill] sm:$0xff] }
 0x302   :  { %v3556_v1 = vmul.f32 1.442695, %v3436_v14  ;;  %v3361_v22 = vpop.xlane.xlu1 %3360  ;;  %v3728_v18 = vsel %vm3187_vm3, %v8512_v49, 0.0  ;;  %3738 = vadd.xlane.f32.xlu1 %v3737_v0  ;;  %v6726_v43 = vpop.eup %6725 }
 0x303   :  { %6737 = vpow2.f32 %v3562_v50  ;;  %v3616_v15 = vpop.xlane.xlu0 %3615  ;;  %v3437_v34 = vsub.f32 %v8239_v36, %v3361_v22  ;;  %3729 = vadd.xlane.f32.xlu0 %v3728_v18  ;;  %v3785_v23 = vmul.f32 %v6726_v43, %v8208_v31  ;;  %v9110_v50 = vld [vmem:[#allocation75_spill] sm:$0xff]  ;;  %v9112_v31 = vld [vmem:[#allocation13_spill] sm:$0xff] }
 0x304   :  { %v8519_v59 = vpop.eup %6727  ;;  %6739 = vpow2.f32 %v3556_v1 }
 0x305   :  { %v6730_v24 = vpop.eup %6729  ;;  %v3558_v61 = vmul.f32 1.442695, %v3437_v34  ;;  %v3731_v20 = vsel %vm3187_vm3, %v8519_v59, 0.0  ;;  %6741 = vrcp.f32 %v3616_v15  ;;  %v9111_v15 = vld [vmem:[#allocation15_spill] sm:$0xff] }
 0x306   :  { %v6732_v8 = vpop.eup %6731  ;;  %v3619_v53 = vpop.xlane.xlu1 %3618  ;;  %3732 = vadd.xlane.f32.xlu1 %v3731_v20  ;;  %v3781_v7 = vmul.f32 %v6730_v24, %v9109_v25  ;;  %v9113_v43 = vpack.c.bf16 %v9111_v15, %v9112_v31  ;;  %v9114_v24 = vld [vmem:[#allocation16_spill] sm:$0xff] }
 0x307   :  { %v3787_v9 = vmul.f32 %v6732_v8, %v8213_v52  ;;  %6743 = vpow2.f32 %v3558_v61  ;;  %v3610_v33 = vpop.xlane.xlu0 %3609  ;;  %v9115_v61 = vld [vmem:[#allocation14_spill] sm:$0xff] }
 0x308   :  { %v6734_v36 = vpop.eup %6733  ;;  %6745 = vrcp.f32 %v3610_v33  ;;  %v9116_v20 = vpack.c.bf16 %v9114_v24, %v9115_v61 }
 0x309   :  { %v3897_v14 = vpack.c.bf16 %v3787_v9, %v3785_v23  ;;  %v3783_v0 = vmul.f32 %v6734_v36, %v9110_v50  ;;  %6747 = vrcp.f32 %v3619_v53 }
 0x30a   :  { %v3613_v1 = vpop.xlane.xlu1 %3612 }
 0x30b   :  { %v3896_v22 = vpack.c.bf16 %v3783_v0, %v3781_v7  ;;  %6411 = vmatmul.mubr.msk.bf16.vlgmr.msra.gmra.mxu1 %vm3187_vm3, %v3897_v14  ;;  %v3376_v18 = vpop.xlane.xlu0 %3375  ;;  %6749 = vrcp.f32 %v3613_v1 }
 0x30c   :  { %6421 = vmatpush3.bf16.msra.mxu1 %v9113_v43  ;;  %v3442_v52 = vsub.f32 %v8259_v56, %v3376_v18  ;;  %6422 = vmatprep.mubr.msk.bf16.mxu1 %vm6884_vm1, %v9093_v37 }
 0x30d   :  { %v8534_v34 = vpop.eup %6735  ;;  %6405 = vmatmul.mubr.msk.bf16.vlgmr.msra.gmra.mxu0 %vm3187_vm3, %v3896_v22  ;;  %6432 = vmatprep.subr.bf16.mxu1 %v9093_v37 }
 0x30e   :  { %6415 = vmatpush3.bf16.msra.mxu0 %v9116_v20  ;;  %v3379_v8 = vpop.xlane.xlu1 %3378  ;;  %v3746_v53 = vsel %vm3187_vm3, %v8534_v34, 0.0  ;;  %6416 = vmatprep.mubr.msk.bf16.mxu0 %vm6884_vm1, %v9093_v37  ;;  %v3568_v56 = vmul.f32 1.442695, %v3442_v52  ;;  %v9117_v20 = vld [vmem:[#allocation76_spill] sm:$0xff] }
 0x30f   :  { %v3443_v23 = vsub.f32 %v8273_v35, %v3379_v8  ;;  %3747 = vadd.xlane.f32.xlu0 %v3746_v53  ;;  %v3370_v9 = vpop.xlane.xlu0 %3369  ;;  %6426 = vmatprep.subr.bf16.mxu0 %v9093_v37 }
 0x310   :  { %v8547_v33 = vpop.eup %6737  ;;  %v3440_v36 = vsub.f32 %v8270_v13, %v3370_v9  ;;  %6751 = vpow2.f32 %v3568_v56  ;;  %v8566_v56 = vld [vmem:[%s8944_s6 + $0x1] ss:$0 sm:$0xff] }
 0x311   :  { %v8550_v25 = vpop.eup %6739  ;;  %v3570_v7 = vmul.f32 1.442695, %v3443_v23  ;;  %v3749_v14 = vsel %vm3187_vm3, %v8547_v33, 0.0  ;;  %v9118_v23 = vld [vmem:[#allocation17_spill] sm:$0xff] }
 0x312   :  { %v3564_v50 = vmul.f32 1.442695, %v3440_v36  ;;  %v3740_v0 = vsel %vm3187_vm3, %v8550_v25, 0.0  ;;  %3750 = vadd.xlane.f32.xlu1 %v3749_v14  ;;  %v3373_v35 = vpop.xlane.xlu1 %3372  ;;  %v6742_v1 = vpop.eup %6741  ;;  %v760_v9 = vadd.f32 %v8566_v56, %v9118_v23  ;;  %v9119_v36 = vld [vmem:[#allocation20_spill] sm:$0xff] }
 0x313   :  { %3741 = vadd.xlane.f32.xlu0 %v3740_v0  ;;  %v3628_v22 = vpop.xlane.xlu0 %3627  ;;  %v3441_v18 = vsub.f32 %v8282_v4, %v3373_v35  ;;  %v3793_v61 = vmul.f32 %v6742_v1, %v8246_v26 }
 0x314   :  { %v8557_v15 = vpop.eup %6743  ;;  %6753 = vpow2.f32 %v3564_v50 }
 0x315   :  { %v6746_v13 = vpop.eup %6745  ;;  %6755 = vpow2.f32 %v3570_v7  ;;  %v3566_v31 = vmul.f32 1.442695, %v3441_v18  ;;  %v3743_v43 = vsel %vm3187_vm3, %v8557_v15, 0.0  ;;  %v763_v7 = vadd.f32 %v8566_v56, %v9119_v36  ;;  %v9120_v18 = vld [vmem:[#allocation19_spill] sm:$0xff] }
 0x316   :  { %v6748_v52 = vpop.eup %6747  ;;  %6757 = vrcp.f32 %v3628_v22  ;;  %3744 = vadd.xlane.f32.xlu1 %v3743_v43  ;;  %v3631_v24 = vpop.xlane.xlu1 %3630  ;;  %v3789_v14 = vmul.f32 %v6746_v13, %v8256_v60 }
 0x317   :  { %v3795_v8 = vmul.f32 %v6748_v52, %v9117_v20  ;;  %6759 = vpow2.f32 %v3566_v31  ;;  %v3622_v53 = vpop.xlane.xlu0 %3621  ;;  %v3932_v22 = vpack.c.bf16 %v763_v7, %v760_v9  ;;  %v9121_v31 = vld [vmem:[#allocation18_spill] sm:$0xff] }
 0x318   :  { %v6750_v4 = vpop.eup %6749  ;;  %6761 = vrcp.f32 %v3622_v53  ;;  %v9122_v43 = vpack.c.bf16 %v9120_v18, %v9121_v31  ;;  %v9124_v18 = vld [vmem:[#allocation24_spill] sm:$0xff] }
 0x319   :  { %v3899_v26 = vpack.c.bf16 %v3795_v8, %v3793_v61  ;;  %v3791_v50 = vmul.f32 %v6750_v4, %v8263_v57  ;;  %6763 = vrcp.f32 %v3631_v24  ;;  %v779_v31 = vadd.f32 %v8566_v56, %v9124_v18 }
 0x31a   :  { %v3625_v0 = vpop.xlane.xlu1 %3624 }
 0x31b   :  { %v3898_v35 = vpack.c.bf16 %v3791_v50, %v3789_v14  ;;  %6423 = vmatmul.mubr.msk.bf16.vlgmr.msra.gmra.mxu1 %vm3187_vm3, %v3899_v26  ;;  %v3640_v1 = vpop.xlane.xlu0 %3639  ;;  %6765 = vrcp.f32 %v3625_v0 }
 0x31c   :  { %6433 = vmatpush3.bf16.msra.mxu1 %v9122_v43  ;;  %6434 = vmatprep.mubr.msk.bf16.mxu1 %vm6884_vm1, %v9093_v37  ;;  %6767 = vrcp.f32 %v3640_v1  ;;  %v9123_v1 = vld [vmem:[#allocation21_spill] sm:$0xff] }
 0x31d   :  { %6417 = vmatmul.mubr.msk.bf16.vlgmr.msra.gmra.mxu0 %vm3187_vm3, %v3898_v35  ;;  %6444 = vmatprep.subr.bf16.mxu1 %v9093_v37  ;;  %v8585_v13 = vpop.eup %6751 }
 0x31e   :  { %6427 = vmatpush3.bf16.msra.mxu0 %v3932_v22  ;;  %v3643_v60 = vpop.xlane.xlu1 %3642  ;;  %6428 = vmatprep.mubr.msk.bf16.mxu0 %vm6884_vm1, %v9093_v37  ;;  %v3758_v7 = vsel %vm3187_vm3, %v8585_v13, 0.0  ;;  %v776_v22 = vadd.f32 %v8566_v56, %v9123_v1  ;;  %v9129_v1 = vld [vmem:[#allocation28_spill] sm:$0xff] }
 0x31f   :  { %v3634_v57 = vpop.xlane.xlu0 %3633  ;;  %6769 = vrcp.f32 %v3643_v60  ;;  %6438 = vmatprep.subr.bf16.mxu0 %v9093_v37 }
 0x320   :  { %6771 = vrcp.f32 %v3634_v57 }
 0x321   :  { %v8587_v52 = vpop.eup %6753 }
 0x322   :  { %v8589_v24 = vpop.eup %6755  ;;  %v3752_v61 = vsel %vm3187_vm3, %v8587_v52, 0.0  ;;  %v3637_v20 = vpop.xlane.xlu1 %3636 }
 0x323   :  { %v6758_v8 = vpop.eup %6757  ;;  %3753 = vadd.xlane.f32.xlu0 %v3752_v61  ;;  %v3652_v53 = vpop.xlane.xlu0 %3651  ;;  %6773 = vrcp.f32 %v3637_v20  ;;  %v3761_v43 = vsel %vm3187_vm3, %v8589_v24, 0.0 }
 0x324   :  { %v8593_v4 = vpop.eup %6759  ;;  %6775 = vrcp.f32 %v3652_v53  ;;  %v3801_v26 = vmul.f32 %v6758_v8, %v8290_v39 }
 0x325   :  { %v6762_v23 = vpop.eup %6761  ;;  %v3755_v9 = vsel %vm3187_vm3, %v8593_v4, 0.0 }
 0x326   :  { %v6764_v36 = vpop.eup %6763  ;;  %3756 = vadd.xlane.f32.xlu1 %v3755_v9  ;;  %v3655_v14 = vpop.xlane.xlu1 %3654  ;;  %v3797_v60 = vmul.f32 %v6762_v23, %v8300_v46  ;;  %v3934_v9 = vpack.c.bf16 %v779_v31, %v776_v22  ;;  %v795_v22 = vadd.f32 %v8566_v56, %v9129_v1 }
 0x327   :  { %v3803_v50 = vmul.f32 %v6764_v36, %v8298_v38  ;;  %3759 = vadd.xlane.f32.xlu0 %v3758_v7  ;;  %v3646_v0 = vpop.xlane.xlu0 %3645  ;;  %6777 = vrcp.f32 %v3655_v14  ;;  %v9125_v36 = vld [vmem:[#allocation23_spill] sm:$0xff]  ;;  %v9126_v7 = vld [vmem:[#allocation22_spill] sm:$0xff] }
 0x328   :  { %v6766_v35 = vpop.eup %6765  ;;  %6779 = vrcp.f32 %v3646_v0  ;;  %v9127_v14 = vpack.c.bf16 %v9125_v36, %v9126_v7 }
 0x329   :  { %v3901_v57 = vpack.c.bf16 %v3803_v50, %v3801_v26  ;;  %v3799_v39 = vmul.f32 %v6766_v35, %v8310_v63  ;;  %v6768_v38 = vpop.eup %6767 }
 0x32a   :  { %3762 = vadd.xlane.f32.xlu1 %v3761_v43  ;;  %v3649_v61 = vpop.xlane.xlu1 %3648  ;;  %v3809_v46 = vmul.f32 %v6768_v38, %v8308_v17  ;;  %v9128_v17 = vld [vmem:[#allocation25_spill] sm:$0xff] }
 0x32b   :  { %v3900_v20 = vpack.c.bf16 %v3799_v39, %v3797_v60  ;;  %6435 = vmatmul.mubr.msk.bf16.vlgmr.msra.gmra.mxu1 %vm3187_vm3, %v3901_v57  ;;  %v3664_v8 = vpop.xlane.xlu0 %3663  ;;  %6781 = vrcp.f32 %v3649_v61 }
 0x32c   :  { %v6770_v53 = vpop.eup %6769  ;;  %6445 = vmatpush3.bf16.msra.mxu1 %v9127_v14  ;;  %6446 = vmatprep.mubr.msk.bf16.mxu1 %vm6884_vm1, %v9093_v37  ;;  %6783 = vrcp.f32 %v3664_v8  ;;  %v9131_v8 = vld [vmem:[#allocation26_spill] sm:$0xff] }
 0x32d   :  { %v3811_v63 = vmul.f32 %v6770_v53, %v8318_v19  ;;  %6429 = vmatmul.mubr.msk.bf16.vlgmr.msra.gmra.mxu0 %vm3187_vm3, %v3900_v20  ;;  %6456 = vmatprep.subr.bf16.mxu1 %v9093_v37  ;;  %v6772_v23 = vpop.eup %6771  ;;  %v792_v19 = vadd.f32 %v8566_v56, %v9128_v17  ;;  %v9130_v20 = vld [vmem:[#allocation27_spill] sm:$0xff] }
 0x32e   :  { %6439 = vmatpush3.bf16.msra.mxu0 %v3934_v9  ;;  %v3667_v26 = vpop.xlane.xlu1 %3666  ;;  %6440 = vmatprep.mubr.msk.bf16.mxu0 %vm6884_vm1, %v9093_v37  ;;  %v3805_v18 = vmul.f32 %v6772_v23, %v8320_v21  ;;  %v9132_v53 = vpack.c.bf16 %v9130_v20, %v9131_v8  ;;  %v9139_v20 = vld [vmem:[#allocation36_spill] sm:$0xff] }
 0x32f   :  { %v3903_v50 = vpack.c.bf16 %v3811_v63, %v3809_v46  ;;  %v3658_v0 = vpop.xlane.xlu0 %3657  ;;  %6785 = vrcp.f32 %v3667_v26  ;;  %6450 = vmatprep.subr.bf16.mxu0 %v9093_v37  ;;  %v3936_v61 = vpack.c.bf16 %v795_v22, %v792_v19  ;;  %v9134_v63 = vld [vmem:[#allocation32_spill] sm:$0xff] }
 0x330   :  { %v6774_v35 = vpop.eup %6773  ;;  %6787 = vrcp.f32 %v3658_v0  ;;  %v811_v23 = vadd.f32 %v8566_v56, %v9134_v63 }
 0x331   :  { %v3807_v31 = vmul.f32 %v6774_v35, %v8330_v58  ;;  %v6776_v43 = vpop.eup %6775 }
 0x332   :  { %v3661_v60 = vpop.xlane.xlu1 %3660  ;;  %v3817_v21 = vmul.f32 %v6776_v43, %v8327_v3  ;;  %v9133_v3 = vld [vmem:[#allocation29_spill] sm:$0xff] }
 0x333   :  { %v3902_v57 = vpack.c.bf16 %v3807_v31, %v3805_v18  ;;  %6447 = vmatmul.mubr.msk.bf16.vlgmr.msra.gmra.mxu1 %vm3187_vm3, %v3903_v50  ;;  %v3676_v39 = vpop.xlane.xlu0 %3675  ;;  %6789 = vrcp.f32 %v3661_v60  ;;  %v9135_v18 = vld [vmem:[#allocation31_spill] sm:$0xff]  ;;  %v9136_v31 = vld [vmem:[#allocation30_spill] sm:$0xff] }
 0x334   :  { %v6778_v38 = vpop.eup %6777  ;;  %6457 = vmatpush3.bf16.msra.mxu1 %v9132_v53  ;;  %6458 = vmatprep.mubr.msk.bf16.mxu1 %vm6884_vm1, %v9093_v37  ;;  %6791 = vrcp.f32 %v3676_v39  ;;  %v9137_v43 = vpack.c.bf16 %v9135_v18, %v9136_v31 }
 0x335   :  { %v3819_v58 = vmul.f32 %v6778_v38, %v8336_v42  ;;  %6441 = vmatmul.mubr.msk.bf16.vlgmr.msra.gmra.mxu0 %vm3187_vm3, %v3902_v57  ;;  %6468 = vmatprep.subr.bf16.mxu1 %v9093_v37  ;;  %v6780_v9 = vpop.eup %6779  ;;  %v808_v42 = vadd.f32 %v8566_v56, %v9133_v3  ;;  %v9140_v3 = vld [vmem:[#allocation35_spill] sm:$0xff] }
 0x336   :  { %6451 = vmatpush3.bf16.msra.mxu0 %v3936_v61  ;;  %v3679_v36 = vpop.xlane.xlu1 %3678  ;;  %6452 = vmatprep.mubr.msk.bf16.mxu0 %vm6884_vm1, %v9093_v37  ;;  %v3813_v26 = vmul.f32 %v6780_v9, %v8340_v27 }
 0x337   :  { %v3905_v7 = vpack.c.bf16 %v3819_v58, %v3817_v21  ;;  %v3670_v14 = vpop.xlane.xlu0 %3669  ;;  %6793 = vrcp.f32 %v3679_v36  ;;  %6462 = vmatprep.subr.bf16.mxu0 %v9093_v37  ;;  %v3938_v22 = vpack.c.bf16 %v811_v23, %v808_v42  ;;  %v9141_v42 = vld [vmem:[#allocation34_spill] sm:$0xff] }
 0x338   :  { %v6782_v46 = vpop.eup %6781  ;;  %6795 = vrcp.f32 %v3670_v14  ;;  %v9142_v63 = vpack.c.bf16 %v9140_v3, %v9141_v42 }
 0x339   :  { %v3815_v50 = vmul.f32 %v6782_v46, %v8350_v51  ;;  %v6784_v0 = vpop.eup %6783 }
 0x33a   :  { %v3825_v27 = vmul.f32 %v6784_v0, %v8346_v55  ;;  %v8663_v55 = vld [vmem:[%s8944_s6 + $0x2] ss:$0 sm:$0xff] }
 0x33b   :  { %v3904_v35 = vpack.c.bf16 %v3815_v50, %v3813_v26  ;;  %6459 = vmatmul.mubr.msk.bf16.vlgmr.msra.gmra.mxu1 %vm3187_vm3, %v3905_v7  ;;  %v3688_v17 = vpop.xlane.xlu0 %3687  ;;  %v3673_v19 = vpop.xlane.xlu1 %3672  ;;  %v1129_v8 = vadd.f32 %v8663_v55, %v9139_v20 }
 0x33c   :  { %v6786_v1 = vpop.eup %6785  ;;  %6469 = vmatpush3.bf16.msra.mxu1 %v9137_v43  ;;  %6470 = vmatprep.mubr.msk.bf16.mxu1 %vm6884_vm1, %v9093_v37  ;;  %6797 = vrcp.f32 %v3673_v19 }
 0x33d   :  { %v3827_v51 = vmul.f32 %v6786_v1, %v8356_v44  ;;  %6453 = vmatmul.mubr.msk.bf16.vlgmr.msra.gmra.mxu0 %vm3187_vm3, %v3904_v35  ;;  %6480 = vmatprep.subr.bf16.mxu1 %v9093_v37  ;;  %v6788_v56 = vpop.eup %6787  ;;  %6799 = vrcp.f32 %v3688_v17  ;;  %v9138_v44 = vld [vmem:[#allocation33_spill] sm:$0xff]  ;;  %v9144_v17 = vld [vmem:[#allocation40_spill] sm:$0xff] }
 0x33e   :  { %6463 = vmatpush3.bf16.msra.mxu0 %v3938_v22  ;;  %6464 = vmatprep.mubr.msk.bf16.mxu0 %vm6884_vm1, %v9093_v37  ;;  %v1126_v61 = vadd.f32 %v8663_v55, %v9138_v44  ;;  %v3821_v53 = vmul.f32 %v6788_v56, %v8360_v30  ;;  %v9143_v35 = vld [vmem:[#allocation37_spill] sm:$0xff]  ;;  %v1145_v19 = vadd.f32 %v8663_v55, %v9144_v17 }
 0x33f   :  { %v3907_v60 = vpack.c.bf16 %v3827_v51, %v3825_v27  ;;  %v3682_v57 = vpop.xlane.xlu0 %3681  ;;  %v3691_v39 = vpop.xlane.xlu1 %3690  ;;  %6474 = vmatprep.subr.bf16.mxu0 %v9093_v37  ;;  %v9145_v27 = vld [vmem:[#allocation39_spill] sm:$0xff]  ;;  %v9146_v51 = vld [vmem:[#allocation38_spill] sm:$0xff] }
 0x340   :  { %v6790_v38 = vpop.eup %6789  ;;  %6801 = vrcp.f32 %v3691_v39  ;;  %v3940_v46 = vpack.c.bf16 %v1129_v8, %v1126_v61  ;;  %v9147_v56 = vpack.c.bf16 %v9145_v27, %v9146_v51  ;;  %v9159_v27 = vld [vmem:[#allocation77_spill] sm:$0xff]  ;;  %v9160_v51 = vld [vmem:[#allocation79_spill] sm:$0xff] }
 0x341   :  { %v3823_v21 = vmul.f32 %v6790_v38, %v8366_v11  ;;  %v6792_v58 = vpop.eup %6791  ;;  %6803 = vrcp.f32 %v3682_v57 }
 0x342   :  { %v3833_v30 = vmul.f32 %v6792_v58, %v8370_v48 }
 0x343   :  { %v3906_v9 = vpack.c.bf16 %v3823_v21, %v3821_v53  ;;  %6471 = vmatmul.mubr.msk.bf16.vlgmr.msra.gmra.mxu1 %vm3187_vm3, %v3907_v60  ;;  %v3700_v36 = vpop.xlane.xlu0 %3699  ;;  %v3685_v7 = vpop.xlane.xlu1 %3684  ;;  %v9148_v53 = vld [vmem:[#allocation41_spill] sm:$0xff]  ;;  %v9149_v21 = vld [vmem:[#allocation44_spill] sm:$0xff] }
 0x344   :  { %v6794_v14 = vpop.eup %6793  ;;  %6481 = vmatpush3.bf16.msra.mxu1 %v9142_v63  ;;  %6482 = vmatprep.mubr.msk.bf16.mxu1 %vm6884_vm1, %v9093_v37  ;;  %6805 = vrcp.f32 %v3685_v7 }
 0x345   :  { %v3835_v11 = vmul.f32 %v6794_v14, %v8378_v62  ;;  %6465 = vmatmul.mubr.msk.bf16.vlgmr.msra.gmra.mxu0 %vm3187_vm3, %v3906_v9  ;;  %6492 = vmatprep.subr.bf16.mxu1 %v9093_v37  ;;  %6807 = vrcp.f32 %v3700_v36  ;;  %v6796_v0 = vpop.eup %6795  ;;  %v1142_v62 = vadd.f32 %v8663_v55, %v9143_v35  ;;  %v9150_v14 = vld [vmem:[#allocation43_spill] sm:$0xff] }
 0x346   :  { %6475 = vmatpush3.bf16.msra.mxu0 %v3940_v46  ;;  %6476 = vmatprep.mubr.msk.bf16.mxu0 %vm6884_vm1, %v9093_v37  ;;  %v3829_v1 = vmul.f32 %v6796_v0, %v8380_v16  ;;  %v9151_v46 = vld [vmem:[#allocation42_spill] sm:$0xff] }
 0x347   :  { %v3909_v23 = vpack.c.bf16 %v3835_v11, %v3833_v30  ;;  %v3694_v26 = vpop.xlane.xlu0 %3693  ;;  %v3703_v50 = vpop.xlane.xlu1 %3702  ;;  %6486 = vmatprep.subr.bf16.mxu0 %v9093_v37  ;;  %v3942_v57 = vpack.c.bf16 %v1145_v19, %v1142_v62  ;;  %v9152_v3 = vpack.c.bf16 %v9150_v14, %v9151_v46  ;;  %v9156_v19 = vld [vmem:[#allocation47_spill] sm:$0xff] }
 0x348   :  { %6809 = vrcp.f32 %v3703_v50  ;;  %v9153_v50 = vld [vmem:[#allocation45_spill] sm:$0xff] }
 0x349   :  { %v6798_v48 = vpop.eup %6797  ;;  %6811 = vrcp.f32 %v3694_v26  ;;  %v1174_v0 = vadd.f32 %v8663_v55, %v9153_v50 }
 0x34a   :  { %v3831_v22 = vmul.f32 %v6798_v48, %v8390_v29  ;;  %v6800_v43 = vpop.eup %6799  ;;  %v9154_v48 = vld [vmem:[#allocation48_spill] sm:$0xff] }
 0x34b   :  { %6483 = vmatmul.mubr.msk.bf16.vlgmr.msra.gmra.mxu1 %vm3187_vm3, %v3909_v23  ;;  %v3712_v18 = vpop.xlane.xlu0 %3711  ;;  %v3697_v31 = vpop.xlane.xlu1 %3696  ;;  %v3841_v29 = vmul.f32 %v6800_v43, %v8388_v12  ;;  %v1158_v12 = vadd.f32 %v8663_v55, %v9148_v53  ;;  %v1177_v35 = vadd.f32 %v8663_v55, %v9154_v48 }
 0x34c   :  { %6493 = vmatpush3.bf16.msra.mxu1 %v9147_v56  ;;  %6494 = vmatprep.mubr.msk.bf16.mxu1 %vm6884_vm1, %v9093_v37  ;;  %v3908_v60 = vpack.c.bf16 %v3831_v22, %v3829_v1  ;;  %6813 = vrcp.f32 %v3697_v31  ;;  %v9157_v1 = vld [vmem:[#allocation46_spill] sm:$0xff] }
 0x34d   :  { %6504 = vmatprep.subr.bf16.mxu1 %v9093_v37  ;;  %v6802_v16 = vpop.eup %6801  ;;  %6815 = vrcp.f32 %v3712_v18  ;;  %v9158_v22 = vpack.c.bf16 %v9156_v19, %v9157_v1  ;;  %v3946_v43 = vpack.c.bf16 %v1177_v35, %v1174_v0  ;;  %v9168_v0 = vld [vmem:[#allocation53_spill] sm:$0xff]  ;;  %v9169_v35 = vld [vmem:[#allocation56_spill] sm:$0xff] }
 0x34e   :  { %v3843_v39 = vmul.f32 %v6802_v16, %v8398_v40  ;;  %6477 = vmatmul.mubr.msk.bf16.vlgmr.msra.gmra.mxu0 %vm3187_vm3, %v3908_v60  ;;  %v6804_v61 = vpop.eup %6803  ;;  %v1161_v40 = vadd.f32 %v8663_v55, %v9149_v21  ;;  %v9165_v21 = vld [vmem:[#allocation51_spill] sm:$0xff] }
 0x34f   :  { %v3706_v38 = vpop.xlane.xlu0 %3705  ;;  %v3715_v44 = vpop.xlane.xlu1 %3714  ;;  %6487 = vmatpush3.bf16.msra.mxu0 %v3942_v57  ;;  %6488 = vmatprep.mubr.msk.bf16.mxu0 %vm6884_vm1, %v9093_v37  ;;  %v3837_v58 = vmul.f32 %v6804_v61, %v8400_v54  ;;  %v8744_v57 = vld [vmem:[%s8944_s6 + $0x3] ss:$0 sm:$0xff]  ;;  %v9163_v61 = vld [vmem:[#allocation80_spill] sm:$0xff] }
 0x350   :  { %v3911_v20 = vpack.c.bf16 %v3843_v39, %v3841_v29  ;;  %6817 = vrcp.f32 %v3715_v44  ;;  %6498 = vmatprep.subr.bf16.mxu0 %v9093_v37  ;;  %v3944_v30 = vpack.c.bf16 %v1161_v40, %v1158_v12  ;;  %v9161_v29 = vld [vmem:[#allocation49_spill] sm:$0xff]  ;;  %v9166_v40 = vld [vmem:[#allocation50_spill] sm:$0xff]  ;;  %v1508_v48 = vadd.f32 %v8744_v57, %v9168_v0 }
 0x351   :  { %v6806_v8 = vpop.eup %6805  ;;  %6819 = vrcp.f32 %v3706_v38  ;;  %v1492_v39 = vadd.f32 %v8744_v57, %v9161_v29  ;;  %v9162_v38 = vld [vmem:[#allocation52_spill] sm:$0xff]  ;;  %v9174_v29 = vld [vmem:[#allocation57_spill] sm:$0xff]  ;;  %v9183_v0 = vld [vmem:[#allocation62_spill] sm:$0xff] }
 0x352   :  { %v3839_v9 = vmul.f32 %v6806_v8, %v8409_v5  ;;  %v6808_v7 = vpop.eup %6807  ;;  %v1495_v44 = vadd.f32 %v8744_v57, %v9162_v38  ;;  %v9164_v8 = vld [vmem:[#allocation81_spill] sm:$0xff]  ;;  %v9175_v38 = vld [vmem:[#allocation60_spill] sm:$0xff] }
 0x353   :  { %6495 = vmatmul.mubr.msk.bf16.vlgmr.msra.gmra.mxu1 %vm3187_vm3, %v3911_v20  ;;  %v3709_v36 = vpop.xlane.xlu1 %3708  ;;  %v3849_v54 = vmul.f32 %v6808_v7, %v8407_v45 }
 0x354   :  { %6505 = vmatpush3.bf16.msra.mxu1 %v9152_v3  ;;  %6821 = vrcp.f32 %v3709_v36  ;;  %6506 = vmatprep.mubr.msk.bf16.mxu1 %vm6884_vm1, %v9093_v37  ;;  %v3910_v42 = vpack.c.bf16 %v3839_v9, %v3837_v58  ;;  %v9167_v58 = vpack.c.bf16 %v9165_v21, %v9166_v40  ;;  %v3948_v9 = vpack.c.bf16 %v1495_v44, %v1492_v39 }
 0x355   :  { %6516 = vmatprep.subr.bf16.mxu1 %v9093_v37  ;;  %v6810_v63 = vpop.eup %6809  ;;  %v1524_v39 = vadd.f32 %v8744_v57, %v9174_v29  ;;  %v1527_v44 = vadd.f32 %v8744_v57, %v9175_v38 }
 0x356   :  { %v3851_v5 = vmul.f32 %v6810_v63, %v8415_v47  ;;  %6489 = vmatmul.mubr.msk.bf16.vlgmr.msra.gmra.mxu0 %vm3187_vm3, %v3910_v42  ;;  %v6812_v11 = vpop.eup %6811  ;;  %v9155_v47 = vld [vmem:[#allocation78_spill] sm:$0xff] }
 0x357   :  { %6499 = vmatpush3.bf16.msra.mxu0 %v3944_v30  ;;  %6500 = vmatprep.mubr.msk.bf16.mxu0 %vm6884_vm1, %v9093_v37  ;;  %v3845_v45 = vmul.f32 %v6812_v11, %v8417_v28 }
 0x358   :  { %v3913_v23 = vpack.c.bf16 %v3851_v5, %v3849_v54  ;;  %6510 = vmatprep.subr.bf16.mxu0 %v9093_v37 }
 0x359   :  { %v6814_v26 = vpop.eup %6813 }
 0x35a   :  { %v3847_v62 = vmul.f32 %v6814_v26, %v9155_v47  ;;  %v6816_v17 = vpop.eup %6815 }
 0x35b   :  { %6507 = vmatmul.mubr.msk.bf16.vlgmr.msra.gmra.mxu1 %vm3187_vm3, %v3913_v23  ;;  %v3857_v28 = vmul.f32 %v6816_v17, %v9159_v27 }
 0x35c   :  { %6517 = vmatpush3.bf16.msra.mxu1 %v9158_v22  ;;  %6518 = vmatprep.mubr.msk.bf16.mxu1 %vm6884_vm1, %v9093_v37  ;;  %v3912_v18 = vpack.c.bf16 %v3847_v62, %v3845_v45  ;;  %v1511_v45 = vadd.f32 %v8744_v57, %v9169_v35  ;;  %v9170_v62 = vld [vmem:[#allocation65_spill] sm:$0xff]  ;;  %v3952_v57 = vpack.c.bf16 %v1527_v44, %v1524_v39 }
 0x35d   :  { %6528 = vmatprep.subr.bf16.mxu1 %v9093_v37  ;;  %v6818_v31 = vpop.eup %6817 }
 0x35e   :  { %v6820_v55 = vpop.eup %6819  ;;  %v3859_v56 = vmul.f32 %v6818_v31, %v9160_v51  ;;  %6501 = vmatmul.mubr.msk.bf16.vlgmr.msra.gmra.mxu0 %vm3187_vm3, %v3912_v18  ;;  %v3950_v18 = vpack.c.bf16 %v1511_v45, %v1508_v48 }
 0x35f   :  { %6511 = vmatpush3.bf16.msra.mxu0 %v3946_v43  ;;  %6512 = vmatprep.mubr.msk.bf16.mxu0 %vm6884_vm1, %v9093_v37  ;;  %v3853_v20 = vmul.f32 %v6820_v55, %v9163_v61 }
 0x360   :  { %v3915_v16 = vpack.c.bf16 %v3859_v56, %v3857_v28  ;;  %6522 = vmatprep.subr.bf16.mxu0 %v9093_v37 }
 0x361   :  { %v6822_v60 = vpop.eup %6821 }
 0x362   :  { %v3855_v53 = vmul.f32 %v6822_v60, %v9164_v8 }
 0x363   :  { %6519 = vmatmul.mubr.msk.bf16.vlgmr.msra.gmra.mxu1 %vm3187_vm3, %v3915_v16 }
 0x364   :  { %v3914_v12 = vpack.c.bf16 %v3855_v53, %v3853_v20  ;;  %6529 = vmatpush3.bf16.msra.mxu1 %v9167_v58  ;;  %6530 = vmatprep.mubr.msk.bf16.mxu1 %vm6884_vm1, %v9093_v37 }
 0x365   :  { %6540 = vmatprep.subr.bf16.mxu1 %v9093_v37 }
 0x366   :  { %6513 = vmatmul.mubr.msk.bf16.vlgmr.msra.gmra.mxu0 %vm3187_vm3, %v3914_v12 }
 0x367   :  { %6523 = vmatpush3.bf16.msra.mxu0 %v3948_v9  ;;  %6524 = vmatprep.mubr.msk.bf16.mxu0 %vm6884_vm1, %v9093_v37 }
 0x368   :  { %6534 = vmatprep.subr.bf16.mxu0 %v9093_v37 }
 0x378   :  { %v3724_v36 = vpop.xlane.xlu0 %3723 }
 0x379   :  { %6823 = vrcp.f32 %v3724_v36 }
 0x37b   :  { %v3727_v7 = vpop.xlane.xlu1 %3726 }
 0x37c   :  { %v3718_v14 = vpop.xlane.xlu0 %3717  ;;  %6825 = vrcp.f32 %v3727_v7 }
 0x37d   :  { %6827 = vrcp.f32 %v3718_v14 }
 0x37f   :  { %v3721_v46 = vpop.xlane.xlu1 %3720 }
 0x380   :  { %6829 = vrcp.f32 %v3721_v46 }
 0x386   :  { %v6824_v3 = vpop.eup %6823 }
 0x387   :  { %v3865_v30 = vmul.f32 %v6824_v3, %v8459_v10  ;;  %v9171_v10 = vld [vmem:[#allocation55_spill] sm:$0xff] }
 0x388   :  { %v3736_v42 = vpop.xlane.xlu0 %3735 }
 0x389   :  { %v6826_v63 = vpop.eup %6825  ;;  %6831 = vrcp.f32 %v3736_v42 }
 0x38a   :  { %v3867_v54 = vmul.f32 %v6826_v63, %v8471_v41  ;;  %v6828_v5 = vpop.eup %6827  ;;  %v9172_v41 = vld [vmem:[#allocation54_spill] sm:$0xff] }
 0x38b   :  { %v3739_v11 = vpop.xlane.xlu1 %3738  ;;  %v3861_v47 = vmul.f32 %v6828_v5, %v8474_v2  ;;  %v9173_v19 = vpack.c.bf16 %v9171_v10, %v9172_v41  ;;  %v9180_v5 = vld [vmem:[#allocation61_spill] sm:$0xff] }
 0x38c   :  { %v3917_v23 = vpack.c.bf16 %v3867_v54, %v3865_v30  ;;  %v3730_v26 = vpop.xlane.xlu0 %3729  ;;  %6833 = vrcp.f32 %v3739_v11  ;;  %v9179_v54 = vld [vmem:[#allocation63_spill] sm:$0xff] }
 0x38d   :  { %v6830_v50 = vpop.eup %6829  ;;  %6835 = vrcp.f32 %v3730_v26 }
 0x38e   :  { %v3863_v17 = vmul.f32 %v6830_v50, %v9170_v62  ;;  %6531 = vmatmul.mubr.msk.bf16.vlgmr.msra.gmra.mxu1 %vm3187_vm3, %v3917_v23 }
 0x38f   :  { %6541 = vmatpush3.bf16.msra.mxu1 %v9173_v19  ;;  %v3733_v1 = vpop.xlane.xlu1 %3732  ;;  %6542 = vmatprep.mubr.msk.bf16.mxu1 %vm6884_vm1, %v9093_v37 }
 0x390   :  { %v3916_v22 = vpack.c.bf16 %v3863_v17, %v3861_v47  ;;  %6837 = vrcp.f32 %v3733_v1  ;;  %6552 = vmatprep.subr.bf16.mxu1 %v9093_v37 }
 0x392   :  { %6525 = vmatmul.mubr.msk.bf16.vlgmr.msra.gmra.mxu0 %vm3187_vm3, %v3916_v22 }
 0x393   :  { %6535 = vmatpush3.bf16.msra.mxu0 %v3950_v18  ;;  %6536 = vmatprep.mubr.msk.bf16.mxu0 %vm6884_vm1, %v9093_v37 }
 0x394   :  { %6546 = vmatprep.subr.bf16.mxu0 %v9093_v37 }
 0x396   :  { %v6832_v2 = vpop.eup %6831 }
 0x397   :  { %v3873_v55 = vmul.f32 %v6832_v2, %v8496_v32  ;;  %v9176_v32 = vld [vmem:[#allocation59_spill] sm:$0xff] }
 0x398   :  { %v3748_v31 = vpop.xlane.xlu0 %3747 }
 0x399   :  { %v6834_v43 = vpop.eup %6833  ;;  %6839 = vrcp.f32 %v3748_v31 }
 0x39a   :  { %v3875_v27 = vmul.f32 %v6834_v43, %v8509_v6  ;;  %v6836_v28 = vpop.eup %6835  ;;  %v9177_v6 = vld [vmem:[#allocation58_spill] sm:$0xff] }
 0x39b   :  { %v3751_v51 = vpop.xlane.xlu1 %3750  ;;  %v3869_v61 = vmul.f32 %v6836_v28, %v8512_v49  ;;  %v9178_v8 = vpack.c.bf16 %v9176_v32, %v9177_v6 }
 0x39c   :  { %v3919_v56 = vpack.c.bf16 %v3875_v27, %v3873_v55  ;;  %v3742_v60 = vpop.xlane.xlu0 %3741  ;;  %6841 = vrcp.f32 %v3751_v51 }
 0x39d   :  { %v6838_v16 = vpop.eup %6837  ;;  %6843 = vrcp.f32 %v3742_v60 }
 0x39e   :  { %v3871_v20 = vmul.f32 %v6838_v16, %v8519_v59  ;;  %6543 = vmatmul.mubr.msk.bf16.vlgmr.msra.gmra.mxu1 %vm3187_vm3, %v3919_v56 }
 0x39f   :  { %6553 = vmatpush3.bf16.msra.mxu1 %v9178_v8  ;;  %v3745_v53 = vpop.xlane.xlu1 %3744  ;;  %6554 = vmatprep.mubr.msk.bf16.mxu1 %vm6884_vm1, %v9093_v37 }
 0x3a0   :  { %v3918_v12 = vpack.c.bf16 %v3871_v20, %v3869_v61  ;;  %6845 = vrcp.f32 %v3745_v53  ;;  %6564 = vmatprep.subr.bf16.mxu1 %v9093_v37 }
 0x3a2   :  { %6537 = vmatmul.mubr.msk.bf16.vlgmr.msra.gmra.mxu0 %vm3187_vm3, %v3918_v12 }
 0x3a3   :  { %6547 = vmatpush3.bf16.msra.mxu0 %v3952_v57  ;;  %6548 = vmatprep.mubr.msk.bf16.mxu0 %vm6884_vm1, %v9093_v37 }
 0x3a4   :  { %6558 = vmatprep.subr.bf16.mxu0 %v9093_v37 }
 0x3a6   :  { %v6840_v49 = vpop.eup %6839 }
 0x3a7   :  { %v3881_v40 = vmul.f32 %v6840_v49, %v8534_v34  ;;  %v9181_v34 = vpack.c.bf16 %v9179_v54, %v9180_v5 }
 0x3a9   :  { %v6842_v59 = vpop.eup %6841  ;;  %v8801_v21 = vpop.f32.mrf.mxu1 }
 0x3aa   :  { %v3883_v58 = vmul.f32 %v6842_v59, %v8547_v33  ;;  %v6844_v9 = vpop.eup %6843 }
 0x3ab   :  { %v6388_v36 = vpop.f32.mrf.mxu1  ;;  %v3877_v63 = vmul.f32 %v6844_v9, %v8550_v25 }
 0x3ac   :  { %v3921_v7 = vpack.c.bf16 %v3883_v58, %v3881_v40  ;;  %v3754_v14 = vpop.xlane.xlu0 %3753 }
 0x3ad   :  { %v6846_v46 = vpop.eup %6845  ;;  %v3993_v3 = vpop.f32.mrf.mxu0  ;;  %6847 = vrcp.f32 %v3754_v14 }
 0x3ae   :  { %v8805_v42 = vpop.f32.mrf.mxu1  ;;  %v3879_v30 = vmul.f32 %v6846_v46, %v8557_v15  ;;  %6555 = vmatmul.mubr.msk.bf16.vlgmr.msra.gmra.mxu1 %vm3187_vm3, %v3921_v7  ;;  %v9182_v15 = vld [vmem:[#allocation64_spill] sm:$0xff] }
 0x3af   :  { %6565 = vmatpush3.bf16.msra.mxu1 %v9181_v34  ;;  %v3757_v11 = vpop.xlane.xlu1 %3756  ;;  %6566 = vmatprep.mubr.msk.bf16.mxu1 %vm6884_vm1, %v9093_v37  ;;  %v6382_v50 = vpop.f32.mrf.mxu0  ;;  %v9184_v48 = vpack.c.bf16 %v9182_v15, %v9183_v0 }
 0x3b0   :  { %v6389_v33 = vpop.f32.mrf.mxu1  ;;  %v3920_v23 = vpack.c.bf16 %v3879_v30, %v3877_v63  ;;  %v3760_v26 = vpop.xlane.xlu0 %3759  ;;  %6849 = vrcp.f32 %v3757_v11 }
 0x3b1   :  { %6851 = vrcp.f32 %v3760_v26  ;;  %v3996_v25 = vpop.f32.mrf.mxu0 }
 0x3b2   :  { %6549 = vmatmul.mubr.msk.bf16.vlgmr.msra.gmra.mxu0 %vm3187_vm3, %v3920_v23 }
 0x3b3   :  { %6559 = vmatpush3.bf16.msra.mxu0 %v9184_v48  ;;  %v3763_v35 = vpop.xlane.xlu1 %3762  ;;  %6560 = vmatprep.mubr.msk.bf16.mxu0 %vm6884_vm1, %v9093_v37  ;;  %v6383_v45 = vpop.f32.mrf.mxu0 }
 0x3b4   :  { %6853 = vrcp.f32 %v3763_v35 }
 0x3ba   :  { %v6848_v47 = vpop.eup %6847 }
 0x3bb   :  { %v4125_v62 = vpop.f32.mrf.mxu1  ;;  %v3885_v19 = vmul.f32 %v6848_v47, %v8587_v52 }
 0x3bd   :  { %v6850_v17 = vpop.eup %6849  ;;  %v6400_v10 = vpop.f32.mrf.mxu1 }
 0x3be   :  { %v4081_v41 = vpop.f32.mrf.mxu0  ;;  %v3887_v1 = vmul.f32 %v6850_v17, %v8593_v4  ;;  %v6852_v22 = vpop.eup %6851 }
 0x3bf   :  { %v4128_v18 = vpop.f32.mrf.mxu1  ;;  %v3889_v37 = vmul.f32 %v6852_v22, %v8585_v13 }
 0x3c0   :  { %v6394_v2 = vpop.f32.mrf.mxu0  ;;  %v3922_v31 = vpack.c.bf16 %v3887_v1, %v3885_v19 }
 0x3c1   :  { %v6854_v43 = vpop.eup %6853  ;;  %v6401_v55 = vpop.f32.mrf.mxu1 }
 0x3c2   :  { %v4084_v27 = vpop.f32.mrf.mxu0  ;;  %v3891_v28 = vmul.f32 %v6854_v43, %v8589_v24  ;;  %6561 = vmatmul.mubr.msk.bf16.vlgmr.msra.gmra.mxu0 %vm3187_vm3, %v3922_v31 }
 0x3c4   :  { %v6395_v51 = vpop.f32.mrf.mxu0  ;;  %v3923_v56 = vpack.c.bf16 %v3891_v28, %v3889_v37 }
 0x3c6   :  { %6567 = vmatmul.mubr.msk.bf16.vlgmr.msra.gmra.mxu1 %vm3187_vm3, %v3923_v56 }
 0x3cb   :  { %v4213_v52 = vpop.f32.mrf.mxu1 }
 0x3cd   :  { %v6412_v60 = vpop.f32.mrf.mxu1  ;;  %v4169_v4 = vpop.f32.mrf.mxu0 }
 0x3cf   :  { %v4216_v16 = vpop.f32.mrf.mxu1  ;;  %v6406_v29 = vpop.f32.mrf.mxu0 }
 0x3d1   :  { %v6413_v39 = vpop.f32.mrf.mxu1  ;;  %v4172_v38 = vpop.f32.mrf.mxu0 }
 0x3d3   :  { %v6407_v44 = vpop.f32.mrf.mxu0 }
 0x3db   :  { %v4301_v61 = vpop.f32.mrf.mxu1 }
 0x3dd   :  { %v6424_v20 = vpop.f32.mrf.mxu1  ;;  %v4257_v32 = vpop.f32.mrf.mxu0 }
 0x3df   :  { %v4304_v13 = vpop.f32.mrf.mxu1  ;;  %v6418_v6 = vpop.f32.mrf.mxu0 }
 0x3e1   :  { %v6425_v24 = vpop.f32.mrf.mxu1  ;;  %v4260_v8 = vpop.f32.mrf.mxu0 }
 0x3e3   :  { %v6419_v53 = vpop.f32.mrf.mxu0 }
 0x3eb   :  { %v4389_v12 = vpop.f32.mrf.mxu1 }
 0x3ec   :  { %v5366_v51 = vadd.f32 %v4389_v12, %v8801_v21 }
 0x3ed   :  { %v6436_v57 = vpop.f32.mrf.mxu1  ;;  %v4345_v49 = vpop.f32.mrf.mxu0 }
 0x3ee   :  { %v5364_v59 = vadd.f32 %v4345_v49, %v3993_v3 }
 0x3ef   :  { %v4392_v40 = vpop.f32.mrf.mxu1  ;;  %v6430_v58 = vpop.f32.mrf.mxu0 }
 0x3f0   :  { %v5367_v29 = vadd.f32 %v4392_v40, %v8805_v42 }
 0x3f1   :  { %v6437_v9 = vpop.f32.mrf.mxu1  ;;  %v4348_v36 = vpop.f32.mrf.mxu0 }
 0x3f2   :  { %v5365_v7 = vadd.f32 %v4348_v36, %v3996_v25 }
 0x3f3   :  { %v4477_v14 = vpop.f32.mrf.mxu1  ;;  %v6431_v46 = vpop.f32.mrf.mxu0 }
 0x3f4   :  { %v5370_v63 = vadd.f32 %v4477_v14, %v4125_v62 }
 0x3f5   :  { %v6448_v30 = vpop.f32.mrf.mxu1  ;;  %v4433_v54 = vpop.f32.mrf.mxu0 }
 0x3f6   :  { %v5368_v5 = vadd.f32 %v4433_v54, %v4081_v41 }
 0x3f7   :  { %v4480_v34 = vpop.f32.mrf.mxu1  ;;  %v6442_v33 = vpop.f32.mrf.mxu0 }
 0x3f8   :  { %v5371_v11 = vadd.f32 %v4480_v34, %v4128_v18 }
 0x3f9   :  { %v6449_v23 = vpop.f32.mrf.mxu1  ;;  %v4436_v26 = vpop.f32.mrf.mxu0 }
 0x3fa   :  { %v5369_v50 = vadd.f32 %v4436_v26, %v4084_v27 }
 0x3fb   :  { %v4565_v15 = vpop.f32.mrf.mxu1  ;;  %v6443_v0 = vpop.f32.mrf.mxu0 }
 0x3fc   :  { %v5374_v3 = vadd.f32 %v4565_v15, %v4213_v52 }
 0x3fd   :  { %v6460_v48 = vpop.f32.mrf.mxu1  ;;  %v4521_v35 = vpop.f32.mrf.mxu0 }
 0x3fe   :  { %v5372_v45 = vadd.f32 %v4521_v35, %v4169_v4 }
 0x3ff   :  { %v4568_v47 = vpop.f32.mrf.mxu1  ;;  %v6454_v25 = vpop.f32.mrf.mxu0 }
 0x400   :  { %v5375_v17 = vadd.f32 %v4568_v47, %v4216_v16 }
 0x401   :  { %v6461_v10 = vpop.f32.mrf.mxu1  ;;  %v4524_v62 = vpop.f32.mrf.mxu0 }
 0x402   :  { %v5373_v19 = vadd.f32 %v4524_v62, %v4172_v38 }
 0x403   :  { %v4653_v1 = vpop.f32.mrf.mxu1  ;;  %v6455_v41 = vpop.f32.mrf.mxu0 }
 0x404   :  { %v5378_v22 = vadd.f32 %v4653_v1, %v4301_v61 }
 0x405   :  { %v6472_v2 = vpop.f32.mrf.mxu1  ;;  %v4609_v18 = vpop.f32.mrf.mxu0 }
 0x406   :  { %v5376_v31 = vadd.f32 %v4609_v18, %v4257_v32 }
 0x407   :  { %v4656_v43 = vpop.f32.mrf.mxu1  ;;  %v6466_v55 = vpop.f32.mrf.mxu0 }
 0x408   :  { %v5379_v27 = vadd.f32 %v4656_v43, %v4304_v13 }
 0x409   :  { %v6473_v37 = vpop.f32.mrf.mxu1  ;;  %v4612_v28 = vpop.f32.mrf.mxu0 }
 0x40a   :  { %v5377_v56 = vadd.f32 %v4612_v28, %v4260_v8 }
 0x40b   :  { %v4741_v52 = vpop.f32.mrf.mxu1  ;;  %v6467_v60 = vpop.f32.mrf.mxu0 }
 0x40c   :  { %v5382_v4 = vadd.f32 %v5366_v51, %v4741_v52 }
 0x40d   :  { %v6484_v16 = vpop.f32.mrf.mxu1 }
 0x40e   :  { %v4697_v39 = vpop.f32.mrf.mxu0 }
 0x40f   :  { %v4744_v38 = vpop.f32.mrf.mxu1  ;;  %v5380_v44 = vadd.f32 %v5364_v59, %v4697_v39 }
 0x410   :  { %v5383_v61 = vadd.f32 %v5367_v29, %v4744_v38  ;;  %v6478_v20 = vpop.f32.mrf.mxu0 }
 0x411   :  { %v6485_v32 = vpop.f32.mrf.mxu1 }
 0x412   :  { %v4700_v6 = vpop.f32.mrf.mxu0 }
 0x413   :  { %v4829_v24 = vpop.f32.mrf.mxu1  ;;  %v5381_v13 = vadd.f32 %v5365_v7, %v4700_v6 }
 0x414   :  { %v5386_v53 = vadd.f32 %v5370_v63, %v4829_v24  ;;  %v6479_v57 = vpop.f32.mrf.mxu0 }
 0x415   :  { %v6496_v49 = vpop.f32.mrf.mxu1 }
 0x416   :  { %v4785_v21 = vpop.f32.mrf.mxu0 }
 0x417   :  { %v4832_v8 = vpop.f32.mrf.mxu1  ;;  %v5384_v12 = vadd.f32 %v5368_v5, %v4785_v21 }
 0x418   :  { %v5387_v58 = vadd.f32 %v5371_v11, %v4832_v8  ;;  %v6490_v9 = vpop.f32.mrf.mxu0 }
 0x419   :  { %v6497_v36 = vpop.f32.mrf.mxu1 }
 0x41a   :  { %v4788_v14 = vpop.f32.mrf.mxu0 }
 0x41b   :  { %v4917_v42 = vpop.f32.mrf.mxu1  ;;  %v5385_v40 = vadd.f32 %v5369_v50, %v4788_v14 }
 0x41c   :  { %v8829_v46 = vadd.f32 %v5374_v3, %v4917_v42  ;;  %v6491_v59 = vpop.f32.mrf.mxu0 }
 0x41d   :  { %v6508_v30 = vpop.f32.mrf.mxu1 }
 0x41e   :  { %v4873_v54 = vpop.f32.mrf.mxu0 }
 0x41f   :  { %v4920_v34 = vpop.f32.mrf.mxu1  ;;  %v8831_v33 = vadd.f32 %v5372_v45, %v4873_v54 }
 0x420   :  { %v8833_v7 = vadd.f32 %v5375_v17, %v4920_v34  ;;  %v6502_v63 = vpop.f32.mrf.mxu0 }
 0x421   :  { %v6509_v23 = vpop.f32.mrf.mxu1 }
 0x422   :  { %v4876_v26 = vpop.f32.mrf.mxu0 }
 0x423   :  { %v5005_v5 = vpop.f32.mrf.mxu1  ;;  %v8835_v11 = vadd.f32 %v5373_v19, %v4876_v26  ;;  %v8848_v19 = vld [vmem:[%s8945_s7] ss:$0 sm:$0xff] }
 0x424   :  { %v8837_v15 = vadd.f32 %v5378_v22, %v5005_v5  ;;  %v6503_v0 = vpop.f32.mrf.mxu0 }
 0x425   :  { %v6520_v50 = vpop.f32.mrf.mxu1 }
 0x426   :  { %v4961_v3 = vpop.f32.mrf.mxu0 }
 0x427   :  { %v5008_v48 = vpop.f32.mrf.mxu1  ;;  %v8839_v35 = vadd.f32 %v5376_v31, %v4961_v3 }
 0x428   :  { %v8841_v47 = vadd.f32 %v5379_v27, %v5008_v48  ;;  %v6514_v45 = vpop.f32.mrf.mxu0 }
 0x429   :  { %v6521_v25 = vpop.f32.mrf.mxu1 }
 0x42a   :  { %v4964_v17 = vpop.f32.mrf.mxu0 }
 0x42b   :  { %v8843_v10 = vadd.f32 %v5377_v56, %v4964_v17 }
 0x42c   :  { %v6515_v62 = vpop.f32.mrf.mxu0 }
 0x44e   :  { %v5093_v1 = vpop.f32.mrf.mxu1 }
 0x44f   :  { %v5398_v41 = vadd.f32 %v5382_v4, %v5093_v1 }
 0x450   :  { %v6532_v22 = vpop.f32.mrf.mxu1 }
 0x451   :  { %v5421_v2 = vadd.f32 %v8848_v19, %v5398_v41 }
 0x452   :  { %v5049_v18 = vpop.f32.mrf.mxu0  ;;  %v5096_v31 = vpop.f32.mrf.mxu1 }
 0x453   :  { %5437 = vst.msk [vmem:[%s8947_s9 + $0x10] sm:$0xff] %vm94_vm0, %v5421_v2  ;;  %v5396_v43 = vadd.f32 %v5380_v44, %v5049_v18  ;;  %v5399_v55 = vadd.f32 %v5383_v61, %v5096_v31 }
 0x454   :  { %v6526_v27 = vpop.f32.mrf.mxu0  ;;  %v6533_v37 = vpop.f32.mrf.mxu1 }
 0x455   :  { %v5419_v28 = vadd.f32 %v8848_v19, %v5396_v43  ;;  %v5422_v51 = vadd.f32 %v8848_v19, %v5399_v55 }
 0x456   :  { %v5052_v56 = vpop.f32.mrf.mxu0 }
 0x457   :  { %5435 = vst.msk [vmem:[%s8947_s9] sm:$0xff] %vm94_vm0, %v5419_v28  ;;  %5438 = vst.msk [vmem:[%s8947_s9 + $0x18] sm:$0xff] %vm94_vm0, %v5422_v51  ;;  %v5397_v52 = vadd.f32 %v5381_v13, %v5052_v56 }
 0x458   :  { %v6527_v60 = vpop.f32.mrf.mxu0 }
 0x459   :  { %v5420_v4 = vadd.f32 %v8848_v19, %v5397_v52 }
 0x45b   :  { %5436 = vst.msk [vmem:[%s8947_s9 + $0x8] sm:$0xff] %vm94_vm0, %v5420_v4 }
 0x45e   :  { %v5181_v16 = vpop.f32.mrf.mxu1 }
 0x45f   :  { %v5402_v29 = vadd.f32 %v5386_v53, %v5181_v16 }
 0x460   :  { %v6544_v39 = vpop.f32.mrf.mxu1 }
 0x461   :  { %v5425_v38 = vadd.f32 %v8848_v19, %v5402_v29 }
 0x462   :  { %v5137_v44 = vpop.f32.mrf.mxu0  ;;  %v5184_v61 = vpop.f32.mrf.mxu1 }
 0x463   :  { %5441 = vst.msk [vmem:[%s8947_s9 + $0x30] sm:$0xff] %vm94_vm0, %v5425_v38  ;;  %v5400_v20 = vadd.f32 %v5384_v12, %v5137_v44  ;;  %v5403_v32 = vadd.f32 %v5387_v58, %v5184_v61 }
 0x464   :  { %v6538_v6 = vpop.f32.mrf.mxu0  ;;  %v6545_v24 = vpop.f32.mrf.mxu1 }
 0x465   :  { %v5423_v13 = vadd.f32 %v8848_v19, %v5400_v20  ;;  %v5426_v57 = vadd.f32 %v8848_v19, %v5403_v32 }
 0x466   :  { %v5140_v49 = vpop.f32.mrf.mxu0 }
 0x467   :  { %5439 = vst.msk [vmem:[%s8947_s9 + $0x20] sm:$0xff] %vm94_vm0, %v5423_v13  ;;  %5442 = vst.msk [vmem:[%s8947_s9 + $0x38] sm:$0xff] %vm94_vm0, %v5426_v57  ;;  %v5401_v53 = vadd.f32 %v5385_v40, %v5140_v49 }
 0x468   :  { %v6539_v21 = vpop.f32.mrf.mxu0 }
 0x469   :  { %v5424_v8 = vadd.f32 %v8848_v19, %v5401_v53 }
 0x46b   :  { %5440 = vst.msk [vmem:[%s8947_s9 + $0x28] sm:$0xff] %vm94_vm0, %v5424_v8 }
 0x46e   :  { %v5269_v12 = vpop.f32.mrf.mxu1 }
 0x46f   :  { %v5406_v58 = vadd.f32 %v8829_v46, %v5269_v12 }
 0x470   :  { %v6556_v9 = vpop.f32.mrf.mxu1 }
 0x471   :  { %v5429_v36 = vadd.f32 %v8848_v19, %v5406_v58 }
 0x472   :  { %v5225_v14 = vpop.f32.mrf.mxu0  ;;  %v5272_v42 = vpop.f32.mrf.mxu1 }
 0x473   :  { %5445 = vst.msk [vmem:[%s8947_s9 + $0x50] sm:$0xff] %vm94_vm0, %v5429_v36  ;;  %v5404_v40 = vadd.f32 %v8831_v33, %v5225_v14  ;;  %v5407_v59 = vadd.f32 %v8833_v7, %v5272_v42 }
 0x474   :  { %v6550_v30 = vpop.f32.mrf.mxu0  ;;  %v6557_v54 = vpop.f32.mrf.mxu1 }
 0x475   :  { %v5427_v34 = vadd.f32 %v8848_v19, %v5404_v40  ;;  %v5430_v46 = vadd.f32 %v8848_v19, %v5407_v59 }
 0x476   :  { %v5228_v63 = vpop.f32.mrf.mxu0 }
 0x477   :  { %5443 = vst.msk [vmem:[%s8947_s9 + $0x40] sm:$0xff] %vm94_vm0, %v5427_v34  ;;  %5446 = vst.msk [vmem:[%s8947_s9 + $0x58] sm:$0xff] %vm94_vm0, %v5430_v46  ;;  %v5405_v33 = vadd.f32 %v8835_v11, %v5228_v63 }
 0x478   :  { %v6551_v7 = vpop.f32.mrf.mxu0 }
 0x479   :  { %v5428_v23 = vadd.f32 %v8848_v19, %v5405_v33 }
 0x47b   :  { %5444 = vst.msk [vmem:[%s8947_s9 + $0x48] sm:$0xff] %vm94_vm0, %v5428_v23 }
 0x482   :  { %v5313_v26 = vpop.f32.mrf.mxu0 }
 0x483   :  { %v5408_v5 = vadd.f32 %v8839_v35, %v5313_v26 }
 0x484   :  { %v6562_v0 = vpop.f32.mrf.mxu0 }
 0x485   :  { %v5431_v50 = vadd.f32 %v8848_v19, %v5408_v5 }
 0x486   :  { %v5316_v3 = vpop.f32.mrf.mxu0  ;;  %v5357_v48 = vpop.f32.mrf.mxu1 }
 0x487   :  { %5447 = vst.msk [vmem:[%s8947_s9 + $0x60] sm:$0xff] %vm94_vm0, %v5431_v50  ;;  %v5409_v11 = vadd.f32 %v8843_v10, %v5316_v3  ;;  %v5410_v45 = vadd.f32 %v8837_v15, %v5357_v48 }
 0x488   :  { %v6563_v25 = vpop.f32.mrf.mxu0  ;;  %v6568_v17 = vpop.f32.mrf.mxu1 }
 0x489   :  { %v5432_v62 = vadd.f32 %v8848_v19, %v5409_v11  ;;  %v5433_v35 = vadd.f32 %v8848_v19, %v5410_v45 }
 0x48a   :  { %v5360_v1 = vpop.f32.mrf.mxu1 }
 0x48b   :  { %5448 = vst.msk [vmem:[%s8947_s9 + $0x68] sm:$0xff] %vm94_vm0, %v5432_v62  ;;  %5449 = vst.msk [vmem:[%s8947_s9 + $0x70] sm:$0xff] %vm94_vm0, %v5433_v35  ;;  %v5411_v10 = vadd.f32 %v8841_v47, %v5360_v1 }
 0x48c   :  { %v6569_v15 = vpop.f32.mrf.mxu1 }
 0x48d   :  { %v5434_v41 = vadd.f32 %v8848_v19, %v5411_v10 }
 0x48f   :  { %5450 = vst.msk [vmem:[%s8947_s9 + $0x78] sm:$0xff] %vm94_vm0, %v5434_v41 }
 0x490   :  { %5455 = vsyncpa [#allocation3], 1 }

</bundles_post_ra>
